<compile_context>
chip_gen: v5e
topology: v5e:2x2
jax: 0.10.0
libtpu: 0.0.40
codegen_flags: <defaults>
</compile_context>

<pallas_src>
import math

import jax
import jax.numpy as jnp
import numpy as np
from jax.experimental import pallas as pl
from jax.experimental.pallas import tpu as pltpu


# ---------------------------------------------------------------------------
# Pallas kernel
# ---------------------------------------------------------------------------
def sent_att_kernel(x_ref, h0_ref,
                    wf_ref, uf_ref, bif_ref, bhnf_ref,
                    wb_ref, ub_ref, bib_ref, bhnb_ref,
                    swt_ref, swb_ref, sb_ref, cw_ref,
                    out_ref, hout_ref):
    TB, I = x_ref.shape
    _, B, H = h0_ref.shape
    T = TB // B
    H2, H3 = 2 * H, 3 * H

    # ---- hoisted input-hidden projections (off the serial critical path) -------
    # x is already (T*B, I) bf16; W_ih is bf16; the fused bias already contains
    # b_ih (all gates) + b_hh (r, z gates), so only the n-gate hidden bias remains
    # on the per-step path.
    x = x_ref[...]
    xw_f = jnp.dot(x, wf_ref[...], preferred_element_type=jnp.float32) + bif_ref[...]
    xw_b = jnp.dot(x, wb_ref[...], preferred_element_type=jnp.float32) + bib_ref[...]

    # Weights / biases loaded & broadcast once (JAX does not CSE broadcasts in loops).
    u_f = uf_ref[...]                                   # (H, 3H) bf16
    u_b = ub_ref[...]
    sw_t = swt_ref[...]                                 # (H, 2H) bf16 — fwd rows of sent_weight
    sw_b = swb_ref[...]                                 # (H, 2H) bf16 — bwd rows of sent_weight
    bhn_f = jnp.broadcast_to(bhnf_ref[...], (B, H))     # n-gate hidden bias (stays inside r*(.))
    bhn_b = jnp.broadcast_to(bhnb_ref[...], (B, H))
    sb_row = jnp.broadcast_to(sb_ref[...], (B, H2))
    cw_row = jnp.broadcast_to(cw_ref[...], (B, H2))

    def gru_update(xw_t, gh, bhn, h_prev):
        # xw_t already holds x@W_ih + b_ih + b_hh[r,z]; gh = h@W_hh (no bias).
        r = jax.nn.sigmoid(xw_t[:, 0:H] + gh[:, 0:H])
        z = jax.nn.sigmoid(xw_t[:, H:H2] + gh[:, H:H2])
        n = jnp.tanh(xw_t[:, H2:H3] + r * (gh[:, H2:H3] + bhn))
        return n + z * (h_prev - n)                     # == (1 - z) * n + z * h_prev

    # ---- interleaved bidirectional recurrence, fully unrolled (T static) -------
    # All state stays in vregs; no VMEM scratch round-trip, no relayout.
    h_f = h0_ref[0]
    h_b = h0_ref[1]
    hf = [None] * T                                     # forward states, time order
    hb = [None] * T                                     # backward states, time order
    pf = [None] * T                                     # h_f(t) @ sent_weight[:H]
    pb = [None] * T                                     # h_b(t) @ sent_weight[H:]
    for t in range(T):
        tb = T - 1 - t
        hf16 = h_f.astype(jnp.bfloat16)
        hb16 = h_b.astype(jnp.bfloat16)
        # One fused (B, H)@(H, 3H) bf16 matmul per direction; the two chains are
        # independent so their MXU/EUP latency overlaps.  (On v6e/v7x these could be
        # fused into one block-diagonal (B,2H)@(2H,6H) dot; kept separate so the same
        # kernel stays sane on v5e's 128-wide MXU.)
        gh_f = jnp.dot(hf16, u_f, preferred_element_type=jnp.float32)
        gh_b = jnp.dot(hb16, u_b, preferred_element_type=jnp.float32)
        h_f = gru_update(xw_f[t * B:(t + 1) * B, :], gh_f, bhn_f, h_f)
        h_b = gru_update(xw_b[tb * B:(tb + 1) * B, :], gh_b, bhn_b, h_b)
        hf[t] = h_f
        hb[tb] = h_b
        # Attention pre-projection interleaved with the recurrence: consumes h but
        # does not feed the serial chain, so it fills otherwise-idle MXU slots.
        pf[t] = jnp.dot(h_f.astype(jnp.bfloat16), sw_t, preferred_element_type=jnp.float32)
        pb[tb] = jnp.dot(h_b.astype(jnp.bfloat16), sw_b, preferred_element_type=jnp.float32)

    hout_ref[0] = h_f
    hout_ref[1] = h_b

    # ---- attention (all on vregs) -----------------------------------------------
    # matrix_mul(f_output, sent_weight, sent_bias) = tanh([hf|hb] @ sw + sb)
    # matrix_mul(., context_weight) = tanh(. @ cw): VPU multiply + lane reduce
    # instead of a 1-useful-lane MXU matmul.
    s = [None] * T
    for t in range(T):
        u1_t = jnp.tanh(pf[t] + pb[t] + sb_row)                             # (B, 2H)
        s[t] = jnp.tanh(jnp.sum(u1_t * cw_row, axis=-1, keepdims=True))     # (B, 1)

    # F.softmax over the sequence axis (torch implicit dim=1 on the (B, T) view),
    # unrolled over the static T; pl.reciprocal on the EUP slot.
    m = s[0]
    for t in range(1, T):
        m = jnp.maximum(m, s[t])
    e = [jnp.exp(s[t] - m) for t in range(T)]
    denom = e[0]
    for t in range(1, T):
        denom = denom + e[t]
    inv = pl.reciprocal(denom, approx=True)                                 # (B, 1)

    # element_wise_mul: sum_t alpha[t, b] * f_output[t, b, :], per direction.
    out_f = (e[0] * inv) * hf[0]
    out_b = (e[0] * inv) * hb[0]
    for t in range(1, T):
        a_t = e[t] * inv
        out_f = out_f + a_t * hf[t]
        out_b = out_b + a_t * hb[t]
    out_ref[:, 0:H] = out_f
    out_ref[:, H:H2] = out_b


# ---------------------------------------------------------------------------
# One-time parameter preprocessing (would live at model-init time)
# ---------------------------------------------------------------------------
def prepare_params(params):
    """* matmul weights (W_ih, W_hh, sent_weight) stored bf16 (no in-kernel casts),
       * b_ih (all gates) + b_hh (r, z gates) folded into one hoisted bias per dir,
       * only the n-gate hidden bias kept for the per-step path,
       * sent_weight split into its forward/backward row halves."""
    (wf, uf, bif, bhf, wb, ub, bib, bhb, sw, sb, cw) = params
    H = uf.shape[0]

    def fuse(bi, bh):
        return jnp.concatenate([bi[:, :2 * H] + bh[:, :2 * H], bi[:, 2 * H:]], axis=1)

    return (wf.astype(jnp.bfloat16), uf.astype(jnp.bfloat16), fuse(bif, bhf), bhf[:, 2 * H:],
            wb.astype(jnp.bfloat16), ub.astype(jnp.bfloat16), fuse(bib, bhb), bhb[:, 2 * H:],
            sw[:H].astype(jnp.bfloat16), sw[H:].astype(jnp.bfloat16), sb, cw)


# ---------------------------------------------------------------------------
# Wrapper
# ---------------------------------------------------------------------------
def sent_att_forward(x, h0, prepared):
    """x: (T, B, 2*word_hidden) f32;  h0: (2, B, sent_hidden) f32."""
    T, B, I = x.shape
    H = h0.shape[2]
    # Contiguous HBM reshape + bf16 cast in the wrapper: keeps the in-kernel buffer
    # 2-D / lane-dense (no (T,B,*)<->(T*B,*) relayouts inside) and halves x DMA bytes.
    x_flat = x.reshape(T * B, I).astype(jnp.bfloat16)

    vmem = pl.BlockSpec(memory_space=pltpu.MemorySpace.VMEM)
    out_shapes = (
        jax.ShapeDtypeStruct((B, 2 * H), jnp.float32),   # attended sentence vector
        jax.ShapeDtypeStruct((2, B, H), jnp.float32),    # final GRU hidden state
    )
    # NOTE: at production sizes this single un-gridded invocation becomes a B-tiled
    # grid with dimension_semantics=("parallel",) (2 TCs on v7x); tile sized against
    # v7x's 64 MiB/TC VMEM (~2x larger on v5e/v6e) with T*Btile >= MXU rows.
    return pl.pallas_call(
        sent_att_kernel,
        out_shape=out_shapes,
        in_specs=[vmem] * 14,
        out_specs=(vmem, vmem),
    )(x_flat, h0, *prepared)


# ---------------------------------------------------------------------------
# Deterministic parameter init (mirrors SentAttNet.__init__, fused gate layout)
# ---------------------------------------------------------------------------
def init_params(key, word_hidden, sent_hidden):
    I = 2 * word_hidden
    H = sent_hidden
    ks = jax.random.split(key, 11)
    std = 0.05
    k = 1.0 / math.sqrt(H)

    def unif(kk, shape):
        return jax.random.uniform(kk, shape, jnp.float32, minval=-k, maxval=k)

    wf = unif(ks[0], (I, 3 * H))       # W_ih fwd, gate order (r, z, n)
    uf = unif(ks[1], (H, 3 * H))       # W_hh fwd
    bif = unif(ks[2], (1, 3 * H))
    bhf = unif(ks[3], (1, 3 * H))
    wb = unif(ks[4], (I, 3 * H))       # W_ih bwd
    ub = unif(ks[5], (H, 3 * H))       # W_hh bwd
    bib = unif(ks[6], (1, 3 * H))
    bhb = unif(ks[7], (1, 3 * H))

    sw = std * jax.random.normal(ks[8], (2 * H, 2 * H), jnp.float32)
    sb = std * jax.random.normal(ks[9], (1, 2 * H), jnp.float32)
    cw = std * jax.random.normal(ks[10], (1, 2 * H), jnp.float32)   # (2H, 1) stored as a row

    return (wf, uf, bif, bhf, wb, ub, bib, bhb, sw, sb, cw)


# ---------------------------------------------------------------------------
# Pure-JAX f32 reference (PyTorch GRU + SentAttNet semantics) for verification
# ---------------------------------------------------------------------------
def reference_forward(x, h0, params):
    (wf, uf, bif, bhf, wb, ub, bib, bhb, sw, sb, cw) = params
    T = x.shape[0]
    H = h0.shape[2]

    def step(x_t, h, w, u, bi, bh):
        gx = x_t @ w + bi
        gh = h @ u + bh
        r = jax.nn.sigmoid(gx[:, 0:H] + gh[:, 0:H])
        z = jax.nn.sigmoid(gx[:, H:2 * H] + gh[:, H:2 * H])
        n = jnp.tanh(gx[:, 2 * H:] + r * gh[:, 2 * H:])
        return (1.0 - z) * n + z * h

    h = h0[0]
    fwd = []
    for t in range(T):
        h = step(x[t], h, wf, uf, bif, bhf)
        fwd.append(h)
    h_f = h

    h = h0[1]
    bwd = [None] * T
    for t in range(T - 1, -1, -1):
        h = step(x[t], h, wb, ub, bib, bhb)
        bwd[t] = h
    h_b = h

    f_out = jnp.concatenate([jnp.stack(fwd, 0), jnp.stack(bwd, 0)], axis=-1)  # (T, B, 2H)
    u1 = jnp.tanh(f_out @ sw + sb)
    scores = jnp.tanh(jnp.sum(u1 * cw, axis=-1))           # (T, B)
    alpha = jax.nn.softmax(scores, axis=0)                  # softmax over seq per batch
    out = jnp.sum(f_out * alpha[:, :, None], axis=0)        # (B, 2H)
    h_out = jnp.stack([h_f, h_b], axis=0)
    return out, h_out


# ---------------------------------------------------------------------------
if __name__ == "__main__":
    T, B = 8, 2
    word_hidden = 32
    sent_hidden = 32

    key = jax.random.PRNGKey(0)
    k_x, k_h, k_p = jax.random.split(key, 3)

    x = jax.random.normal(k_x, (T, B, 2 * word_hidden), jnp.float32)
    h0 = jax.random.normal(k_h, (2, B, sent_hidden), jnp.float32)
    params = init_params(k_p, word_hidden, sent_hidden)
    prepared = prepare_params(params)

    out, h_out = jax.block_until_ready(sent_att_forward(x, h0, prepared))

    ref_out, ref_h = reference_forward(x, h0, params)
    np.testing.assert_allclose(np.asarray(out), np.asarray(ref_out), rtol=2e-2, atol=2e-2)
    np.testing.assert_allclose(np.asarray(h_out), np.asarray(ref_h), rtol=2e-2, atol=2e-2)

    assert out.shape == (B, 2 * sent_hidden)
    assert h_out.shape == (2, B, sent_hidden)
    print("KERNEL_OK")
</pallas_src>

<mosaic_0001>
module attributes {stable_mosaic.version = 11 : i64} {
  func.func @sent_att_kernel(%arg0: memref<16x64xbf16, #tpu.memory_space<vmem>>, %arg1: memref<2x2x32xf32, #tpu.memory_space<vmem>>, %arg2: memref<64x96xbf16, #tpu.memory_space<vmem>>, %arg3: memref<32x96xbf16, #tpu.memory_space<vmem>>, %arg4: memref<1x96xf32, #tpu.memory_space<vmem>>, %arg5: memref<1x32xf32, #tpu.memory_space<vmem>>, %arg6: memref<64x96xbf16, #tpu.memory_space<vmem>>, %arg7: memref<32x96xbf16, #tpu.memory_space<vmem>>, %arg8: memref<1x96xf32, #tpu.memory_space<vmem>>, %arg9: memref<1x32xf32, #tpu.memory_space<vmem>>, %arg10: memref<32x64xbf16, #tpu.memory_space<vmem>>, %arg11: memref<32x64xbf16, #tpu.memory_space<vmem>>, %arg12: memref<1x64xf32, #tpu.memory_space<vmem>>, %arg13: memref<1x64xf32, #tpu.memory_space<vmem>>, %arg14: memref<2x64xf32, #tpu.memory_space<vmem>>, %arg15: memref<2x2x32xf32, #tpu.memory_space<vmem>>) attributes {dimension_semantics = [], scalar_prefetch = 0 : i64, scratch_operands = 0 : i64, tpu.core_type = #tpu.core_type<tc>} {
    %c0 = arith.constant 0 : index
    %c0_0 = arith.constant 0 : index
    %0 = vector.load %arg0[%c0, %c0_0] : memref<16x64xbf16, #tpu.memory_space<vmem>>, vector<16x64xbf16>
    %c0_1 = arith.constant 0 : index
    %c0_2 = arith.constant 0 : index
    %1 = vector.load %arg2[%c0_1, %c0_2] : memref<64x96xbf16, #tpu.memory_space<vmem>>, vector<64x96xbf16>
    %cst = arith.constant dense<0.000000e+00> : vector<16x96xf32>
    %2 = tpu.matmul %0, %1, %cst {dimension_numbers = #tpu.dot_dimension_numbers<[1], [0], [0], [1], [0, 0, 1, 1], [], []>} : vector<16x64xbf16>, vector<64x96xbf16>, vector<16x96xf32> -> vector<16x96xf32>
    %c0_3 = arith.constant 0 : index
    %c0_4 = arith.constant 0 : index
    %3 = vector.load %arg4[%c0_3, %c0_4] : memref<1x96xf32, #tpu.memory_space<vmem>>, vector<1x96xf32>
    %4 = vector.broadcast %3 : vector<1x96xf32> to vector<16x96xf32>
    %5 = arith.addf %2, %4 : vector<16x96xf32>
    %c0_5 = arith.constant 0 : index
    %c0_6 = arith.constant 0 : index
    %6 = vector.load %arg6[%c0_5, %c0_6] : memref<64x96xbf16, #tpu.memory_space<vmem>>, vector<64x96xbf16>
    %cst_7 = arith.constant dense<0.000000e+00> : vector<16x96xf32>
    %7 = tpu.matmul %0, %6, %cst_7 {dimension_numbers = #tpu.dot_dimension_numbers<[1], [0], [0], [1], [0, 0, 1, 1], [], []>} : vector<16x64xbf16>, vector<64x96xbf16>, vector<16x96xf32> -> vector<16x96xf32>
    %c0_8 = arith.constant 0 : index
    %c0_9 = arith.constant 0 : index
    %8 = vector.load %arg8[%c0_8, %c0_9] : memref<1x96xf32, #tpu.memory_space<vmem>>, vector<1x96xf32>
    %9 = vector.broadcast %8 : vector<1x96xf32> to vector<16x96xf32>
    %10 = arith.addf %7, %9 : vector<16x96xf32>
    %c0_10 = arith.constant 0 : index
    %c0_11 = arith.constant 0 : index
    %11 = vector.load %arg3[%c0_10, %c0_11] : memref<32x96xbf16, #tpu.memory_space<vmem>>, vector<32x96xbf16>
    %c0_12 = arith.constant 0 : index
    %c0_13 = arith.constant 0 : index
    %12 = vector.load %arg7[%c0_12, %c0_13] : memref<32x96xbf16, #tpu.memory_space<vmem>>, vector<32x96xbf16>
    %c0_14 = arith.constant 0 : index
    %c0_15 = arith.constant 0 : index
    %13 = vector.load %arg10[%c0_14, %c0_15] : memref<32x64xbf16, #tpu.memory_space<vmem>>, vector<32x64xbf16>
    %c0_16 = arith.constant 0 : index
    %c0_17 = arith.constant 0 : index
    %14 = vector.load %arg11[%c0_16, %c0_17] : memref<32x64xbf16, #tpu.memory_space<vmem>>, vector<32x64xbf16>
    %c0_18 = arith.constant 0 : index
    %c0_19 = arith.constant 0 : index
    %15 = vector.load %arg5[%c0_18, %c0_19] : memref<1x32xf32, #tpu.memory_space<vmem>>, vector<1x32xf32>
    %16 = vector.shape_cast %15 : vector<1x32xf32> to vector<1x32xf32>
    %17 = vector.broadcast %16 : vector<1x32xf32> to vector<2x32xf32>
    %c0_20 = arith.constant 0 : index
    %c0_21 = arith.constant 0 : index
    %18 = vector.load %arg9[%c0_20, %c0_21] : memref<1x32xf32, #tpu.memory_space<vmem>>, vector<1x32xf32>
    %19 = vector.shape_cast %18 : vector<1x32xf32> to vector<1x32xf32>
    %20 = vector.broadcast %19 : vector<1x32xf32> to vector<2x32xf32>
    %c0_22 = arith.constant 0 : index
    %c0_23 = arith.constant 0 : index
    %21 = vector.load %arg12[%c0_22, %c0_23] : memref<1x64xf32, #tpu.memory_space<vmem>>, vector<1x64xf32>
    %22 = vector.shape_cast %21 : vector<1x64xf32> to vector<1x64xf32>
    %23 = vector.broadcast %22 : vector<1x64xf32> to vector<2x64xf32>
    %c0_24 = arith.constant 0 : index
    %c0_25 = arith.constant 0 : index
    %24 = vector.load %arg13[%c0_24, %c0_25] : memref<1x64xf32, #tpu.memory_space<vmem>>, vector<1x64xf32>
    %25 = vector.shape_cast %24 : vector<1x64xf32> to vector<1x64xf32>
    %26 = vector.broadcast %25 : vector<1x64xf32> to vector<2x64xf32>
    %c0_26 = arith.constant 0 : index
    %c0_27 = arith.constant 0 : index
    %c0_28 = arith.constant 0 : index
    %27 = vector.load %arg1[%c0_26, %c0_27, %c0_28] : memref<2x2x32xf32, #tpu.memory_space<vmem>>, vector<1x2x32xf32>
    %28 = vector.shape_cast %27 : vector<1x2x32xf32> to vector<2x32xf32>
    %c1 = arith.constant 1 : index
    %c0_29 = arith.constant 0 : index
    %c0_30 = arith.constant 0 : index
    %29 = vector.load %arg1[%c1, %c0_29, %c0_30] : memref<2x2x32xf32, #tpu.memory_space<vmem>>, vector<1x2x32xf32>
    %30 = vector.shape_cast %29 : vector<1x2x32xf32> to vector<2x32xf32>
    %31 = arith.truncf %28 : vector<2x32xf32> to vector<2x32xbf16>
    %32 = arith.truncf %30 : vector<2x32xf32> to vector<2x32xbf16>
    %cst_31 = arith.constant dense<0.000000e+00> : vector<2x96xf32>
    %33 = tpu.matmul %31, %11, %cst_31 {dimension_numbers = #tpu.dot_dimension_numbers<[1], [0], [0], [1], [0, 0, 1, 1], [], []>} : vector<2x32xbf16>, vector<32x96xbf16>, vector<2x96xf32> -> vector<2x96xf32>
    %cst_32 = arith.constant dense<0.000000e+00> : vector<2x96xf32>
    %34 = tpu.matmul %32, %12, %cst_32 {dimension_numbers = #tpu.dot_dimension_numbers<[1], [0], [0], [1], [0, 0, 1, 1], [], []>} : vector<2x32xbf16>, vector<32x96xbf16>, vector<2x96xf32> -> vector<2x96xf32>
    %35 = vector.extract_strided_slice %5 {offsets = [0, 0], sizes = [2, 96], strides = [1, 1]} : vector<16x96xf32> to vector<2x96xf32>
    %36 = vector.extract_strided_slice %35 {offsets = [0, 0], sizes = [2, 32], strides = [1, 1]} : vector<2x96xf32> to vector<2x32xf32>
    %37 = vector.extract_strided_slice %33 {offsets = [0, 0], sizes = [2, 32], strides = [1, 1]} : vector<2x96xf32> to vector<2x32xf32>
    %38 = arith.addf %36, %37 : vector<2x32xf32>
    %39 = arith.negf %38 : vector<2x32xf32>
    %40 = math.exp %39 : vector<2x32xf32>
    %cst_33 = arith.constant 1.000000e+00 : f32
    %41 = vector.broadcast %cst_33 : f32 to vector<2x32xf32>
    %42 = arith.addf %41, %40 : vector<2x32xf32>
    %43 = arith.divf %41, %42 : vector<2x32xf32>
    %44 = vector.extract_strided_slice %35 {offsets = [0, 32], sizes = [2, 32], strides = [1, 1]} : vector<2x96xf32> to vector<2x32xf32>
    %45 = vector.extract_strided_slice %33 {offsets = [0, 32], sizes = [2, 32], strides = [1, 1]} : vector<2x96xf32> to vector<2x32xf32>
    %46 = arith.addf %44, %45 : vector<2x32xf32>
    %47 = arith.negf %46 : vector<2x32xf32>
    %48 = math.exp %47 : vector<2x32xf32>
    %cst_34 = arith.constant 1.000000e+00 : f32
    %49 = vector.broadcast %cst_34 : f32 to vector<2x32xf32>
    %50 = arith.addf %49, %48 : vector<2x32xf32>
    %51 = arith.divf %49, %50 : vector<2x32xf32>
    %52 = vector.extract_strided_slice %35 {offsets = [0, 64], sizes = [2, 32], strides = [1, 1]} : vector<2x96xf32> to vector<2x32xf32>
    %53 = vector.extract_strided_slice %33 {offsets = [0, 64], sizes = [2, 32], strides = [1, 1]} : vector<2x96xf32> to vector<2x32xf32>
    %54 = arith.addf %53, %17 : vector<2x32xf32>
    %55 = arith.mulf %43, %54 : vector<2x32xf32>
    %56 = arith.addf %52, %55 : vector<2x32xf32>
    %57 = math.tanh %56 : vector<2x32xf32>
    %58 = arith.subf %28, %57 : vector<2x32xf32>
    %59 = arith.mulf %51, %58 : vector<2x32xf32>
    %60 = arith.addf %57, %59 : vector<2x32xf32>
    %61 = vector.extract_strided_slice %10 {offsets = [14, 0], sizes = [2, 96], strides = [1, 1]} : vector<16x96xf32> to vector<2x96xf32>
    %62 = vector.extract_strided_slice %61 {offsets = [0, 0], sizes = [2, 32], strides = [1, 1]} : vector<2x96xf32> to vector<2x32xf32>
    %63 = vector.extract_strided_slice %34 {offsets = [0, 0], sizes = [2, 32], strides = [1, 1]} : vector<2x96xf32> to vector<2x32xf32>
    %64 = arith.addf %62, %63 : vector<2x32xf32>
    %65 = arith.negf %64 : vector<2x32xf32>
    %66 = math.exp %65 : vector<2x32xf32>
    %cst_35 = arith.constant 1.000000e+00 : f32
    %67 = vector.broadcast %cst_35 : f32 to vector<2x32xf32>
    %68 = arith.addf %67, %66 : vector<2x32xf32>
    %69 = arith.divf %67, %68 : vector<2x32xf32>
    %70 = vector.extract_strided_slice %61 {offsets = [0, 32], sizes = [2, 32], strides = [1, 1]} : vector<2x96xf32> to vector<2x32xf32>
    %71 = vector.extract_strided_slice %34 {offsets = [0, 32], sizes = [2, 32], strides = [1, 1]} : vector<2x96xf32> to vector<2x32xf32>
    %72 = arith.addf %70, %71 : vector<2x32xf32>
    %73 = arith.negf %72 : vector<2x32xf32>
    %74 = math.exp %73 : vector<2x32xf32>
    %cst_36 = arith.constant 1.000000e+00 : f32
    %75 = vector.broadcast %cst_36 : f32 to vector<2x32xf32>
    %76 = arith.addf %75, %74 : vector<2x32xf32>
    %77 = arith.divf %75, %76 : vector<2x32xf32>
    %78 = vector.extract_strided_slice %61 {offsets = [0, 64], sizes = [2, 32], strides = [1, 1]} : vector<2x96xf32> to vector<2x32xf32>
    %79 = vector.extract_strided_slice %34 {offsets = [0, 64], sizes = [2, 32], strides = [1, 1]} : vector<2x96xf32> to vector<2x32xf32>
    %80 = arith.addf %79, %20 : vector<2x32xf32>
    %81 = arith.mulf %69, %80 : vector<2x32xf32>
    %82 = arith.addf %78, %81 : vector<2x32xf32>
    %83 = math.tanh %82 : vector<2x32xf32>
    %84 = arith.subf %30, %83 : vector<2x32xf32>
    %85 = arith.mulf %77, %84 : vector<2x32xf32>
    %86 = arith.addf %83, %85 : vector<2x32xf32>
    %87 = arith.truncf %60 : vector<2x32xf32> to vector<2x32xbf16>
    %cst_37 = arith.constant dense<0.000000e+00> : vector<2x64xf32>
    %88 = tpu.matmul %87, %13, %cst_37 {dimension_numbers = #tpu.dot_dimension_numbers<[1], [0], [0], [1], [0, 0, 1, 1], [], []>} : vector<2x32xbf16>, vector<32x64xbf16>, vector<2x64xf32> -> vector<2x64xf32>
    %89 = arith.truncf %86 : vector<2x32xf32> to vector<2x32xbf16>
    %cst_38 = arith.constant dense<0.000000e+00> : vector<2x64xf32>
    %90 = tpu.matmul %89, %14, %cst_38 {dimension_numbers = #tpu.dot_dimension_numbers<[1], [0], [0], [1], [0, 0, 1, 1], [], []>} : vector<2x32xbf16>, vector<32x64xbf16>, vector<2x64xf32> -> vector<2x64xf32>
    %91 = arith.truncf %60 : vector<2x32xf32> to vector<2x32xbf16>
    %92 = arith.truncf %86 : vector<2x32xf32> to vector<2x32xbf16>
    %cst_39 = arith.constant dense<0.000000e+00> : vector<2x96xf32>
    %93 = tpu.matmul %91, %11, %cst_39 {dimension_numbers = #tpu.dot_dimension_numbers<[1], [0], [0], [1], [0, 0, 1, 1], [], []>} : vector<2x32xbf16>, vector<32x96xbf16>, vector<2x96xf32> -> vector<2x96xf32>
    %cst_40 = arith.constant dense<0.000000e+00> : vector<2x96xf32>
    %94 = tpu.matmul %92, %12, %cst_40 {dimension_numbers = #tpu.dot_dimension_numbers<[1], [0], [0], [1], [0, 0, 1, 1], [], []>} : vector<2x32xbf16>, vector<32x96xbf16>, vector<2x96xf32> -> vector<2x96xf32>
    %95 = vector.extract_strided_slice %5 {offsets = [2, 0], sizes = [2, 96], strides = [1, 1]} : vector<16x96xf32> to vector<2x96xf32>
    %96 = vector.extract_strided_slice %95 {offsets = [0, 0], sizes = [2, 32], strides = [1, 1]} : vector<2x96xf32> to vector<2x32xf32>
    %97 = vector.extract_strided_slice %93 {offsets = [0, 0], sizes = [2, 32], strides = [1, 1]} : vector<2x96xf32> to vector<2x32xf32>
    %98 = arith.addf %96, %97 : vector<2x32xf32>
    %99 = arith.negf %98 : vector<2x32xf32>
    %100 = math.exp %99 : vector<2x32xf32>
    %cst_41 = arith.constant 1.000000e+00 : f32
    %101 = vector.broadcast %cst_41 : f32 to vector<2x32xf32>
    %102 = arith.addf %101, %100 : vector<2x32xf32>
    %103 = arith.divf %101, %102 : vector<2x32xf32>
    %104 = vector.extract_strided_slice %95 {offsets = [0, 32], sizes = [2, 32], strides = [1, 1]} : vector<2x96xf32> to vector<2x32xf32>
    %105 = vector.extract_strided_slice %93 {offsets = [0, 32], sizes = [2, 32], strides = [1, 1]} : vector<2x96xf32> to vector<2x32xf32>
    %106 = arith.addf %104, %105 : vector<2x32xf32>
    %107 = arith.negf %106 : vector<2x32xf32>
    %108 = math.exp %107 : vector<2x32xf32>
    %cst_42 = arith.constant 1.000000e+00 : f32
    %109 = vector.broadcast %cst_42 : f32 to vector<2x32xf32>
    %110 = arith.addf %109, %108 : vector<2x32xf32>
    %111 = arith.divf %109, %110 : vector<2x32xf32>
    %112 = vector.extract_strided_slice %95 {offsets = [0, 64], sizes = [2, 32], strides = [1, 1]} : vector<2x96xf32> to vector<2x32xf32>
    %113 = vector.extract_strided_slice %93 {offsets = [0, 64], sizes = [2, 32], strides = [1, 1]} : vector<2x96xf32> to vector<2x32xf32>
    %114 = arith.addf %113, %17 : vector<2x32xf32>
    %115 = arith.mulf %103, %114 : vector<2x32xf32>
    %116 = arith.addf %112, %115 : vector<2x32xf32>
    %117 = math.tanh %116 : vector<2x32xf32>
    %118 = arith.subf %60, %117 : vector<2x32xf32>
    %119 = arith.mulf %111, %118 : vector<2x32xf32>
    %120 = arith.addf %117, %119 : vector<2x32xf32>
    %121 = vector.extract_strided_slice %10 {offsets = [12, 0], sizes = [2, 96], strides = [1, 1]} : vector<16x96xf32> to vector<2x96xf32>
    %122 = vector.extract_strided_slice %121 {offsets = [0, 0], sizes = [2, 32], strides = [1, 1]} : vector<2x96xf32> to vector<2x32xf32>
    %123 = vector.extract_strided_slice %94 {offsets = [0, 0], sizes = [2, 32], strides = [1, 1]} : vector<2x96xf32> to vector<2x32xf32>
    %124 = arith.addf %122, %123 : vector<2x32xf32>
    %125 = arith.negf %124 : vector<2x32xf32>
    %126 = math.exp %125 : vector<2x32xf32>
    %cst_43 = arith.constant 1.000000e+00 : f32
    %127 = vector.broadcast %cst_43 : f32 to vector<2x32xf32>
    %128 = arith.addf %127, %126 : vector<2x32xf32>
    %129 = arith.divf %127, %128 : vector<2x32xf32>
    %130 = vector.extract_strided_slice %121 {offsets = [0, 32], sizes = [2, 32], strides = [1, 1]} : vector<2x96xf32> to vector<2x32xf32>
    %131 = vector.extract_strided_slice %94 {offsets = [0, 32], sizes = [2, 32], strides = [1, 1]} : vector<2x96xf32> to vector<2x32xf32>
    %132 = arith.addf %130, %131 : vector<2x32xf32>
    %133 = arith.negf %132 : vector<2x32xf32>
    %134 = math.exp %133 : vector<2x32xf32>
    %cst_44 = arith.constant 1.000000e+00 : f32
    %135 = vector.broadcast %cst_44 : f32 to vector<2x32xf32>
    %136 = arith.addf %135, %134 : vector<2x32xf32>
    %137 = arith.divf %135, %136 : vector<2x32xf32>
    %138 = vector.extract_strided_slice %121 {offsets = [0, 64], sizes = [2, 32], strides = [1, 1]} : vector<2x96xf32> to vector<2x32xf32>
    %139 = vector.extract_strided_slice %94 {offsets = [0, 64], sizes = [2, 32], strides = [1, 1]} : vector<2x96xf32> to vector<2x32xf32>
    %140 = arith.addf %139, %20 : vector<2x32xf32>
    %141 = arith.mulf %129, %140 : vector<2x32xf32>
    %142 = arith.addf %138, %141 : vector<2x32xf32>
    %143 = math.tanh %142 : vector<2x32xf32>
    %144 = arith.subf %86, %143 : vector<2x32xf32>
    %145 = arith.mulf %137, %144 : vector<2x32xf32>
    %146 = arith.addf %143, %145 : vector<2x32xf32>
    %147 = arith.truncf %120 : vector<2x32xf32> to vector<2x32xbf16>
    %cst_45 = arith.constant dense<0.000000e+00> : vector<2x64xf32>
    %148 = tpu.matmul %147, %13, %cst_45 {dimension_numbers = #tpu.dot_dimension_numbers<[1], [0], [0], [1], [0, 0, 1, 1], [], []>} : vector<2x32xbf16>, vector<32x64xbf16>, vector<2x64xf32> -> vector<2x64xf32>
    %149 = arith.truncf %146 : vector<2x32xf32> to vector<2x32xbf16>
    %cst_46 = arith.constant dense<0.000000e+00> : vector<2x64xf32>
    %150 = tpu.matmul %149, %14, %cst_46 {dimension_numbers = #tpu.dot_dimension_numbers<[1], [0], [0], [1], [0, 0, 1, 1], [], []>} : vector<2x32xbf16>, vector<32x64xbf16>, vector<2x64xf32> -> vector<2x64xf32>
    %151 = arith.truncf %120 : vector<2x32xf32> to vector<2x32xbf16>
    %152 = arith.truncf %146 : vector<2x32xf32> to vector<2x32xbf16>
    %cst_47 = arith.constant dense<0.000000e+00> : vector<2x96xf32>
    %153 = tpu.matmul %151, %11, %cst_47 {dimension_numbers = #tpu.dot_dimension_numbers<[1], [0], [0], [1], [0, 0, 1, 1], [], []>} : vector<2x32xbf16>, vector<32x96xbf16>, vector<2x96xf32> -> vector<2x96xf32>
    %cst_48 = arith.constant dense<0.000000e+00> : vector<2x96xf32>
    %154 = tpu.matmul %152, %12, %cst_48 {dimension_numbers = #tpu.dot_dimension_numbers<[1], [0], [0], [1], [0, 0, 1, 1], [], []>} : vector<2x32xbf16>, vector<32x96xbf16>, vector<2x96xf32> -> vector<2x96xf32>
    %155 = vector.extract_strided_slice %5 {offsets = [4, 0], sizes = [2, 96], strides = [1, 1]} : vector<16x96xf32> to vector<2x96xf32>
    %156 = vector.extract_strided_slice %155 {offsets = [0, 0], sizes = [2, 32], strides = [1, 1]} : vector<2x96xf32> to vector<2x32xf32>
    %157 = vector.extract_strided_slice %153 {offsets = [0, 0], sizes = [2, 32], strides = [1, 1]} : vector<2x96xf32> to vector<2x32xf32>
    %158 = arith.addf %156, %157 : vector<2x32xf32>
    %159 = arith.negf %158 : vector<2x32xf32>
    %160 = math.exp %159 : vector<2x32xf32>
    %cst_49 = arith.constant 1.000000e+00 : f32
    %161 = vector.broadcast %cst_49 : f32 to vector<2x32xf32>
    %162 = arith.addf %161, %160 : vector<2x32xf32>
    %163 = arith.divf %161, %162 : vector<2x32xf32>
    %164 = vector.extract_strided_slice %155 {offsets = [0, 32], sizes = [2, 32], strides = [1, 1]} : vector<2x96xf32> to vector<2x32xf32>
    %165 = vector.extract_strided_slice %153 {offsets = [0, 32], sizes = [2, 32], strides = [1, 1]} : vector<2x96xf32> to vector<2x32xf32>
    %166 = arith.addf %164, %165 : vector<2x32xf32>
    %167 = arith.negf %166 : vector<2x32xf32>
    %168 = math.exp %167 : vector<2x32xf32>
    %cst_50 = arith.constant 1.000000e+00 : f32
    %169 = vector.broadcast %cst_50 : f32 to vector<2x32xf32>
    %170 = arith.addf %169, %168 : vector<2x32xf32>
    %171 = arith.divf %169, %170 : vector<2x32xf32>
    %172 = vector.extract_strided_slice %155 {offsets = [0, 64], sizes = [2, 32], strides = [1, 1]} : vector<2x96xf32> to vector<2x32xf32>
    %173 = vector.extract_strided_slice %153 {offsets = [0, 64], sizes = [2, 32], strides = [1, 1]} : vector<2x96xf32> to vector<2x32xf32>
    %174 = arith.addf %173, %17 : vector<2x32xf32>
    %175 = arith.mulf %163, %174 : vector<2x32xf32>
    %176 = arith.addf %172, %175 : vector<2x32xf32>
    %177 = math.tanh %176 : vector<2x32xf32>
    %178 = arith.subf %120, %177 : vector<2x32xf32>
    %179 = arith.mulf %171, %178 : vector<2x32xf32>
    %180 = arith.addf %177, %179 : vector<2x32xf32>
    %181 = vector.extract_strided_slice %10 {offsets = [10, 0], sizes = [2, 96], strides = [1, 1]} : vector<16x96xf32> to vector<2x96xf32>
    %182 = vector.extract_strided_slice %181 {offsets = [0, 0], sizes = [2, 32], strides = [1, 1]} : vector<2x96xf32> to vector<2x32xf32>
    %183 = vector.extract_strided_slice %154 {offsets = [0, 0], sizes = [2, 32], strides = [1, 1]} : vector<2x96xf32> to vector<2x32xf32>
    %184 = arith.addf %182, %183 : vector<2x32xf32>
    %185 = arith.negf %184 : vector<2x32xf32>
    %186 = math.exp %185 : vector<2x32xf32>
    %cst_51 = arith.constant 1.000000e+00 : f32
    %187 = vector.broadcast %cst_51 : f32 to vector<2x32xf32>
    %188 = arith.addf %187, %186 : vector<2x32xf32>
    %189 = arith.divf %187, %188 : vector<2x32xf32>
    %190 = vector.extract_strided_slice %181 {offsets = [0, 32], sizes = [2, 32], strides = [1, 1]} : vector<2x96xf32> to vector<2x32xf32>
    %191 = vector.extract_strided_slice %154 {offsets = [0, 32], sizes = [2, 32], strides = [1, 1]} : vector<2x96xf32> to vector<2x32xf32>
    %192 = arith.addf %190, %191 : vector<2x32xf32>
    %193 = arith.negf %192 : vector<2x32xf32>
    %194 = math.exp %193 : vector<2x32xf32>
    %cst_52 = arith.constant 1.000000e+00 : f32
    %195 = vector.broadcast %cst_52 : f32 to vector<2x32xf32>
    %196 = arith.addf %195, %194 : vector<2x32xf32>
    %197 = arith.divf %195, %196 : vector<2x32xf32>
    %198 = vector.extract_strided_slice %181 {offsets = [0, 64], sizes = [2, 32], strides = [1, 1]} : vector<2x96xf32> to vector<2x32xf32>
    %199 = vector.extract_strided_slice %154 {offsets = [0, 64], sizes = [2, 32], strides = [1, 1]} : vector<2x96xf32> to vector<2x32xf32>
    %200 = arith.addf %199, %20 : vector<2x32xf32>
    %201 = arith.mulf %189, %200 : vector<2x32xf32>
    %202 = arith.addf %198, %201 : vector<2x32xf32>
    %203 = math.tanh %202 : vector<2x32xf32>
    %204 = arith.subf %146, %203 : vector<2x32xf32>
    %205 = arith.mulf %197, %204 : vector<2x32xf32>
    %206 = arith.addf %203, %205 : vector<2x32xf32>
    %207 = arith.truncf %180 : vector<2x32xf32> to vector<2x32xbf16>
    %cst_53 = arith.constant dense<0.000000e+00> : vector<2x64xf32>
    %208 = tpu.matmul %207, %13, %cst_53 {dimension_numbers = #tpu.dot_dimension_numbers<[1], [0], [0], [1], [0, 0, 1, 1], [], []>} : vector<2x32xbf16>, vector<32x64xbf16>, vector<2x64xf32> -> vector<2x64xf32>
    %209 = arith.truncf %206 : vector<2x32xf32> to vector<2x32xbf16>
    %cst_54 = arith.constant dense<0.000000e+00> : vector<2x64xf32>
    %210 = tpu.matmul %209, %14, %cst_54 {dimension_numbers = #tpu.dot_dimension_numbers<[1], [0], [0], [1], [0, 0, 1, 1], [], []>} : vector<2x32xbf16>, vector<32x64xbf16>, vector<2x64xf32> -> vector<2x64xf32>
    %211 = arith.truncf %180 : vector<2x32xf32> to vector<2x32xbf16>
    %212 = arith.truncf %206 : vector<2x32xf32> to vector<2x32xbf16>
    %cst_55 = arith.constant dense<0.000000e+00> : vector<2x96xf32>
    %213 = tpu.matmul %211, %11, %cst_55 {dimension_numbers = #tpu.dot_dimension_numbers<[1], [0], [0], [1], [0, 0, 1, 1], [], []>} : vector<2x32xbf16>, vector<32x96xbf16>, vector<2x96xf32> -> vector<2x96xf32>
    %cst_56 = arith.constant dense<0.000000e+00> : vector<2x96xf32>
    %214 = tpu.matmul %212, %12, %cst_56 {dimension_numbers = #tpu.dot_dimension_numbers<[1], [0], [0], [1], [0, 0, 1, 1], [], []>} : vector<2x32xbf16>, vector<32x96xbf16>, vector<2x96xf32> -> vector<2x96xf32>
    %215 = vector.extract_strided_slice %5 {offsets = [6, 0], sizes = [2, 96], strides = [1, 1]} : vector<16x96xf32> to vector<2x96xf32>
    %216 = vector.extract_strided_slice %215 {offsets = [0, 0], sizes = [2, 32], strides = [1, 1]} : vector<2x96xf32> to vector<2x32xf32>
    %217 = vector.extract_strided_slice %213 {offsets = [0, 0], sizes = [2, 32], strides = [1, 1]} : vector<2x96xf32> to vector<2x32xf32>
    %218 = arith.addf %216, %217 : vector<2x32xf32>
    %219 = arith.negf %218 : vector<2x32xf32>
    %220 = math.exp %219 : vector<2x32xf32>
    %cst_57 = arith.constant 1.000000e+00 : f32
    %221 = vector.broadcast %cst_57 : f32 to vector<2x32xf32>
    %222 = arith.addf %221, %220 : vector<2x32xf32>
    %223 = arith.divf %221, %222 : vector<2x32xf32>
    %224 = vector.extract_strided_slice %215 {offsets = [0, 32], sizes = [2, 32], strides = [1, 1]} : vector<2x96xf32> to vector<2x32xf32>
    %225 = vector.extract_strided_slice %213 {offsets = [0, 32], sizes = [2, 32], strides = [1, 1]} : vector<2x96xf32> to vector<2x32xf32>
    %226 = arith.addf %224, %225 : vector<2x32xf32>
    %227 = arith.negf %226 : vector<2x32xf32>
    %228 = math.exp %227 : vector<2x32xf32>
    %cst_58 = arith.constant 1.000000e+00 : f32
    %229 = vector.broadcast %cst_58 : f32 to vector<2x32xf32>
    %230 = arith.addf %229, %228 : vector<2x32xf32>
    %231 = arith.divf %229, %230 : vector<2x32xf32>
    %232 = vector.extract_strided_slice %215 {offsets = [0, 64], sizes = [2, 32], strides = [1, 1]} : vector<2x96xf32> to vector<2x32xf32>
    %233 = vector.extract_strided_slice %213 {offsets = [0, 64], sizes = [2, 32], strides = [1, 1]} : vector<2x96xf32> to vector<2x32xf32>
    %234 = arith.addf %233, %17 : vector<2x32xf32>
    %235 = arith.mulf %223, %234 : vector<2x32xf32>
    %236 = arith.addf %232, %235 : vector<2x32xf32>
    %237 = math.tanh %236 : vector<2x32xf32>
    %238 = arith.subf %180, %237 : vector<2x32xf32>
    %239 = arith.mulf %231, %238 : vector<2x32xf32>
    %240 = arith.addf %237, %239 : vector<2x32xf32>
    %241 = vector.extract_strided_slice %10 {offsets = [8, 0], sizes = [2, 96], strides = [1, 1]} : vector<16x96xf32> to vector<2x96xf32>
    %242 = vector.extract_strided_slice %241 {offsets = [0, 0], sizes = [2, 32], strides = [1, 1]} : vector<2x96xf32> to vector<2x32xf32>
    %243 = vector.extract_strided_slice %214 {offsets = [0, 0], sizes = [2, 32], strides = [1, 1]} : vector<2x96xf32> to vector<2x32xf32>
    %244 = arith.addf %242, %243 : vector<2x32xf32>
    %245 = arith.negf %244 : vector<2x32xf32>
    %246 = math.exp %245 : vector<2x32xf32>
    %cst_59 = arith.constant 1.000000e+00 : f32
    %247 = vector.broadcast %cst_59 : f32 to vector<2x32xf32>
    %248 = arith.addf %247, %246 : vector<2x32xf32>
    %249 = arith.divf %247, %248 : vector<2x32xf32>
    %250 = vector.extract_strided_slice %241 {offsets = [0, 32], sizes = [2, 32], strides = [1, 1]} : vector<2x96xf32> to vector<2x32xf32>
    %251 = vector.extract_strided_slice %214 {offsets = [0, 32], sizes = [2, 32], strides = [1, 1]} : vector<2x96xf32> to vector<2x32xf32>
    %252 = arith.addf %250, %251 : vector<2x32xf32>
    %253 = arith.negf %252 : vector<2x32xf32>
    %254 = math.exp %253 : vector<2x32xf32>
    %cst_60 = arith.constant 1.000000e+00 : f32
    %255 = vector.broadcast %cst_60 : f32 to vector<2x32xf32>
    %256 = arith.addf %255, %254 : vector<2x32xf32>
    %257 = arith.divf %255, %256 : vector<2x32xf32>
    %258 = vector.extract_strided_slice %241 {offsets = [0, 64], sizes = [2, 32], strides = [1, 1]} : vector<2x96xf32> to vector<2x32xf32>
    %259 = vector.extract_strided_slice %214 {offsets = [0, 64], sizes = [2, 32], strides = [1, 1]} : vector<2x96xf32> to vector<2x32xf32>
    %260 = arith.addf %259, %20 : vector<2x32xf32>
    %261 = arith.mulf %249, %260 : vector<2x32xf32>
    %262 = arith.addf %258, %261 : vector<2x32xf32>
    %263 = math.tanh %262 : vector<2x32xf32>
    %264 = arith.subf %206, %263 : vector<2x32xf32>
    %265 = arith.mulf %257, %264 : vector<2x32xf32>
    %266 = arith.addf %263, %265 : vector<2x32xf32>
    %267 = arith.truncf %240 : vector<2x32xf32> to vector<2x32xbf16>
    %cst_61 = arith.constant dense<0.000000e+00> : vector<2x64xf32>
    %268 = tpu.matmul %267, %13, %cst_61 {dimension_numbers = #tpu.dot_dimension_numbers<[1], [0], [0], [1], [0, 0, 1, 1], [], []>} : vector<2x32xbf16>, vector<32x64xbf16>, vector<2x64xf32> -> vector<2x64xf32>
    %269 = arith.truncf %266 : vector<2x32xf32> to vector<2x32xbf16>
    %cst_62 = arith.constant dense<0.000000e+00> : vector<2x64xf32>
    %270 = tpu.matmul %269, %14, %cst_62 {dimension_numbers = #tpu.dot_dimension_numbers<[1], [0], [0], [1], [0, 0, 1, 1], [], []>} : vector<2x32xbf16>, vector<32x64xbf16>, vector<2x64xf32> -> vector<2x64xf32>
    %271 = arith.truncf %240 : vector<2x32xf32> to vector<2x32xbf16>
    %272 = arith.truncf %266 : vector<2x32xf32> to vector<2x32xbf16>
    %cst_63 = arith.constant dense<0.000000e+00> : vector<2x96xf32>
    %273 = tpu.matmul %271, %11, %cst_63 {dimension_numbers = #tpu.dot_dimension_numbers<[1], [0], [0], [1], [0, 0, 1, 1], [], []>} : vector<2x32xbf16>, vector<32x96xbf16>, vector<2x96xf32> -> vector<2x96xf32>
    %cst_64 = arith.constant dense<0.000000e+00> : vector<2x96xf32>
    %274 = tpu.matmul %272, %12, %cst_64 {dimension_numbers = #tpu.dot_dimension_numbers<[1], [0], [0], [1], [0, 0, 1, 1], [], []>} : vector<2x32xbf16>, vector<32x96xbf16>, vector<2x96xf32> -> vector<2x96xf32>
    %275 = vector.extract_strided_slice %5 {offsets = [8, 0], sizes = [2, 96], strides = [1, 1]} : vector<16x96xf32> to vector<2x96xf32>
    %276 = vector.extract_strided_slice %275 {offsets = [0, 0], sizes = [2, 32], strides = [1, 1]} : vector<2x96xf32> to vector<2x32xf32>
    %277 = vector.extract_strided_slice %273 {offsets = [0, 0], sizes = [2, 32], strides = [1, 1]} : vector<2x96xf32> to vector<2x32xf32>
    %278 = arith.addf %276, %277 : vector<2x32xf32>
    %279 = arith.negf %278 : vector<2x32xf32>
    %280 = math.exp %279 : vector<2x32xf32>
    %cst_65 = arith.constant 1.000000e+00 : f32
    %281 = vector.broadcast %cst_65 : f32 to vector<2x32xf32>
    %282 = arith.addf %281, %280 : vector<2x32xf32>
    %283 = arith.divf %281, %282 : vector<2x32xf32>
    %284 = vector.extract_strided_slice %275 {offsets = [0, 32], sizes = [2, 32], strides = [1, 1]} : vector<2x96xf32> to vector<2x32xf32>
    %285 = vector.extract_strided_slice %273 {offsets = [0, 32], sizes = [2, 32], strides = [1, 1]} : vector<2x96xf32> to vector<2x32xf32>
    %286 = arith.addf %284, %285 : vector<2x32xf32>
    %287 = arith.negf %286 : vector<2x32xf32>
    %288 = math.exp %287 : vector<2x32xf32>
    %cst_66 = arith.constant 1.000000e+00 : f32
    %289 = vector.broadcast %cst_66 : f32 to vector<2x32xf32>
    %290 = arith.addf %289, %288 : vector<2x32xf32>
    %291 = arith.divf %289, %290 : vector<2x32xf32>
    %292 = vector.extract_strided_slice %275 {offsets = [0, 64], sizes = [2, 32], strides = [1, 1]} : vector<2x96xf32> to vector<2x32xf32>
    %293 = vector.extract_strided_slice %273 {offsets = [0, 64], sizes = [2, 32], strides = [1, 1]} : vector<2x96xf32> to vector<2x32xf32>
    %294 = arith.addf %293, %17 : vector<2x32xf32>
    %295 = arith.mulf %283, %294 : vector<2x32xf32>
    %296 = arith.addf %292, %295 : vector<2x32xf32>
    %297 = math.tanh %296 : vector<2x32xf32>
    %298 = arith.subf %240, %297 : vector<2x32xf32>
    %299 = arith.mulf %291, %298 : vector<2x32xf32>
    %300 = arith.addf %297, %299 : vector<2x32xf32>
    %301 = vector.extract_strided_slice %10 {offsets = [6, 0], sizes = [2, 96], strides = [1, 1]} : vector<16x96xf32> to vector<2x96xf32>
    %302 = vector.extract_strided_slice %301 {offsets = [0, 0], sizes = [2, 32], strides = [1, 1]} : vector<2x96xf32> to vector<2x32xf32>
    %303 = vector.extract_strided_slice %274 {offsets = [0, 0], sizes = [2, 32], strides = [1, 1]} : vector<2x96xf32> to vector<2x32xf32>
    %304 = arith.addf %302, %303 : vector<2x32xf32>
    %305 = arith.negf %304 : vector<2x32xf32>
    %306 = math.exp %305 : vector<2x32xf32>
    %cst_67 = arith.constant 1.000000e+00 : f32
    %307 = vector.broadcast %cst_67 : f32 to vector<2x32xf32>
    %308 = arith.addf %307, %306 : vector<2x32xf32>
    %309 = arith.divf %307, %308 : vector<2x32xf32>
    %310 = vector.extract_strided_slice %301 {offsets = [0, 32], sizes = [2, 32], strides = [1, 1]} : vector<2x96xf32> to vector<2x32xf32>
    %311 = vector.extract_strided_slice %274 {offsets = [0, 32], sizes = [2, 32], strides = [1, 1]} : vector<2x96xf32> to vector<2x32xf32>
    %312 = arith.addf %310, %311 : vector<2x32xf32>
    %313 = arith.negf %312 : vector<2x32xf32>
    %314 = math.exp %313 : vector<2x32xf32>
    %cst_68 = arith.constant 1.000000e+00 : f32
    %315 = vector.broadcast %cst_68 : f32 to vector<2x32xf32>
    %316 = arith.addf %315, %314 : vector<2x32xf32>
    %317 = arith.divf %315, %316 : vector<2x32xf32>
    %318 = vector.extract_strided_slice %301 {offsets = [0, 64], sizes = [2, 32], strides = [1, 1]} : vector<2x96xf32> to vector<2x32xf32>
    %319 = vector.extract_strided_slice %274 {offsets = [0, 64], sizes = [2, 32], strides = [1, 1]} : vector<2x96xf32> to vector<2x32xf32>
    %320 = arith.addf %319, %20 : vector<2x32xf32>
    %321 = arith.mulf %309, %320 : vector<2x32xf32>
    %322 = arith.addf %318, %321 : vector<2x32xf32>
    %323 = math.tanh %322 : vector<2x32xf32>
    %324 = arith.subf %266, %323 : vector<2x32xf32>
    %325 = arith.mulf %317, %324 : vector<2x32xf32>
    %326 = arith.addf %323, %325 : vector<2x32xf32>
    %327 = arith.truncf %300 : vector<2x32xf32> to vector<2x32xbf16>
    %cst_69 = arith.constant dense<0.000000e+00> : vector<2x64xf32>
    %328 = tpu.matmul %327, %13, %cst_69 {dimension_numbers = #tpu.dot_dimension_numbers<[1], [0], [0], [1], [0, 0, 1, 1], [], []>} : vector<2x32xbf16>, vector<32x64xbf16>, vector<2x64xf32> -> vector<2x64xf32>
    %329 = arith.truncf %326 : vector<2x32xf32> to vector<2x32xbf16>
    %cst_70 = arith.constant dense<0.000000e+00> : vector<2x64xf32>
    %330 = tpu.matmul %329, %14, %cst_70 {dimension_numbers = #tpu.dot_dimension_numbers<[1], [0], [0], [1], [0, 0, 1, 1], [], []>} : vector<2x32xbf16>, vector<32x64xbf16>, vector<2x64xf32> -> vector<2x64xf32>
    %331 = arith.truncf %300 : vector<2x32xf32> to vector<2x32xbf16>
    %332 = arith.truncf %326 : vector<2x32xf32> to vector<2x32xbf16>
    %cst_71 = arith.constant dense<0.000000e+00> : vector<2x96xf32>
    %333 = tpu.matmul %331, %11, %cst_71 {dimension_numbers = #tpu.dot_dimension_numbers<[1], [0], [0], [1], [0, 0, 1, 1], [], []>} : vector<2x32xbf16>, vector<32x96xbf16>, vector<2x96xf32> -> vector<2x96xf32>
    %cst_72 = arith.constant dense<0.000000e+00> : vector<2x96xf32>
    %334 = tpu.matmul %332, %12, %cst_72 {dimension_numbers = #tpu.dot_dimension_numbers<[1], [0], [0], [1], [0, 0, 1, 1], [], []>} : vector<2x32xbf16>, vector<32x96xbf16>, vector<2x96xf32> -> vector<2x96xf32>
    %335 = vector.extract_strided_slice %5 {offsets = [10, 0], sizes = [2, 96], strides = [1, 1]} : vector<16x96xf32> to vector<2x96xf32>
    %336 = vector.extract_strided_slice %335 {offsets = [0, 0], sizes = [2, 32], strides = [1, 1]} : vector<2x96xf32> to vector<2x32xf32>
    %337 = vector.extract_strided_slice %333 {offsets = [0, 0], sizes = [2, 32], strides = [1, 1]} : vector<2x96xf32> to vector<2x32xf32>
    %338 = arith.addf %336, %337 : vector<2x32xf32>
    %339 = arith.negf %338 : vector<2x32xf32>
    %340 = math.exp %339 : vector<2x32xf32>
    %cst_73 = arith.constant 1.000000e+00 : f32
    %341 = vector.broadcast %cst_73 : f32 to vector<2x32xf32>
    %342 = arith.addf %341, %340 : vector<2x32xf32>
    %343 = arith.divf %341, %342 : vector<2x32xf32>
    %344 = vector.extract_strided_slice %335 {offsets = [0, 32], sizes = [2, 32], strides = [1, 1]} : vector<2x96xf32> to vector<2x32xf32>
    %345 = vector.extract_strided_slice %333 {offsets = [0, 32], sizes = [2, 32], strides = [1, 1]} : vector<2x96xf32> to vector<2x32xf32>
    %346 = arith.addf %344, %345 : vector<2x32xf32>
    %347 = arith.negf %346 : vector<2x32xf32>
    %348 = math.exp %347 : vector<2x32xf32>
    %cst_74 = arith.constant 1.000000e+00 : f32
    %349 = vector.broadcast %cst_74 : f32 to vector<2x32xf32>
    %350 = arith.addf %349, %348 : vector<2x32xf32>
    %351 = arith.divf %349, %350 : vector<2x32xf32>
    %352 = vector.extract_strided_slice %335 {offsets = [0, 64], sizes = [2, 32], strides = [1, 1]} : vector<2x96xf32> to vector<2x32xf32>
    %353 = vector.extract_strided_slice %333 {offsets = [0, 64], sizes = [2, 32], strides = [1, 1]} : vector<2x96xf32> to vector<2x32xf32>
    %354 = arith.addf %353, %17 : vector<2x32xf32>
    %355 = arith.mulf %343, %354 : vector<2x32xf32>
    %356 = arith.addf %352, %355 : vector<2x32xf32>
    %357 = math.tanh %356 : vector<2x32xf32>
    %358 = arith.subf %300, %357 : vector<2x32xf32>
    %359 = arith.mulf %351, %358 : vector<2x32xf32>
    %360 = arith.addf %357, %359 : vector<2x32xf32>
    %361 = vector.extract_strided_slice %10 {offsets = [4, 0], sizes = [2, 96], strides = [1, 1]} : vector<16x96xf32> to vector<2x96xf32>
    %362 = vector.extract_strided_slice %361 {offsets = [0, 0], sizes = [2, 32], strides = [1, 1]} : vector<2x96xf32> to vector<2x32xf32>
    %363 = vector.extract_strided_slice %334 {offsets = [0, 0], sizes = [2, 32], strides = [1, 1]} : vector<2x96xf32> to vector<2x32xf32>
    %364 = arith.addf %362, %363 : vector<2x32xf32>
    %365 = arith.negf %364 : vector<2x32xf32>
    %366 = math.exp %365 : vector<2x32xf32>
    %cst_75 = arith.constant 1.000000e+00 : f32
    %367 = vector.broadcast %cst_75 : f32 to vector<2x32xf32>
    %368 = arith.addf %367, %366 : vector<2x32xf32>
    %369 = arith.divf %367, %368 : vector<2x32xf32>
    %370 = vector.extract_strided_slice %361 {offsets = [0, 32], sizes = [2, 32], strides = [1, 1]} : vector<2x96xf32> to vector<2x32xf32>
    %371 = vector.extract_strided_slice %334 {offsets = [0, 32], sizes = [2, 32], strides = [1, 1]} : vector<2x96xf32> to vector<2x32xf32>
    %372 = arith.addf %370, %371 : vector<2x32xf32>
    %373 = arith.negf %372 : vector<2x32xf32>
    %374 = math.exp %373 : vector<2x32xf32>
    %cst_76 = arith.constant 1.000000e+00 : f32
    %375 = vector.broadcast %cst_76 : f32 to vector<2x32xf32>
    %376 = arith.addf %375, %374 : vector<2x32xf32>
    %377 = arith.divf %375, %376 : vector<2x32xf32>
    %378 = vector.extract_strided_slice %361 {offsets = [0, 64], sizes = [2, 32], strides = [1, 1]} : vector<2x96xf32> to vector<2x32xf32>
    %379 = vector.extract_strided_slice %334 {offsets = [0, 64], sizes = [2, 32], strides = [1, 1]} : vector<2x96xf32> to vector<2x32xf32>
    %380 = arith.addf %379, %20 : vector<2x32xf32>
    %381 = arith.mulf %369, %380 : vector<2x32xf32>
    %382 = arith.addf %378, %381 : vector<2x32xf32>
    %383 = math.tanh %382 : vector<2x32xf32>
    %384 = arith.subf %326, %383 : vector<2x32xf32>
    %385 = arith.mulf %377, %384 : vector<2x32xf32>
    %386 = arith.addf %383, %385 : vector<2x32xf32>
    %387 = arith.truncf %360 : vector<2x32xf32> to vector<2x32xbf16>
    %cst_77 = arith.constant dense<0.000000e+00> : vector<2x64xf32>
    %388 = tpu.matmul %387, %13, %cst_77 {dimension_numbers = #tpu.dot_dimension_numbers<[1], [0], [0], [1], [0, 0, 1, 1], [], []>} : vector<2x32xbf16>, vector<32x64xbf16>, vector<2x64xf32> -> vector<2x64xf32>
    %389 = arith.truncf %386 : vector<2x32xf32> to vector<2x32xbf16>
    %cst_78 = arith.constant dense<0.000000e+00> : vector<2x64xf32>
    %390 = tpu.matmul %389, %14, %cst_78 {dimension_numbers = #tpu.dot_dimension_numbers<[1], [0], [0], [1], [0, 0, 1, 1], [], []>} : vector<2x32xbf16>, vector<32x64xbf16>, vector<2x64xf32> -> vector<2x64xf32>
    %391 = arith.truncf %360 : vector<2x32xf32> to vector<2x32xbf16>
    %392 = arith.truncf %386 : vector<2x32xf32> to vector<2x32xbf16>
    %cst_79 = arith.constant dense<0.000000e+00> : vector<2x96xf32>
    %393 = tpu.matmul %391, %11, %cst_79 {dimension_numbers = #tpu.dot_dimension_numbers<[1], [0], [0], [1], [0, 0, 1, 1], [], []>} : vector<2x32xbf16>, vector<32x96xbf16>, vector<2x96xf32> -> vector<2x96xf32>
    %cst_80 = arith.constant dense<0.000000e+00> : vector<2x96xf32>
    %394 = tpu.matmul %392, %12, %cst_80 {dimension_numbers = #tpu.dot_dimension_numbers<[1], [0], [0], [1], [0, 0, 1, 1], [], []>} : vector<2x32xbf16>, vector<32x96xbf16>, vector<2x96xf32> -> vector<2x96xf32>
    %395 = vector.extract_strided_slice %5 {offsets = [12, 0], sizes = [2, 96], strides = [1, 1]} : vector<16x96xf32> to vector<2x96xf32>
    %396 = vector.extract_strided_slice %395 {offsets = [0, 0], sizes = [2, 32], strides = [1, 1]} : vector<2x96xf32> to vector<2x32xf32>
    %397 = vector.extract_strided_slice %393 {offsets = [0, 0], sizes = [2, 32], strides = [1, 1]} : vector<2x96xf32> to vector<2x32xf32>
    %398 = arith.addf %396, %397 : vector<2x32xf32>
    %399 = arith.negf %398 : vector<2x32xf32>
    %400 = math.exp %399 : vector<2x32xf32>
    %cst_81 = arith.constant 1.000000e+00 : f32
    %401 = vector.broadcast %cst_81 : f32 to vector<2x32xf32>
    %402 = arith.addf %401, %400 : vector<2x32xf32>
    %403 = arith.divf %401, %402 : vector<2x32xf32>
    %404 = vector.extract_strided_slice %395 {offsets = [0, 32], sizes = [2, 32], strides = [1, 1]} : vector<2x96xf32> to vector<2x32xf32>
    %405 = vector.extract_strided_slice %393 {offsets = [0, 32], sizes = [2, 32], strides = [1, 1]} : vector<2x96xf32> to vector<2x32xf32>
    %406 = arith.addf %404, %405 : vector<2x32xf32>
    %407 = arith.negf %406 : vector<2x32xf32>
    %408 = math.exp %407 : vector<2x32xf32>
    %cst_82 = arith.constant 1.000000e+00 : f32
    %409 = vector.broadcast %cst_82 : f32 to vector<2x32xf32>
    %410 = arith.addf %409, %408 : vector<2x32xf32>
    %411 = arith.divf %409, %410 : vector<2x32xf32>
    %412 = vector.extract_strided_slice %395 {offsets = [0, 64], sizes = [2, 32], strides = [1, 1]} : vector<2x96xf32> to vector<2x32xf32>
    %413 = vector.extract_strided_slice %393 {offsets = [0, 64], sizes = [2, 32], strides = [1, 1]} : vector<2x96xf32> to vector<2x32xf32>
    %414 = arith.addf %413, %17 : vector<2x32xf32>
    %415 = arith.mulf %403, %414 : vector<2x32xf32>
    %416 = arith.addf %412, %415 : vector<2x32xf32>
    %417 = math.tanh %416 : vector<2x32xf32>
    %418 = arith.subf %360, %417 : vector<2x32xf32>
    %419 = arith.mulf %411, %418 : vector<2x32xf32>
    %420 = arith.addf %417, %419 : vector<2x32xf32>
    %421 = vector.extract_strided_slice %10 {offsets = [2, 0], sizes = [2, 96], strides = [1, 1]} : vector<16x96xf32> to vector<2x96xf32>
    %422 = vector.extract_strided_slice %421 {offsets = [0, 0], sizes = [2, 32], strides = [1, 1]} : vector<2x96xf32> to vector<2x32xf32>
    %423 = vector.extract_strided_slice %394 {offsets = [0, 0], sizes = [2, 32], strides = [1, 1]} : vector<2x96xf32> to vector<2x32xf32>
    %424 = arith.addf %422, %423 : vector<2x32xf32>
    %425 = arith.negf %424 : vector<2x32xf32>
    %426 = math.exp %425 : vector<2x32xf32>
    %cst_83 = arith.constant 1.000000e+00 : f32
    %427 = vector.broadcast %cst_83 : f32 to vector<2x32xf32>
    %428 = arith.addf %427, %426 : vector<2x32xf32>
    %429 = arith.divf %427, %428 : vector<2x32xf32>
    %430 = vector.extract_strided_slice %421 {offsets = [0, 32], sizes = [2, 32], strides = [1, 1]} : vector<2x96xf32> to vector<2x32xf32>
    %431 = vector.extract_strided_slice %394 {offsets = [0, 32], sizes = [2, 32], strides = [1, 1]} : vector<2x96xf32> to vector<2x32xf32>
    %432 = arith.addf %430, %431 : vector<2x32xf32>
    %433 = arith.negf %432 : vector<2x32xf32>
    %434 = math.exp %433 : vector<2x32xf32>
    %cst_84 = arith.constant 1.000000e+00 : f32
    %435 = vector.broadcast %cst_84 : f32 to vector<2x32xf32>
    %436 = arith.addf %435, %434 : vector<2x32xf32>
    %437 = arith.divf %435, %436 : vector<2x32xf32>
    %438 = vector.extract_strided_slice %421 {offsets = [0, 64], sizes = [2, 32], strides = [1, 1]} : vector<2x96xf32> to vector<2x32xf32>
    %439 = vector.extract_strided_slice %394 {offsets = [0, 64], sizes = [2, 32], strides = [1, 1]} : vector<2x96xf32> to vector<2x32xf32>
    %440 = arith.addf %439, %20 : vector<2x32xf32>
    %441 = arith.mulf %429, %440 : vector<2x32xf32>
    %442 = arith.addf %438, %441 : vector<2x32xf32>
    %443 = math.tanh %442 : vector<2x32xf32>
    %444 = arith.subf %386, %443 : vector<2x32xf32>
    %445 = arith.mulf %437, %444 : vector<2x32xf32>
    %446 = arith.addf %443, %445 : vector<2x32xf32>
    %447 = arith.truncf %420 : vector<2x32xf32> to vector<2x32xbf16>
    %cst_85 = arith.constant dense<0.000000e+00> : vector<2x64xf32>
    %448 = tpu.matmul %447, %13, %cst_85 {dimension_numbers = #tpu.dot_dimension_numbers<[1], [0], [0], [1], [0, 0, 1, 1], [], []>} : vector<2x32xbf16>, vector<32x64xbf16>, vector<2x64xf32> -> vector<2x64xf32>
    %449 = arith.truncf %446 : vector<2x32xf32> to vector<2x32xbf16>
    %cst_86 = arith.constant dense<0.000000e+00> : vector<2x64xf32>
    %450 = tpu.matmul %449, %14, %cst_86 {dimension_numbers = #tpu.dot_dimension_numbers<[1], [0], [0], [1], [0, 0, 1, 1], [], []>} : vector<2x32xbf16>, vector<32x64xbf16>, vector<2x64xf32> -> vector<2x64xf32>
    %451 = arith.truncf %420 : vector<2x32xf32> to vector<2x32xbf16>
    %452 = arith.truncf %446 : vector<2x32xf32> to vector<2x32xbf16>
    %cst_87 = arith.constant dense<0.000000e+00> : vector<2x96xf32>
    %453 = tpu.matmul %451, %11, %cst_87 {dimension_numbers = #tpu.dot_dimension_numbers<[1], [0], [0], [1], [0, 0, 1, 1], [], []>} : vector<2x32xbf16>, vector<32x96xbf16>, vector<2x96xf32> -> vector<2x96xf32>
    %cst_88 = arith.constant dense<0.000000e+00> : vector<2x96xf32>
    %454 = tpu.matmul %452, %12, %cst_88 {dimension_numbers = #tpu.dot_dimension_numbers<[1], [0], [0], [1], [0, 0, 1, 1], [], []>} : vector<2x32xbf16>, vector<32x96xbf16>, vector<2x96xf32> -> vector<2x96xf32>
    %455 = vector.extract_strided_slice %5 {offsets = [14, 0], sizes = [2, 96], strides = [1, 1]} : vector<16x96xf32> to vector<2x96xf32>
    %456 = vector.extract_strided_slice %455 {offsets = [0, 0], sizes = [2, 32], strides = [1, 1]} : vector<2x96xf32> to vector<2x32xf32>
    %457 = vector.extract_strided_slice %453 {offsets = [0, 0], sizes = [2, 32], strides = [1, 1]} : vector<2x96xf32> to vector<2x32xf32>
    %458 = arith.addf %456, %457 : vector<2x32xf32>
    %459 = arith.negf %458 : vector<2x32xf32>
    %460 = math.exp %459 : vector<2x32xf32>
    %cst_89 = arith.constant 1.000000e+00 : f32
    %461 = vector.broadcast %cst_89 : f32 to vector<2x32xf32>
    %462 = arith.addf %461, %460 : vector<2x32xf32>
    %463 = arith.divf %461, %462 : vector<2x32xf32>
    %464 = vector.extract_strided_slice %455 {offsets = [0, 32], sizes = [2, 32], strides = [1, 1]} : vector<2x96xf32> to vector<2x32xf32>
    %465 = vector.extract_strided_slice %453 {offsets = [0, 32], sizes = [2, 32], strides = [1, 1]} : vector<2x96xf32> to vector<2x32xf32>
    %466 = arith.addf %464, %465 : vector<2x32xf32>
    %467 = arith.negf %466 : vector<2x32xf32>
    %468 = math.exp %467 : vector<2x32xf32>
    %cst_90 = arith.constant 1.000000e+00 : f32
    %469 = vector.broadcast %cst_90 : f32 to vector<2x32xf32>
    %470 = arith.addf %469, %468 : vector<2x32xf32>
    %471 = arith.divf %469, %470 : vector<2x32xf32>
    %472 = vector.extract_strided_slice %455 {offsets = [0, 64], sizes = [2, 32], strides = [1, 1]} : vector<2x96xf32> to vector<2x32xf32>
    %473 = vector.extract_strided_slice %453 {offsets = [0, 64], sizes = [2, 32], strides = [1, 1]} : vector<2x96xf32> to vector<2x32xf32>
    %474 = arith.addf %473, %17 : vector<2x32xf32>
    %475 = arith.mulf %463, %474 : vector<2x32xf32>
    %476 = arith.addf %472, %475 : vector<2x32xf32>
    %477 = math.tanh %476 : vector<2x32xf32>
    %478 = arith.subf %420, %477 : vector<2x32xf32>
    %479 = arith.mulf %471, %478 : vector<2x32xf32>
    %480 = arith.addf %477, %479 : vector<2x32xf32>
    %481 = vector.extract_strided_slice %10 {offsets = [0, 0], sizes = [2, 96], strides = [1, 1]} : vector<16x96xf32> to vector<2x96xf32>
    %482 = vector.extract_strided_slice %481 {offsets = [0, 0], sizes = [2, 32], strides = [1, 1]} : vector<2x96xf32> to vector<2x32xf32>
    %483 = vector.extract_strided_slice %454 {offsets = [0, 0], sizes = [2, 32], strides = [1, 1]} : vector<2x96xf32> to vector<2x32xf32>
    %484 = arith.addf %482, %483 : vector<2x32xf32>
    %485 = arith.negf %484 : vector<2x32xf32>
    %486 = math.exp %485 : vector<2x32xf32>
    %cst_91 = arith.constant 1.000000e+00 : f32
    %487 = vector.broadcast %cst_91 : f32 to vector<2x32xf32>
    %488 = arith.addf %487, %486 : vector<2x32xf32>
    %489 = arith.divf %487, %488 : vector<2x32xf32>
    %490 = vector.extract_strided_slice %481 {offsets = [0, 32], sizes = [2, 32], strides = [1, 1]} : vector<2x96xf32> to vector<2x32xf32>
    %491 = vector.extract_strided_slice %454 {offsets = [0, 32], sizes = [2, 32], strides = [1, 1]} : vector<2x96xf32> to vector<2x32xf32>
    %492 = arith.addf %490, %491 : vector<2x32xf32>
    %493 = arith.negf %492 : vector<2x32xf32>
    %494 = math.exp %493 : vector<2x32xf32>
    %cst_92 = arith.constant 1.000000e+00 : f32
    %495 = vector.broadcast %cst_92 : f32 to vector<2x32xf32>
    %496 = arith.addf %495, %494 : vector<2x32xf32>
    %497 = arith.divf %495, %496 : vector<2x32xf32>
    %498 = vector.extract_strided_slice %481 {offsets = [0, 64], sizes = [2, 32], strides = [1, 1]} : vector<2x96xf32> to vector<2x32xf32>
    %499 = vector.extract_strided_slice %454 {offsets = [0, 64], sizes = [2, 32], strides = [1, 1]} : vector<2x96xf32> to vector<2x32xf32>
    %500 = arith.addf %499, %20 : vector<2x32xf32>
    %501 = arith.mulf %489, %500 : vector<2x32xf32>
    %502 = arith.addf %498, %501 : vector<2x32xf32>
    %503 = math.tanh %502 : vector<2x32xf32>
    %504 = arith.subf %446, %503 : vector<2x32xf32>
    %505 = arith.mulf %497, %504 : vector<2x32xf32>
    %506 = arith.addf %503, %505 : vector<2x32xf32>
    %507 = arith.truncf %480 : vector<2x32xf32> to vector<2x32xbf16>
    %cst_93 = arith.constant dense<0.000000e+00> : vector<2x64xf32>
    %508 = tpu.matmul %507, %13, %cst_93 {dimension_numbers = #tpu.dot_dimension_numbers<[1], [0], [0], [1], [0, 0, 1, 1], [], []>} : vector<2x32xbf16>, vector<32x64xbf16>, vector<2x64xf32> -> vector<2x64xf32>
    %509 = arith.truncf %506 : vector<2x32xf32> to vector<2x32xbf16>
    %cst_94 = arith.constant dense<0.000000e+00> : vector<2x64xf32>
    %510 = tpu.matmul %509, %14, %cst_94 {dimension_numbers = #tpu.dot_dimension_numbers<[1], [0], [0], [1], [0, 0, 1, 1], [], []>} : vector<2x32xbf16>, vector<32x64xbf16>, vector<2x64xf32> -> vector<2x64xf32>
    %c0_95 = arith.constant 0 : index
    %c0_96 = arith.constant 0 : index
    %c0_97 = arith.constant 0 : index
    %511 = vector.load %arg15[%c0_95, %c0_96, %c0_97] : memref<2x2x32xf32, #tpu.memory_space<vmem>>, vector<1x2x32xf32>
    %512 = vector.shape_cast %511 : vector<1x2x32xf32> to vector<2x32xf32>
    %513 = vector.shape_cast %480 : vector<2x32xf32> to vector<1x2x32xf32>
    tpu.vector_store %arg15[%c0_95, %c0_96, %c0_97], %513 {strides = array<i32>} : memref<2x2x32xf32, #tpu.memory_space<vmem>>, vector<1x2x32xf32>,
    %c1_98 = arith.constant 1 : index
    %c0_99 = arith.constant 0 : index
    %c0_100 = arith.constant 0 : index
    %514 = vector.load %arg15[%c1_98, %c0_99, %c0_100] : memref<2x2x32xf32, #tpu.memory_space<vmem>>, vector<1x2x32xf32>
    %515 = vector.shape_cast %514 : vector<1x2x32xf32> to vector<2x32xf32>
    %516 = vector.shape_cast %506 : vector<2x32xf32> to vector<1x2x32xf32>
    tpu.vector_store %arg15[%c1_98, %c0_99, %c0_100], %516 {strides = array<i32>} : memref<2x2x32xf32, #tpu.memory_space<vmem>>, vector<1x2x32xf32>,
    %517 = arith.addf %88, %510 : vector<2x64xf32>
    %518 = arith.addf %517, %23 : vector<2x64xf32>
    %519 = math.tanh %518 : vector<2x64xf32>
    %520 = arith.mulf %519, %26 : vector<2x64xf32>
    %cst_101 = arith.constant dense<0.000000e+00> : vector<2xf32>
    %521 = vector.multi_reduction <add>, %520, %cst_101 [1] : vector<2x64xf32> to vector<2xf32>
    %522 = vector.shape_cast %521 : vector<2xf32> to vector<2x1xf32>
    %523 = math.tanh %522 : vector<2x1xf32>
    %524 = arith.addf %148, %450 : vector<2x64xf32>
    %525 = arith.addf %524, %23 : vector<2x64xf32>
    %526 = math.tanh %525 : vector<2x64xf32>
    %527 = arith.mulf %526, %26 : vector<2x64xf32>
    %cst_102 = arith.constant dense<0.000000e+00> : vector<2xf32>
    %528 = vector.multi_reduction <add>, %527, %cst_102 [1] : vector<2x64xf32> to vector<2xf32>
    %529 = vector.shape_cast %528 : vector<2xf32> to vector<2x1xf32>
    %530 = math.tanh %529 : vector<2x1xf32>
    %531 = arith.addf %208, %390 : vector<2x64xf32>
    %532 = arith.addf %531, %23 : vector<2x64xf32>
    %533 = math.tanh %532 : vector<2x64xf32>
    %534 = arith.mulf %533, %26 : vector<2x64xf32>
    %cst_103 = arith.constant dense<0.000000e+00> : vector<2xf32>
    %535 = vector.multi_reduction <add>, %534, %cst_103 [1] : vector<2x64xf32> to vector<2xf32>
    %536 = vector.shape_cast %535 : vector<2xf32> to vector<2x1xf32>
    %537 = math.tanh %536 : vector<2x1xf32>
    %538 = arith.addf %268, %330 : vector<2x64xf32>
    %539 = arith.addf %538, %23 : vector<2x64xf32>
    %540 = math.tanh %539 : vector<2x64xf32>
    %541 = arith.mulf %540, %26 : vector<2x64xf32>
    %cst_104 = arith.constant dense<0.000000e+00> : vector<2xf32>
    %542 = vector.multi_reduction <add>, %541, %cst_104 [1] : vector<2x64xf32> to vector<2xf32>
    %543 = vector.shape_cast %542 : vector<2xf32> to vector<2x1xf32>
    %544 = math.tanh %543 : vector<2x1xf32>
    %545 = arith.addf %328, %270 : vector<2x64xf32>
    %546 = arith.addf %545, %23 : vector<2x64xf32>
    %547 = math.tanh %546 : vector<2x64xf32>
    %548 = arith.mulf %547, %26 : vector<2x64xf32>
    %cst_105 = arith.constant dense<0.000000e+00> : vector<2xf32>
    %549 = vector.multi_reduction <add>, %548, %cst_105 [1] : vector<2x64xf32> to vector<2xf32>
    %550 = vector.shape_cast %549 : vector<2xf32> to vector<2x1xf32>
    %551 = math.tanh %550 : vector<2x1xf32>
    %552 = arith.addf %388, %210 : vector<2x64xf32>
    %553 = arith.addf %552, %23 : vector<2x64xf32>
    %554 = math.tanh %553 : vector<2x64xf32>
    %555 = arith.mulf %554, %26 : vector<2x64xf32>
    %cst_106 = arith.constant dense<0.000000e+00> : vector<2xf32>
    %556 = vector.multi_reduction <add>, %555, %cst_106 [1] : vector<2x64xf32> to vector<2xf32>
    %557 = vector.shape_cast %556 : vector<2xf32> to vector<2x1xf32>
    %558 = math.tanh %557 : vector<2x1xf32>
    %559 = arith.addf %448, %150 : vector<2x64xf32>
    %560 = arith.addf %559, %23 : vector<2x64xf32>
    %561 = math.tanh %560 : vector<2x64xf32>
    %562 = arith.mulf %561, %26 : vector<2x64xf32>
    %cst_107 = arith.constant dense<0.000000e+00> : vector<2xf32>
    %563 = vector.multi_reduction <add>, %562, %cst_107 [1] : vector<2x64xf32> to vector<2xf32>
    %564 = vector.shape_cast %563 : vector<2xf32> to vector<2x1xf32>
    %565 = math.tanh %564 : vector<2x1xf32>
    %566 = arith.addf %508, %90 : vector<2x64xf32>
    %567 = arith.addf %566, %23 : vector<2x64xf32>
    %568 = math.tanh %567 : vector<2x64xf32>
    %569 = arith.mulf %568, %26 : vector<2x64xf32>
    %cst_108 = arith.constant dense<0.000000e+00> : vector<2xf32>
    %570 = vector.multi_reduction <add>, %569, %cst_108 [1] : vector<2x64xf32> to vector<2xf32>
    %571 = vector.shape_cast %570 : vector<2xf32> to vector<2x1xf32>
    %572 = math.tanh %571 : vector<2x1xf32>
    %573 = arith.maximumf %523, %530 : vector<2x1xf32>
    %574 = arith.maximumf %573, %537 : vector<2x1xf32>
    %575 = arith.maximumf %574, %544 : vector<2x1xf32>
    %576 = arith.maximumf %575, %551 : vector<2x1xf32>
    %577 = arith.maximumf %576, %558 : vector<2x1xf32>
    %578 = arith.maximumf %577, %565 : vector<2x1xf32>
    %579 = arith.maximumf %578, %572 : vector<2x1xf32>
    %580 = arith.subf %523, %579 : vector<2x1xf32>
    %581 = math.exp %580 : vector<2x1xf32>
    %582 = arith.subf %530, %579 : vector<2x1xf32>
    %583 = math.exp %582 : vector<2x1xf32>
    %584 = arith.subf %537, %579 : vector<2x1xf32>
    %585 = math.exp %584 : vector<2x1xf32>
    %586 = arith.subf %544, %579 : vector<2x1xf32>
    %587 = math.exp %586 : vector<2x1xf32>
    %588 = arith.subf %551, %579 : vector<2x1xf32>
    %589 = math.exp %588 : vector<2x1xf32>
    %590 = arith.subf %558, %579 : vector<2x1xf32>
    %591 = math.exp %590 : vector<2x1xf32>
    %592 = arith.subf %565, %579 : vector<2x1xf32>
    %593 = math.exp %592 : vector<2x1xf32>
    %594 = arith.subf %572, %579 : vector<2x1xf32>
    %595 = math.exp %594 : vector<2x1xf32>
    %596 = arith.addf %581, %583 : vector<2x1xf32>
    %597 = arith.addf %596, %585 : vector<2x1xf32>
    %598 = arith.addf %597, %587 : vector<2x1xf32>
    %599 = arith.addf %598, %589 : vector<2x1xf32>
    %600 = arith.addf %599, %591 : vector<2x1xf32>
    %601 = arith.addf %600, %593 : vector<2x1xf32>
    %602 = arith.addf %601, %595 : vector<2x1xf32>
    %603 = tpu.reciprocal %602 {approx = true} : vector<2x1xf32> -> vector<2x1xf32>
    %604 = arith.mulf %581, %603 : vector<2x1xf32>
    %605 = vector.broadcast %604 : vector<2x1xf32> to vector<2x32xf32>
    %606 = arith.mulf %605, %60 : vector<2x32xf32>
    %607 = arith.mulf %581, %603 : vector<2x1xf32>
    %608 = vector.broadcast %607 : vector<2x1xf32> to vector<2x32xf32>
    %609 = arith.mulf %608, %506 : vector<2x32xf32>
    %610 = arith.mulf %583, %603 : vector<2x1xf32>
    %611 = vector.broadcast %610 : vector<2x1xf32> to vector<2x32xf32>
    %612 = arith.mulf %611, %120 : vector<2x32xf32>
    %613 = arith.addf %606, %612 : vector<2x32xf32>
    %614 = vector.broadcast %610 : vector<2x1xf32> to vector<2x32xf32>
    %615 = arith.mulf %614, %446 : vector<2x32xf32>
    %616 = arith.addf %609, %615 : vector<2x32xf32>
    %617 = arith.mulf %585, %603 : vector<2x1xf32>
    %618 = vector.broadcast %617 : vector<2x1xf32> to vector<2x32xf32>
    %619 = arith.mulf %618, %180 : vector<2x32xf32>
    %620 = arith.addf %613, %619 : vector<2x32xf32>
    %621 = vector.broadcast %617 : vector<2x1xf32> to vector<2x32xf32>
    %622 = arith.mulf %621, %386 : vector<2x32xf32>
    %623 = arith.addf %616, %622 : vector<2x32xf32>
    %624 = arith.mulf %587, %603 : vector<2x1xf32>
    %625 = vector.broadcast %624 : vector<2x1xf32> to vector<2x32xf32>
    %626 = arith.mulf %625, %240 : vector<2x32xf32>
    %627 = arith.addf %620, %626 : vector<2x32xf32>
    %628 = vector.broadcast %624 : vector<2x1xf32> to vector<2x32xf32>
    %629 = arith.mulf %628, %326 : vector<2x32xf32>
    %630 = arith.addf %623, %629 : vector<2x32xf32>
    %631 = arith.mulf %589, %603 : vector<2x1xf32>
    %632 = vector.broadcast %631 : vector<2x1xf32> to vector<2x32xf32>
    %633 = arith.mulf %632, %300 : vector<2x32xf32>
    %634 = arith.addf %627, %633 : vector<2x32xf32>
    %635 = vector.broadcast %631 : vector<2x1xf32> to vector<2x32xf32>
    %636 = arith.mulf %635, %266 : vector<2x32xf32>
    %637 = arith.addf %630, %636 : vector<2x32xf32>
    %638 = arith.mulf %591, %603 : vector<2x1xf32>
    %639 = vector.broadcast %638 : vector<2x1xf32> to vector<2x32xf32>
    %640 = arith.mulf %639, %360 : vector<2x32xf32>
    %641 = arith.addf %634, %640 : vector<2x32xf32>
    %642 = vector.broadcast %638 : vector<2x1xf32> to vector<2x32xf32>
    %643 = arith.mulf %642, %206 : vector<2x32xf32>
    %644 = arith.addf %637, %643 : vector<2x32xf32>
    %645 = arith.mulf %593, %603 : vector<2x1xf32>
    %646 = vector.broadcast %645 : vector<2x1xf32> to vector<2x32xf32>
    %647 = arith.mulf %646, %420 : vector<2x32xf32>
    %648 = arith.addf %641, %647 : vector<2x32xf32>
    %649 = vector.broadcast %645 : vector<2x1xf32> to vector<2x32xf32>
    %650 = arith.mulf %649, %146 : vector<2x32xf32>
    %651 = arith.addf %644, %650 : vector<2x32xf32>
    %652 = arith.mulf %595, %603 : vector<2x1xf32>
    %653 = vector.broadcast %652 : vector<2x1xf32> to vector<2x32xf32>
    %654 = arith.mulf %653, %480 : vector<2x32xf32>
    %655 = arith.addf %648, %654 : vector<2x32xf32>
    %656 = vector.broadcast %652 : vector<2x1xf32> to vector<2x32xf32>
    %657 = arith.mulf %656, %86 : vector<2x32xf32>
    %658 = arith.addf %651, %657 : vector<2x32xf32>
    %c0_109 = arith.constant 0 : index
    %c0_110 = arith.constant 0 : index
    %659 = vector.load %arg14[%c0_109, %c0_110] : memref<2x64xf32, #tpu.memory_space<vmem>>, vector<2x32xf32>
    tpu.vector_store %arg14[%c0_109, %c0_110], %655 {strides = array<i32>} : memref<2x64xf32, #tpu.memory_space<vmem>>, vector<2x32xf32>,
    %c0_111 = arith.constant 0 : index
    %c32 = arith.constant 32 : index
    %660 = vector.load %arg14[%c0_111, %c32] : memref<2x64xf32, #tpu.memory_space<vmem>>, vector<2x32xf32>
    tpu.vector_store %arg14[%c0_111, %c32], %658 {strides = array<i32>} : memref<2x64xf32, #tpu.memory_space<vmem>>, vector<2x32xf32>,
    return
  }
}

</mosaic_0001>

<bundles_post_ra>
// kernel: tpu_custom_call.1
= control target key start
LH: loop header
LB: loop body
LE: loop exit
PB: predicated region body
PF: predicated region fallthrough
CT: control target
= control target key end

     0   :  { %21 = vsyncpa [#allocation3], 0  ;;  %s3243_s0 = inlined_call_operand.hbm [shape: bf16[16,64], index: 0, kind: input, shape index: {}]   ;;  %s3244_s1 = inlined_call_operand.hbm [shape: f32[2,2,32], index: 1, kind: input, shape index: {}]   ;;  %s3245_s2 = inlined_call_operand.hbm [shape: bf16[64,96], index: 2, kind: input, shape index: {}]   ;;  %s3246_s3 = inlined_call_operand.hbm [shape: bf16[32,96], index: 3, kind: input, shape index: {}]   ;;  %s3247_s4 = inlined_call_operand.vmem [shape: f32[1,96], index: 4, kind: input, shape index: {}]   ;;  %s3248_s5 = inlined_call_operand.vmem [shape: f32[1,32], index: 5, kind: input, shape index: {}]   ;;  %s3249_s6 = inlined_call_operand.hbm [shape: bf16[64,96], index: 6, kind: input, shape index: {}]   ;;  %s3250_s7 = inlined_call_operand.hbm [shape: bf16[32,96], index: 7, kind: input, shape index: {}]   ;;  %s3251_s8 = inlined_call_operand.vmem [shape: f32[1,96], index: 8, kind: input, shape index: {}]   ;;  %s3252_s9 = inlined_call_operand.vmem [shape: f32[1,32], index: 9, kind: input, shape index: {}]   ;;  %s3253_s10 = inlined_call_operand.hbm [shape: bf16[32,64], index: 10, kind: input, shape index: {}]   ;;  %s3254_s11 = inlined_call_operand.hbm [shape: bf16[32,64], index: 11, kind: input, shape index: {}]   ;;  %s3255_s12 = inlined_call_operand.vmem [shape: f32[1,64], index: 12, kind: input, shape index: {}]   ;;  %s3256_s13 = inlined_call_operand.vmem [shape: f32[1,64], index: 13, kind: input, shape index: {}]   ;;  %s3257_s14 = inlined_call_operand.hbm [shape: f32[2,64], index: 14, kind: output, shape index: {0}]   ;;  %s3258_s15 = inlined_call_operand.hbm [shape: f32[2,2,32], index: 15, kind: output, shape index: {1}]  }
   0x1   :  { %22 = vsyncpa [#allocation6], 0 }
   0x2   :  { %23 = vsyncpa [#allocation9], 0 }
   0x3   :  { %24 = vsyncpa [#allocation12], 0 }
   0x4   :  { %25 = vsyncpa [#allocation15], 0 }
   0x5   :  { %26 = vsyncpa [#allocation4], 0  ;;  %s45_s20 = sshll.u32 %s3244_s1, 4  ;;  %s46_s20 = int_to_ptr.hbm [resolvable:$true] %s45_s20 }
   0x6   :  { %27 = vsyncpa [#allocation18], 0  ;;  %s2588_s21 = smov [#allocation5]   ;;  %s2589_s23 = smov 32  }
   0x7   :  { %s47_s22 = sshll.u32 %s2588_s21, 4  ;;  %s2590_s24 = smov 2   ;;  %s48_s22 = int_to_ptr.vmem [resolvable:$true] %s47_s22 }
   0x8   :  { %53 = dma.hbm_to_vmem [thread:$0]  %s46_s20, 64, %s48_s22, [#allocation6], %s2589_s23, %s2589_s23, %s2590_s24  }
   0x9   :  { %s71_s27 = sshll.u32 %s3246_s3, 4  ;;  %s2591_s28 = smov [#allocation8]   ;;  %s72_s27 = int_to_ptr.hbm [resolvable:$true] %s71_s27 }
   0xa   :  { %s73_s29 = sshll.u32 %s2591_s28, 4  ;;  %s101_s16 = sshll.u32 %s3250_s7, 4  ;;  %s74_s29 = int_to_ptr.vmem [resolvable:$true] %s73_s29  ;;  %s102_s16 = int_to_ptr.hbm [resolvable:$true] %s101_s16 }
   0xb   :  { %s2592_s17 = smov 64   ;;  %s2593_s18 = smov 4  }
   0xc   :  { %79 = dma.hbm_to_vmem [thread:$0]  %s72_s27, 256, %s74_s29, [#allocation9], %s2592_s17, %s2592_s17, %s2593_s18  }
   0xd   :  { %s32_s21 = sshll.u32 %s3243_s0, 4  ;;  %s2594_s3 = smov [#allocation11]   ;;  %s33_s21 = int_to_ptr.hbm [resolvable:$true] %s32_s21 }
   0xe   :  { %s103_s22 = sshll.u32 %s2594_s3, 4  ;;  %s2595_s7 = smov [#allocation2]   ;;  %s104_s22 = int_to_ptr.vmem [resolvable:$true] %s103_s22 }
   0xf   :  { %109 = dma.hbm_to_vmem [thread:$0]  %s102_s16, 256, %s104_s22, [#allocation12], %s2592_s17, %s2592_s17, %s2593_s18  }
  0x10   :  { %s34_s25 = sshll.u32 %s2595_s7, 4  ;;  %s58_s30 = sshll.u32 %s3245_s2, 4  ;;  %s35_s25 = int_to_ptr.vmem [resolvable:$true] %s34_s25  ;;  %s59_s30 = int_to_ptr.hbm [resolvable:$true] %s58_s30 }
  0x11   :  { %40 = dma.hbm_to_vmem [thread:$0]  %s33_s21, 128, %s35_s25, [#allocation3], %s2592_s17, %s2592_s17, %s2593_s18  }
  0x12   :  { %s88_s29 = sshll.u32 %s3249_s6, 4  ;;  %s2596_s1 = smov [#allocation7]   ;;  %s89_s29 = int_to_ptr.hbm [resolvable:$true] %s88_s29 }
  0x13   :  { %s60_s19 = sshll.u32 %s2596_s1, 4  ;;  %s2597_s16 = smov [#allocation10]   ;;  %s61_s19 = int_to_ptr.vmem [resolvable:$true] %s60_s19 }
  0x14   :  { %66 = dma.hbm_to_vmem [thread:$0]  %s59_s30, 512, %s61_s19, [#allocation6], %s2592_s17, %s2592_s17, %s2593_s18  }
  0x15   :  { %s90_s2 = sshll.u32 %s2597_s16, 4  ;;  %s118_s22 = sshll.u32 %s3253_s10, 4  ;;  %s91_s2 = int_to_ptr.vmem [resolvable:$true] %s90_s2  ;;  %s119_s22 = int_to_ptr.hbm [resolvable:$true] %s118_s22 }
  0x16   :  { %96 = dma.hbm_to_vmem [thread:$0]  %s89_s29, 512, %s91_s2, [#allocation9], %s2592_s17, %s2592_s17, %s2593_s18  }
  0x17   :  { %s131_s7 = sshll.u32 %s3254_s11, 4  ;;  %s2598_s25 = smov [#allocation13]   ;;  %s132_s7 = int_to_ptr.hbm [resolvable:$true] %s131_s7 }
  0x18   :  { %s120_s26 = sshll.u32 %s2598_s25, 4  ;;  %s2599_s28 = smov [#allocation14]   ;;  %s121_s26 = int_to_ptr.vmem [resolvable:$true] %s120_s26 }
  0x19   :  { %126 = dma.hbm_to_vmem [thread:$0]  %s119_s22, 256, %s121_s26, [#allocation12], %s2592_s17, %s2592_s17, %s2593_s18  }
  0x1a   :  { %s133_s10 = sshll.u32 %s2599_s28, 4  ;;  %s134_s10 = int_to_ptr.vmem [resolvable:$true] %s133_s10 }
  0x1b   :  { %139 = dma.hbm_to_vmem [thread:$0]  %s132_s7, 256, %s134_s10, [#allocation15], %s2592_s17, %s2592_s17, %s2593_s18  }
  0x1c   :  { %2574 = dma.done.wait [#allocation3], 128  }
  0x1d   :  { %2575 = vsyncadd [#allocation3], 4294967168 }
  0x1e   :  { %2576 = dma.done.wait [#allocation6], 576  }
  0x1f   :  { %2577 = vsyncadd [#allocation6], 4294966720 }
  0x20   :  { %2578 = dma.done.wait [#allocation9], 768  }
  0x21   :  { %2579 = vsyncadd [#allocation9], 4294966528 }
  0x22   :  { %2580 = dma.done.wait [#allocation12], 512  }
  0x23   :  { %2581 = vsyncadd [#allocation12], 4294966784 }
  0x24   :  { %2582 = dma.done.wait [#allocation15], 256  }
  0x25   :  { %2583 = vsyncadd [#allocation15], 4294967040  ;;  %v2156_v0 = vld [vmem:[#allocation10 + $0x18] sm:$0xff]  ;;  %v2731_v1 = vld [vmem:[#allocation11 + $0x8] sm:$0xff]  ;;  %vm335_vm0 = vcmask 261120   ;;  %vm220_vm1 = vcmask 523264  }
  0x26   :  { %v2155_v2 = vld [vmem:[#allocation10 + $0x10] sm:$0xff]  ;;  %278 = vmatpush.bf16.msra.mxu1 %v2156_v0  ;;  %373 = vmatpush.bf16.msra.mxu3 %v2731_v1  ;;  %v2734_v3 = vld [vmem:[#allocation11] sm:$0xff]  ;;  %v2736_v4 = vld [vmem:[#allocation5 + $0x2] sm:$0x3]  ;;  %s2008_s3 = sshll.u32 %s3258_s15, 4  ;;  %s1998_s21 = sshll.u32 %s3257_s14, 4  ;;  %s2009_s3 = int_to_ptr.hbm [resolvable:$true] %s2008_s3  ;;  %s1999_s21 = int_to_ptr.hbm [resolvable:$true] %s1998_s21 }
  0x27   :  { %v2738_v5 = vld [vmem:[#allocation8 + $0x8] sm:$0xff]  ;;  %v2740_v6 = vld [vmem:[#allocation8] sm:$0xff]  ;;  %v2743_v7 = vld [vmem:[#allocation5] sm:$0x3]  ;;  %v322_v9 = vpack.c.bf16 %v2736_v4, %v2736_v4 }
  0x28   :  { %345 = vmatpush.bf16.msra.mxu2 %v2738_v5  ;;  %v2180_v8 = vld [vmem:[%s3252_s9] ss:$0 sm:$0xff]  ;;  %v2152_v10 = vld [vmem:[#allocation7 + $0x18] sm:$0xff]  ;;  %v321_v12 = vpack.c.bf16 %v2743_v7, %v2743_v7  ;;  %v2150_v16 = vld [vmem:[#allocation7 + $0x8] sm:$0xff] }
  0x29   :  { %v2154_v11 = vld [vmem:[#allocation10 + $0x8] sm:$0xff]  ;;  %453 = vrot.lane.b32.xlu0 %v2180_v8, %s2592_s17  ;;  %228 = vmatpush.bf16.msra.mxu0 %v2152_v10  ;;  %v2151_v13 = vld [vmem:[#allocation7 + $0x10] sm:$0xff]  ;;  %v2149_v18 = vld [vmem:[#allocation7] sm:$0xff] }
  0x2a   :  { %279 = vmatpush.bf16.msra.mxu1 %v2155_v2  ;;  %374 = vmatpush.bf16.msra.mxu3 %v2734_v3  ;;  %v2153_v14 = vld [vmem:[#allocation10] sm:$0xff] }
  0x2b   :  { %v2181_v15 = vld [vmem:[%s3248_s5] ss:$0 sm:$0xff] }
  0x2c   :  { %346 = vmatpush.bf16.msra.mxu2 %v2740_v6  ;;  %v2148_v17 = vld [vmem:[#allocation2] sm:$0xff] }
  0x2d   :  { %2085 = vmatmul.msk.bf16.vlgmr.msra.gmra.mxu3 %vm335_vm0, %v322_v9  ;;  %229 = vmatpush.bf16.msra.mxu0 %v2151_v13  ;;  %v2182_v21 = vld [vmem:[%s3251_s8] ss:$0 sm:$0xff] }
  0x2e   :  { %532 = vmatpush.bf16.msrb.mxu3 %v2738_v5  ;;  %280 = vmatpush.bf16.msra.mxu1 %v2154_v11  ;;  %v2785_v34 = vld [vmem:[%s3247_s4] ss:$0 sm:$0xff]  ;;  %s2600_s4 = smov 96  }
  0x2f   :  { %2076 = vmatmul.msk.bf16.vlgmr.msra.gmra.mxu2 %vm335_vm0, %v321_v12 }
  0x31   :  { %400 = vrot.lane.b32.xlu0 %v2181_v15, %s2592_s17  ;;  %230 = vmatpush.bf16.msra.mxu0 %v2150_v16 }
  0x32   :  { %533 = vmatpush.bf16.msrb.mxu3 %v2740_v6  ;;  %281 = vmatpush.bf16.msra.mxu1 %v2153_v14 }
  0x35   :  { %2067 = vmatmul.msk.bf16.vlgmr.msra.gmra.mxu1 %vm220_vm1, %v2148_v17  ;;  %231 = vmatpush.bf16.msra.mxu0 %v2149_v18 }
  0x36   :  { %702 = vmatpush.bf16.msra.mxu3 %v2731_v1 }
  0x38   :  { %2050 = vmatmul.msk.bf16.vlgmr.msra.gmra.mxu0 %vm220_vm1, %v2148_v17 }
  0x39   :  { %545 = vmatpush.bf16.msrb.mxu0 %v2731_v1 }
  0x3a   :  { %703 = vmatpush.bf16.msra.mxu3 %v2734_v3 }
  0x3d   :  { %546 = vmatpush.bf16.msrb.mxu0 %v2734_v3 }
  0x9b   :  { %v2767_v19 = vpop.permute.xlu0 %453 }
  0xa3   :  { %v2776_v27 = vpop.permute.xlu0 %400 }
  0xb0   :  { %v376_v20 = vpop.f32.mrf.mxu3 }
  0xb1   :  { %v456_v22 = vadd.f32 %v2767_v19, %v376_v20  ;;  %v431_v33 = vrot.slane %v376_v20, 2 }
  0xb2   :  { %v283_v23 = vpop.f32.mrf.mxu1  ;;  %v348_v24 = vpop.f32.mrf.mxu2 }
  0xb3   :  { %v2773_v25 = vadd.f32 %v2182_v21, %v283_v23  ;;  %v458_v26 = vrot.slane %v456_v22, 2  ;;  %v403_v29 = vadd.f32 %v2776_v27, %v348_v24 }
  0xb5   :  { %459 = vrot.lane.b32.xlu1 %v458_v26, %s2592_s17  ;;  %v233_v36 = vpop.f32.mrf.mxu0 }
  0xb6   :  { %v2789_v37 = vadd.f32 %v2785_v34, %v233_v36 }
  0xb8   :  { %v378_v28 = vpop.f32.mrf.mxu3  ;;  %v380_v39 = vadd.f32 %v348_v24, %v2789_v37 }
  0xba   :  { %v350_v30 = vpop.f32.mrf.mxu2  ;;  %v285_v31 = vpop.f32.mrf.mxu1  ;;  %v2086_v40 = vmul.f32 -1.442695, %v380_v39 }
  0xbb   :  { %v2780_v32 = vadd.f32 %v2182_v21, %v285_v31  ;;  %v2804_v30 = vld [vmem:[#allocation14 + $0x8] sm:$0xff] }
  0xbc   :  { %513 = vmatpush.bf16.msrb.mxu2 %v2804_v30  ;;  %669 = vmatpush.bf16.msrb.mxu1 %v2804_v30 }
  0xbd   :  { %405 = vrot.lane.b32.xlu1 %v403_v29, %s2592_s17  ;;  %v433_v35 = vadd.f32 %v431_v33, %v2780_v32  ;;  %826 = vmatpush.bf16.msra.mxu0 %v2804_v30 }
  0xbf   :  { %v2087_v38 = vmul.f32 -1.442695, %v433_v35 }
  0xc1   :  { %2186 = vpow2.f32 %v2087_v38 }
  0xc2   :  { %2188 = vpow2.f32 %v2086_v40 }
  0xc7   :  { %v2187_v41 = vpop.eup %2186 }
  0xc8   :  { %v437_v42 = vadd.f32 1.0, %v2187_v41  ;;  %v2189_v43 = vpop.eup %2188 }
  0xc9   :  { %v384_v44 = vadd.f32 1.0, %v2189_v43 }
  0xca   :  { %2190 = vrcp.f32 %v437_v42  ;;  %v449_v53 = vand.u32 2147483648, %v437_v42  ;;  %vm443_vm3 = vweird.f32 %v437_v42  ;;  %v447_v54 = vand.u32 2147483647, %v437_v42 }
  0xcb   :  { %2192 = vrcp.f32 %v384_v44  ;;  %vm390_vm6 = vweird.f32 %v384_v44  ;;  %v396_v60 = vand.u32 2147483648, %v384_v44  ;;  %v394_v63 = vand.u32 2147483647, %v384_v44 }
  0xcc   :  { %v450_v57 = vor.u32 1.1754944e-38, %v449_v53  ;;  %vm448_vm5 = vcmp.eq.f32.partialorder %v447_v54, 8.507059e+37 }
  0xcd   :  { %v397_v0 = vor.u32 1.1754944e-38, %v396_v60  ;;  %vm395_vm9 = vcmp.eq.f32.partialorder %v394_v63, 8.507059e+37 }
  0xd0   :  { %v2191_v45 = vpop.eup %2190 }
  0xd1   :  { %v439_v46 = vmul.f32 %v2191_v45, %v437_v42  ;;  %v2193_v48 = vpop.eup %2192  ;;  %vm444_vm2 = vweird.f32 %v2191_v45  ;;  %v2840_v42 = vpop.f32.mrf.mxu0 }
  0xd2   :  { %v386_v50 = vmul.f32 %v2193_v48, %v384_v44  ;;  %vm445_vm4 = vmor %vm443_vm3, %vm444_vm2  ;;  %vm391_vm7 = vweird.f32 %v2193_v48 }
  0xd3   :  { %v440_v47 = vsub.f32 1.0, %v439_v46  ;;  %vm392_vm8 = vmor %vm390_vm6, %vm391_vm7 }
  0xd4   :  { %v387_v52 = vsub.f32 1.0, %v386_v50 }
  0xd5   :  { %v441_v49 = vmul.f32 %v2191_v45, %v440_v47 }
  0xd6   :  { %v388_v56 = vmul.f32 %v2193_v48, %v387_v52 }
  0xd7   :  { %v442_v51 = vadd.f32 %v2191_v45, %v441_v49 }
  0xd8   :  { %v389_v62 = vadd.f32 %v2193_v48, %v388_v56 }
  0xd9   :  { %v446_v55 = vsel %vm445_vm4, %v2191_v45, %v442_v51 }
  0xda   :  { %v451_v59 = vsel %vm448_vm5, %v450_v57, %v446_v55  ;;  %v393_v2 = vsel %vm392_vm8, %v2193_v48, %v389_v62 }
  0xdb   :  { %v398_v9 = vsel %vm395_vm9, %v397_v0, %v393_v2 }
 0x127   :  { %v460_v58 = vpop.permute.xlu1 %459 }
 0x128   :  { %v462_v61 = vmul.f32 %v460_v58, %v451_v59 }
 0x12a   :  { %464 = vrot.lane.b32.xlu2 %v462_v61, %s2592_s17 }
 0x12f   :  { %v406_v8 = vpop.permute.xlu1 %405 }
 0x130   :  { %v408_v10 = vmul.f32 %v406_v8, %v398_v9 }
 0x132   :  { %410 = vrot.lane.b32.xlu2 %v408_v10, %s2592_s17 }
 0x184   :  { %v465_v11 = vpop.permute.xlu2 %464 }
 0x185   :  { %v467_v12 = vadd.f32 %v465_v11, %v2780_v32 }
 0x187   :  { %2194 = vtanh.f32 %v467_v12 }
 0x18c   :  { %v411_v13 = vpop.permute.xlu2 %410 }
 0x18d   :  { %v2195_v14 = vpop.eup %2194  ;;  %v413_v15 = vadd.f32 %v411_v13, %v2789_v37 }
 0x18e   :  { %v470_v16 = vrot.slane %v2195_v14, 6 }
 0x18f   :  { %2196 = vtanh.f32 %v413_v15 }
 0x190   :  { %471 = vrot.lane.b32.xlu0 %v470_v16, %s2592_s17 }
 0x195   :  { %v2197_v17 = vpop.eup %2196 }
 0x196   :  { %416 = vrot.lane.b32.xlu1 %v2197_v17, %s2592_s17 }
 0x202   :  { %v472_v18 = vpop.permute.xlu0 %471 }
 0x203   :  { %v474_v20 = vsub.f32 %v2736_v4, %v472_v18  ;;  %v2807_v4 = vld [vmem:[#allocation14] sm:$0xff] }
 0x204   :  { %514 = vmatpush.bf16.msrb.mxu2 %v2807_v4  ;;  %670 = vmatpush.bf16.msrb.mxu1 %v2807_v4 }
 0x205   :  { %v476_v21 = vrot.slane %v474_v20, 2  ;;  %827 = vmatpush.bf16.msra.mxu0 %v2807_v4 }
 0x207   :  { %477 = vrot.lane.b32.xlu2 %v476_v21, %s2589_s23 }
 0x208   :  { %v417_v22 = vpop.permute.xlu1 %416  ;;  %689 = vmatpush.bf16.msra.mxu2 %v2738_v5  ;;  %846 = vmatpush.bf16.msra.mxu1 %v2738_v5 }
 0x209   :  { %v419_v23 = vsub.f32 %v2743_v7, %v417_v22 }
 0x20b   :  { %421 = vrot.lane.b32.xlu0 %v419_v23, %s2589_s23 }
 0x20c   :  { %690 = vmatpush.bf16.msra.mxu2 %v2740_v6  ;;  %847 = vmatpush.bf16.msra.mxu1 %v2740_v6 }
 0x261   :  { %v478_v24 = vpop.permute.xlu2 %477 }
 0x262   :  { %v480_v26 = vmul.f32 %v478_v24, %v451_v59 }
 0x264   :  { %482 = vrot.lane.b32.xlu1 %v480_v26, %s2589_s23 }
 0x27d   :  { %v422_v28 = vpop.permute.xlu0 %421 }
 0x27e   :  { %v424_v29 = vmul.f32 %v422_v28, %v398_v9 }
 0x280   :  { %426 = vrot.lane.b32.xlu2 %v424_v29, %s2589_s23 }
 0x2d6   :  { %v483_v7 = vpop.permute.xlu1 %482 }
 0x2d7   :  { %v2818_v31 = vadd.f32 %v2195_v14, %v483_v7 }
 0x2d9   :  { %v487_v33 = vpack.c.bf16 %v2818_v31, %v2818_v31 }
 0x2da   :  { %v427_v35 = vpop.permute.xlu2 %426 }
 0x2db   :  { %v2822_v36 = vadd.f32 %v2197_v17, %v427_v35  ;;  %v489_v38 = vrot.slane %v487_v33, 3 }
 0x2dd   :  { %490 = vrot.lane.b32.xlu0 %v489_v38, %s2592_s17  ;;  %v486_v39 = vpack.c.bf16 %v2822_v36, %v2822_v36 }
 0x2df   :  { %521 = vrot.lane.b32.xlu1 %v486_v39, %s2592_s17 }
 0x34f   :  { %v491_v40 = vpop.permute.xlu0 %490 }
 0x350   :  { %2096 = vmatmul.msk.bf16.vlgmr.msrb.gmra.mxu2 %vm335_vm0, %v491_v40  ;;  %2098 = vmatmul.msk.bf16.vlgmr.msrb.gmra.mxu0 %vm335_vm0, %v491_v40 }
 0x351   :  { %v2830_v41 = vpop.permute.xlu1 %521  ;;  %859 = vmatpush.bf16.msrb.mxu2 %v2731_v1  ;;  %998 = vmatpush.bf16.msrb.mxu0 %v2738_v5 }
 0x352   :  { %2097 = vmatmul.msk.bf16.vlgmr.msrb.gmra.mxu3 %vm335_vm0, %v2830_v41 }
 0x353   :  { %978 = vmatpush.bf16.msrb.mxu3 %v2804_v30 }
 0x355   :  { %860 = vmatpush.bf16.msrb.mxu2 %v2734_v3  ;;  %999 = vmatpush.bf16.msrb.mxu0 %v2740_v6 }
 0x357   :  { %979 = vmatpush.bf16.msrb.mxu3 %v2807_v4 }
 0x3cd   :  { %v548_v43 = vpop.f32.mrf.mxu0 }
 0x3ce   :  { %v626_v44 = vadd.f32 %v548_v43, %v2767_v19  ;;  %v604_v53 = vrot.slane %v548_v43, 4 }
 0x3d0   :  { %v628_v45 = vrot.slane %v626_v44, 4  ;;  %v606_v54 = vadd.f32 %v604_v53, %v2780_v32 }
 0x3d2   :  { %629 = vrot.lane.b32.xlu2 %v628_v45, %s2592_s17  ;;  %v2100_v55 = vmul.f32 -1.442695, %v606_v54 }
 0x3d3   :  { %v2844_v46 = vpop.f32.mrf.mxu2 }
 0x3d4   :  { %2198 = vpow2.f32 %v2100_v55 }
 0x3d5   :  { %v535_v47 = vpop.f32.mrf.mxu3  ;;  %v550_v48 = vpop.f32.mrf.mxu0 }
 0x3d6   :  { %v575_v49 = vadd.f32 %v535_v47, %v2776_v27  ;;  %v553_v59 = vrot.slane %v535_v47, 6 }
 0x3d8   :  { %v577_v50 = vrot.slane %v575_v49, 6  ;;  %v555_v61 = vadd.f32 %v553_v59, %v2789_v37 }
 0x3da   :  { %578 = vrot.lane.b32.xlu0 %v577_v50, %s2592_s17  ;;  %v2199_v56 = vpop.eup %2198  ;;  %v2099_v63 = vmul.f32 -1.442695, %v555_v61 }
 0x3db   :  { %v518_v51 = vpop.f32.mrf.mxu2  ;;  %v610_v57 = vadd.f32 1.0, %v2199_v56 }
 0x3dd   :  { %v537_v52 = vpop.f32.mrf.mxu3  ;;  %2200 = vrcp.f32 %v610_v57  ;;  %v622_v8 = vand.u32 2147483648, %v610_v57  ;;  %vm616_vm11 = vweird.f32 %v610_v57  ;;  %v620_v9 = vand.u32 2147483647, %v610_v57 }
 0x3de   :  { %2202 = vpow2.f32 %v2099_v63 }
 0x3df   :  { %v623_v12 = vor.u32 1.1754944e-38, %v622_v8  ;;  %vm621_vm13 = vcmp.eq.f32.partialorder %v620_v9, 8.507059e+37 }
 0x3e3   :  { %v2201_v58 = vpop.eup %2200 }
 0x3e4   :  { %v612_v60 = vmul.f32 %v2201_v58, %v610_v57  ;;  %vm617_vm10 = vweird.f32 %v2201_v58  ;;  %v2203_v10 = vpop.eup %2202 }
 0x3e5   :  { %vm618_vm12 = vmor %vm616_vm11, %vm617_vm10  ;;  %v559_v13 = vadd.f32 1.0, %v2203_v10 }
 0x3e6   :  { %v613_v62 = vsub.f32 1.0, %v612_v60 }
 0x3e7   :  { %2204 = vrcp.f32 %v559_v13  ;;  %v571_v23 = vand.u32 2147483648, %v559_v13  ;;  %vm565_vm15 = vweird.f32 %v559_v13  ;;  %v569_v24 = vand.u32 2147483647, %v559_v13 }
 0x3e8   :  { %v614_v0 = vmul.f32 %v2201_v58, %v613_v62 }
 0x3e9   :  { %v572_v28 = vor.u32 1.1754944e-38, %v571_v23  ;;  %vm570_vm2 = vcmp.eq.f32.partialorder %v569_v24, 8.507059e+37 }
 0x3ea   :  { %v615_v2 = vadd.f32 %v2201_v58, %v614_v0 }
 0x3ec   :  { %v619_v11 = vsel %vm618_vm12, %v2201_v58, %v615_v2 }
 0x3ed   :  { %v624_v14 = vsel %vm621_vm13, %v623_v12, %v619_v11  ;;  %v2205_v17 = vpop.eup %2204 }
 0x3ee   :  { %v561_v18 = vmul.f32 %v2205_v17, %v559_v13  ;;  %vm566_vm14 = vweird.f32 %v2205_v17 }
 0x3ef   :  { %vm567_vm1 = vmor %vm565_vm15, %vm566_vm14 }
 0x3f0   :  { %v562_v20 = vsub.f32 1.0, %v561_v18 }
 0x3f2   :  { %v563_v21 = vmul.f32 %v2205_v17, %v562_v20 }
 0x3f4   :  { %v564_v22 = vadd.f32 %v2205_v17, %v563_v21 }
 0x3f6   :  { %v568_v26 = vsel %vm567_vm1, %v2205_v17, %v564_v22 }
 0x3f7   :  { %v573_v7 = vsel %vm570_vm2, %v572_v28, %v568_v26 }
 0x42c   :  { %v630_v15 = vpop.permute.xlu2 %629 }
 0x42d   :  { %v632_v16 = vmul.f32 %v630_v15, %v624_v14 }
 0x42f   :  { %634 = vrot.lane.b32.xlu1 %v632_v16, %s2592_s17 }
 0x44c   :  { %v579_v29 = vpop.permute.xlu0 %578 }
 0x44d   :  { %v581_v33 = vmul.f32 %v579_v29, %v573_v7 }
 0x44f   :  { %583 = vrot.lane.b32.xlu2 %v581_v33, %s2592_s17 }
 0x4a1   :  { %v635_v35 = vpop.permute.xlu1 %634 }
 0x4a2   :  { %v637_v38 = vadd.f32 %v635_v35, %v2780_v32 }
 0x4a4   :  { %2206 = vtanh.f32 %v637_v38 }
 0x4a9   :  { %v584_v39 = vpop.permute.xlu2 %583 }
 0x4aa   :  { %v2207_v40 = vpop.eup %2206  ;;  %v586_v43 = vadd.f32 %v584_v39, %v2789_v37 }
 0x4ab   :  { %v640_v44 = vrot.slane %v2207_v40, 6 }
 0x4ac   :  { %2208 = vtanh.f32 %v586_v43 }
 0x4ad   :  { %v642_v45 = vsub.f32 %v2818_v31, %v640_v44 }
 0x4af   :  { %v644_v47 = vrot.slane %v642_v45, 2 }
 0x4b1   :  { %645 = vrot.lane.b32.xlu0 %v644_v47, %s2600_s4 }
 0x4b2   :  { %v2209_v48 = vpop.eup %2208 }
 0x4b3   :  { %v589_v49 = vrot.slane %v2209_v48, 2 }
 0x4b5   :  { %v591_v50 = vsub.f32 %v2822_v36, %v589_v49 }
 0x4b7   :  { %v593_v51 = vrot.slane %v591_v50, 6 }
 0x4b9   :  { %594 = vrot.lane.b32.xlu1 %v593_v51, %s2600_s4 }
 0x523   :  { %v646_v52 = vpop.permute.xlu0 %645 }
 0x524   :  { %v648_v53 = vmul.f32 %v646_v52, %v624_v14 }
 0x526   :  { %650 = vrot.lane.b32.xlu2 %v648_v53, %s2589_s23 }
 0x52b   :  { %v595_v54 = vpop.permute.xlu1 %594 }
 0x52c   :  { %v597_v55 = vmul.f32 %v595_v54, %v573_v7 }
 0x52e   :  { %599 = vrot.lane.b32.xlu0 %v597_v55, %s2589_s23 }
 0x580   :  { %v651_v56 = vpop.permute.xlu2 %650 }
 0x581   :  { %v2860_v57 = vadd.f32 %v2207_v40, %v651_v56 }
 0x583   :  { %v655_v58 = vpack.c.bf16 %v2860_v57, %v2860_v57 }
 0x585   :  { %v657_v59 = vrot.slane %v655_v58, 2 }
 0x587   :  { %658 = vrot.lane.b32.xlu1 %v657_v59, %s2592_s17 }
 0x5a0   :  { %v600_v60 = vpop.permute.xlu0 %599 }
 0x5a1   :  { %v2865_v61 = vadd.f32 %v2209_v48, %v600_v60 }
 0x5a3   :  { %v654_v62 = vpack.c.bf16 %v2865_v61, %v2865_v61 }
 0x5a5   :  { %v677_v63 = vrot.slane %v654_v62, 1 }
 0x5a7   :  { %678 = vrot.lane.b32.xlu2 %v677_v63, %s2592_s17 }
 0x5f9   :  { %v659_v0 = vpop.permute.xlu1 %658 }
 0x5fa   :  { %2101 = vmatmul.msk.bf16.vlgmr.msrb.gmra.mxu1 %vm335_vm0, %v659_v0  ;;  %2103 = vmatmul.msk.bf16.vlgmr.msra.gmra.mxu3 %vm335_vm0, %v659_v0 }
 0x5fb   :  { %1011 = vmatpush.bf16.msrb.mxu1 %v2731_v1  ;;  %1150 = vmatpush.bf16.msra.mxu3 %v2738_v5 }
 0x5ff   :  { %1012 = vmatpush.bf16.msrb.mxu1 %v2734_v3  ;;  %1151 = vmatpush.bf16.msra.mxu3 %v2740_v6 }
 0x601   :  { %v2876_v2 = vpop.permute.xlu2 %678 }
 0x602   :  { %2102 = vmatmul.msk.bf16.vlgmr.msra.gmra.mxu2 %vm335_vm0, %v2876_v2 }
 0x603   :  { %1131 = vmatpush.bf16.msra.mxu2 %v2804_v30 }
 0x607   :  { %1132 = vmatpush.bf16.msra.mxu2 %v2807_v4 }
 0x677   :  { %v2882_v8 = vpop.f32.mrf.mxu1 }
 0x67d   :  { %v705_v9 = vpop.f32.mrf.mxu3 }
 0x67e   :  { %v783_v10 = vadd.f32 %v705_v9, %v2767_v19  ;;  %v761_v18 = vrot.slane %v705_v9, 6 }
 0x67f   :  { %v674_v11 = vpop.f32.mrf.mxu1 }
 0x680   :  { %v785_v12 = vrot.slane %v783_v10, 6  ;;  %v763_v20 = vadd.f32 %v761_v18, %v2780_v32 }
 0x682   :  { %786 = vrot.lane.b32.xlu0 %v785_v12, %s2592_s17  ;;  %v2105_v21 = vmul.f32 -1.442695, %v763_v20 }
 0x684   :  { %2210 = vpow2.f32 %v2105_v21 }
 0x685   :  { %v692_v13 = vpop.f32.mrf.mxu2  ;;  %v707_v14 = vpop.f32.mrf.mxu3 }
 0x686   :  { %v732_v15 = vadd.f32 %v692_v13, %v2776_v27  ;;  %v710_v22 = vrot.slane %v692_v13, 4 }
 0x688   :  { %v734_v16 = vrot.slane %v732_v15, 4  ;;  %v712_v23 = vadd.f32 %v710_v22, %v2789_v37 }
 0x68a   :  { %735 = vrot.lane.b32.xlu1 %v734_v16, %s2592_s17  ;;  %v2104_v24 = vmul.f32 -1.442695, %v712_v23  ;;  %v2211_v26 = vpop.eup %2210 }
 0x68b   :  { %v767_v28 = vadd.f32 1.0, %v2211_v26 }
 0x68c   :  { %2212 = vpow2.f32 %v2104_v24 }
 0x68d   :  { %v694_v17 = vpop.f32.mrf.mxu2  ;;  %2214 = vrcp.f32 %v767_v28  ;;  %v779_v47 = vand.u32 2147483648, %v767_v28  ;;  %vm773_vm4 = vweird.f32 %v767_v28  ;;  %v777_v48 = vand.u32 2147483647, %v767_v28 }
 0x68f   :  { %v780_v51 = vor.u32 1.1754944e-38, %v779_v47  ;;  %vm778_vm6 = vcmp.eq.f32.partialorder %v777_v48, 8.507059e+37 }
 0x692   :  { %v2213_v29 = vpop.eup %2212 }
 0x693   :  { %v716_v7 = vadd.f32 1.0, %v2213_v29  ;;  %v2215_v33 = vpop.eup %2214 }
 0x694   :  { %v769_v35 = vmul.f32 %v2215_v33, %v767_v28  ;;  %vm774_vm3 = vweird.f32 %v2215_v33 }
 0x695   :  { %2216 = vrcp.f32 %v716_v7  ;;  %vm775_vm5 = vmor %vm773_vm4, %vm774_vm3  ;;  %v728_v56 = vand.u32 2147483648, %v716_v7  ;;  %vm722_vm8 = vweird.f32 %v716_v7  ;;  %v726_v58 = vand.u32 2147483647, %v716_v7 }
 0x696   :  { %v770_v38 = vsub.f32 1.0, %v769_v35 }
 0x697   :  { %v729_v60 = vor.u32 1.1754944e-38, %v728_v56  ;;  %vm727_vm10 = vcmp.eq.f32.partialorder %v726_v58, 8.507059e+37 }
 0x698   :  { %v771_v40 = vmul.f32 %v2215_v33, %v770_v38 }
 0x69a   :  { %v772_v44 = vadd.f32 %v2215_v33, %v771_v40 }
 0x69b   :  { %v2217_v39 = vpop.eup %2216 }
 0x69c   :  { %v718_v43 = vmul.f32 %v2217_v39, %v716_v7  ;;  %v776_v49 = vsel %vm775_vm5, %v2215_v33, %v772_v44  ;;  %vm723_vm7 = vweird.f32 %v2217_v39 }
 0x69d   :  { %v781_v53 = vsel %vm778_vm6, %v780_v51, %v776_v49  ;;  %vm724_vm9 = vmor %vm722_vm8, %vm723_vm7 }
 0x69e   :  { %v719_v45 = vsub.f32 1.0, %v718_v43 }
 0x6a0   :  { %v720_v50 = vmul.f32 %v2217_v39, %v719_v45 }
 0x6a2   :  { %v721_v55 = vadd.f32 %v2217_v39, %v720_v50 }
 0x6a4   :  { %v725_v59 = vsel %vm724_vm9, %v2217_v39, %v721_v55 }
 0x6a5   :  { %v730_v63 = vsel %vm727_vm10, %v729_v60, %v725_v59 }
 0x6f4   :  { %v787_v52 = vpop.permute.xlu0 %786 }
 0x6f5   :  { %v789_v54 = vmul.f32 %v787_v52, %v781_v53 }
 0x6f7   :  { %791 = vrot.lane.b32.xlu2 %v789_v54, %s2592_s17 }
 0x6fc   :  { %v736_v62 = vpop.permute.xlu1 %735 }
 0x6fd   :  { %v738_v0 = vmul.f32 %v736_v62, %v730_v63 }
 0x6ff   :  { %740 = vrot.lane.b32.xlu0 %v738_v0, %s2592_s17 }
 0x751   :  { %v792_v9 = vpop.permute.xlu2 %791 }
 0x752   :  { %v794_v10 = vadd.f32 %v792_v9, %v2780_v32 }
 0x754   :  { %2218 = vtanh.f32 %v794_v10 }
 0x75a   :  { %v2219_v11 = vpop.eup %2218 }
 0x75b   :  { %v797_v12 = vrot.slane %v2219_v11, 6 }
 0x75d   :  { %v799_v13 = vsub.f32 %v2860_v57, %v797_v12 }
 0x75f   :  { %v801_v14 = vrot.slane %v799_v13, 2 }
 0x761   :  { %802 = vrot.lane.b32.xlu1 %v801_v14, %s2600_s4 }
 0x771   :  { %v741_v15 = vpop.permute.xlu0 %740 }
 0x772   :  { %v743_v16 = vadd.f32 %v741_v15, %v2789_v37 }
 0x774   :  { %2220 = vtanh.f32 %v743_v16 }
 0x77a   :  { %v2221_v17 = vpop.eup %2220 }
 0x77b   :  { %v746_v18 = vrot.slane %v2221_v17, 2 }
 0x77d   :  { %v748_v20 = vsub.f32 %v2865_v61, %v746_v18 }
 0x77f   :  { %v750_v21 = vrot.slane %v748_v20, 6 }
 0x781   :  { %751 = vrot.lane.b32.xlu2 %v750_v21, %s2600_s4 }
 0x7d3   :  { %v803_v22 = vpop.permute.xlu1 %802 }
 0x7d4   :  { %v805_v23 = vmul.f32 %v803_v22, %v781_v53 }
 0x7d6   :  { %807 = vrot.lane.b32.xlu0 %v805_v23, %s2589_s23 }
 0x7db   :  { %v752_v24 = vpop.permute.xlu2 %751 }
 0x7dc   :  { %v754_v26 = vmul.f32 %v752_v24, %v730_v63 }
 0x7de   :  { %756 = vrot.lane.b32.xlu1 %v754_v26, %s2589_s23 }
 0x848   :  { %v808_v28 = vpop.permute.xlu0 %807 }
 0x849   :  { %v2900_v29 = vadd.f32 %v2219_v11, %v808_v28 }
 0x84b   :  { %v812_v7 = vpack.c.bf16 %v2900_v29, %v2900_v29 }
 0x84d   :  { %v814_v33 = vrot.slane %v812_v7, 1 }
 0x84f   :  { %815 = vrot.lane.b32.xlu2 %v814_v33, %s2592_s17 }
 0x850   :  { %v757_v35 = vpop.permute.xlu1 %756 }
 0x851   :  { %v2905_v38 = vadd.f32 %v2221_v17, %v757_v35 }
 0x853   :  { %v811_v39 = vpack.c.bf16 %v2905_v38, %v2905_v38 }
 0x855   :  { %v834_v40 = vrot.slane %v811_v39, 2 }
 0x857   :  { %835 = vrot.lane.b32.xlu0 %v834_v40, %s2592_s17 }
 0x8a9   :  { %v816_v43 = vpop.permute.xlu2 %815 }
 0x8aa   :  { %2106 = vmatmul.msk.bf16.vlgmr.msra.gmra.mxu0 %vm335_vm0, %v816_v43  ;;  %2108 = vmatmul.msk.bf16.vlgmr.msrb.gmra.mxu2 %vm335_vm0, %v816_v43 }
 0x8ab   :  { %1163 = vmatpush.bf16.msra.mxu0 %v2731_v1  ;;  %1307 = vmatpush.bf16.msrb.mxu2 %v2738_v5 }
 0x8af   :  { %1164 = vmatpush.bf16.msra.mxu0 %v2734_v3  ;;  %1308 = vmatpush.bf16.msrb.mxu2 %v2740_v6 }
 0x8c9   :  { %v2916_v44 = vpop.permute.xlu0 %835 }
 0x8ca   :  { %2107 = vmatmul.msk.bf16.vlgmr.msra.gmra.mxu1 %vm335_vm0, %v2916_v44 }
 0x8cb   :  { %1287 = vmatpush.bf16.msra.mxu1 %v2804_v30 }
 0x8cf   :  { %1288 = vmatpush.bf16.msra.mxu1 %v2807_v4 }
 0x927   :  { %v2922_v45 = vpop.f32.mrf.mxu0 }
 0x92d   :  { %v862_v47 = vpop.f32.mrf.mxu2 }
 0x92e   :  { %v937_v48 = vadd.f32 %v862_v47, %v2767_v19  ;;  %v917_v55 = vadd.f32 %v862_v47, %v2780_v32 }
 0x92f   :  { %v831_v49 = vpop.f32.mrf.mxu0 }
 0x930   :  { %939 = vrot.lane.b32.xlu1 %v937_v48, %s2592_s17  ;;  %v2110_v58 = vmul.f32 -1.442695, %v917_v55 }
 0x932   :  { %2222 = vpow2.f32 %v2110_v58 }
 0x935   :  { %v864_v50 = vpop.f32.mrf.mxu2 }
 0x938   :  { %v2223_v62 = vpop.eup %2222 }
 0x939   :  { %v921_v63 = vadd.f32 1.0, %v2223_v62 }
 0x93b   :  { %v933_v20 = vand.u32 2147483648, %v921_v63  ;;  %vm927_vm12 = vweird.f32 %v921_v63  ;;  %v931_v21 = vand.u32 2147483647, %v921_v63 }
 0x93d   :  { %v934_v24 = vor.u32 1.1754944e-38, %v933_v20  ;;  %vm932_vm15 = vcmp.eq.f32.partialorder %v931_v21, 8.507059e+37 }
 0x947   :  { %v849_v51 = vpop.f32.mrf.mxu1 }
 0x948   :  { %v889_v52 = vadd.f32 %v849_v51, %v2776_v27  ;;  %v867_v56 = vrot.slane %v849_v51, 2 }
 0x94a   :  { %v891_v53 = vrot.slane %v889_v52, 2  ;;  %v869_v59 = vadd.f32 %v867_v56, %v2789_v37 }
 0x94c   :  { %892 = vrot.lane.b32.xlu2 %v891_v53, %s2592_s17  ;;  %v2109_v60 = vmul.f32 -1.442695, %v869_v59 }
 0x94e   :  { %2224 = vpow2.f32 %v2109_v60 }
 0x94f   :  { %v851_v54 = vpop.f32.mrf.mxu1  ;;  %2226 = vrcp.f32 %v921_v63 }
 0x954   :  { %v2225_v0 = vpop.eup %2224 }
 0x955   :  { %v873_v9 = vadd.f32 1.0, %v2225_v0  ;;  %v2227_v10 = vpop.eup %2226 }
 0x956   :  { %v923_v11 = vmul.f32 %v2227_v10, %v921_v63  ;;  %vm928_vm11 = vweird.f32 %v2227_v10 }
 0x957   :  { %2228 = vrcp.f32 %v873_v9  ;;  %vm929_vm13 = vmor %vm927_vm12, %vm928_vm11  ;;  %v885_v26 = vand.u32 2147483648, %v873_v9  ;;  %vm879_vm1 = vweird.f32 %v873_v9  ;;  %v883_v28 = vand.u32 2147483647, %v873_v9 }
 0x958   :  { %v924_v13 = vsub.f32 1.0, %v923_v11 }
 0x959   :  { %v886_v40 = vor.u32 1.1754944e-38, %v885_v26  ;;  %vm884_vm3 = vcmp.eq.f32.partialorder %v883_v28, 8.507059e+37 }
 0x95a   :  { %v925_v15 = vmul.f32 %v2227_v10, %v924_v13 }
 0x95c   :  { %v926_v17 = vadd.f32 %v2227_v10, %v925_v15 }
 0x95d   :  { %v2229_v12 = vpop.eup %2228 }
 0x95e   :  { %v875_v14 = vmul.f32 %v2229_v12, %v873_v9  ;;  %v930_v22 = vsel %vm929_vm13, %v2227_v10, %v926_v17  ;;  %vm880_vm14 = vweird.f32 %v2229_v12 }
 0x95f   :  { %v935_v33 = vsel %vm932_vm15, %v934_v24, %v930_v22  ;;  %vm881_vm2 = vmor %vm879_vm1, %vm880_vm14 }
 0x960   :  { %v876_v16 = vsub.f32 1.0, %v875_v14 }
 0x962   :  { %v877_v18 = vmul.f32 %v2229_v12, %v876_v16 }
 0x964   :  { %v878_v23 = vadd.f32 %v2229_v12, %v877_v18 }
 0x966   :  { %v882_v39 = vsel %vm881_vm2, %v2229_v12, %v878_v23 }
 0x967   :  { %v887_v43 = vsel %vm884_vm3, %v886_v40, %v882_v39 }
 0x9a2   :  { %v940_v7 = vpop.permute.xlu1 %939 }
 0x9a3   :  { %v942_v35 = vmul.f32 %v940_v7, %v935_v33 }
 0x9a5   :  { %944 = vrot.lane.b32.xlu0 %v942_v35, %s2592_s17  ;;  %v2971_v35 = vadd.f32 %v2785_v34, %v2840_v42 }
 0x9a6   :  { %v893_v47 = vpop.permute.xlu2 %892 }
 0x9a7   :  { %v895_v48 = vmul.f32 %v893_v47, %v887_v43 }
 0x9a9   :  { %897 = vrot.lane.b32.xlu1 %v895_v48, %s2592_s17 }
 0xa17   :  { %v945_v49 = vpop.permute.xlu0 %944 }
 0xa18   :  { %v947_v50 = vadd.f32 %v945_v49, %v2780_v32 }
 0xa1a   :  { %2230 = vtanh.f32 %v947_v50 }
 0xa1b   :  { %v898_v51 = vpop.permute.xlu1 %897 }
 0xa1c   :  { %v900_v52 = vadd.f32 %v898_v51, %v2789_v37 }
 0xa1e   :  { %2232 = vtanh.f32 %v900_v52 }
 0xa20   :  { %v2231_v53 = vpop.eup %2230 }
 0xa21   :  { %v950_v54 = vrot.slane %v2231_v53, 6 }
 0xa23   :  { %v952_v55 = vsub.f32 %v2900_v29, %v950_v54 }
 0xa24   :  { %v2233_v56 = vpop.eup %2232 }
 0xa25   :  { %v954_v58 = vrot.slane %v952_v55, 2  ;;  %v903_v59 = vrot.slane %v2233_v56, 2 }
 0xa27   :  { %955 = vrot.lane.b32.xlu2 %v954_v58, %s2600_s4  ;;  %v905_v60 = vsub.f32 %v2905_v38, %v903_v59 }
 0xa29   :  { %v907_v62 = vrot.slane %v905_v60, 6 }
 0xa2b   :  { %908 = vrot.lane.b32.xlu0 %v907_v62, %s2600_s4 }
 0xa81   :  { %v956_v32 = vpop.permute.xlu2 %955 }
 0xa82   :  { %v958_v63 = vmul.f32 %v956_v32, %v935_v33 }
 0xa84   :  { %960 = vrot.lane.b32.xlu1 %v958_v63, %s2589_s23 }
 0xa9d   :  { %v909_v37 = vpop.permute.xlu0 %908 }
 0xa9e   :  { %v911_v0 = vmul.f32 %v909_v37, %v887_v43 }
 0xaa0   :  { %913 = vrot.lane.b32.xlu2 %v911_v0, %s2589_s23 }
 0xaf6   :  { %v961_v9 = vpop.permute.xlu1 %960 }
 0xaf7   :  { %v2940_v10 = vadd.f32 %v2231_v53, %v961_v9 }
 0xaf9   :  { %v965_v11 = vpack.c.bf16 %v2940_v10, %v2940_v10 }
 0xafa   :  { %v914_v12 = vpop.permute.xlu2 %913 }
 0xafb   :  { %v2944_v13 = vadd.f32 %v2233_v56, %v914_v12  ;;  %967 = vrot.lane.b32.xlu0 %v965_v11, %s2592_s17 }
 0xafd   :  { %v964_v14 = vpack.c.bf16 %v2944_v13, %v2944_v13 }
 0xaff   :  { %v986_v15 = vrot.slane %v964_v14, 3 }
 0xb01   :  { %987 = vrot.lane.b32.xlu1 %v986_v15, %s2592_s17 }
 0xb6d   :  { %v968_v16 = vpop.permute.xlu0 %967 }
 0xb6e   :  { %2111 = vmatmul.msk.bf16.vlgmr.msrb.gmra.mxu3 %vm335_vm0, %v968_v16  ;;  %2113 = vmatmul.msk.bf16.vlgmr.msrb.gmra.mxu1 %vm335_vm0, %v968_v16 }
 0xb6f   :  { %1320 = vmatpush.bf16.msrb.mxu3 %v2731_v1  ;;  %1464 = vmatpush.bf16.msrb.mxu1 %v2738_v5 }
 0xb73   :  { %v2954_v17 = vpop.permute.xlu1 %987  ;;  %1321 = vmatpush.bf16.msrb.mxu3 %v2734_v3  ;;  %1465 = vmatpush.bf16.msrb.mxu1 %v2740_v6 }
 0xb74   :  { %2112 = vmatmul.msk.bf16.vlgmr.msrb.gmra.mxu0 %vm335_vm0, %v2954_v17 }
 0xb75   :  { %1444 = vmatpush.bf16.msrb.mxu0 %v2804_v30 }
 0xb79   :  { %1445 = vmatpush.bf16.msrb.mxu0 %v2807_v4 }
 0xbeb   :  { %v1014_v18 = vpop.f32.mrf.mxu1 }
 0xbec   :  { %v1088_v20 = vadd.f32 %v1014_v18, %v2767_v19  ;;  %v1066_v24 = vrot.slane %v1014_v18, 2 }
 0xbee   :  { %v1090_v21 = vrot.slane %v1088_v20, 2  ;;  %v1068_v26 = vadd.f32 %v1066_v24, %v2773_v25 }
 0xbf0   :  { %1091 = vrot.lane.b32.xlu2 %v1090_v21, %s2592_s17  ;;  %v2115_v28 = vmul.f32 -1.442695, %v1068_v26 }
 0xbf1   :  { %v2964_v1 = vpop.f32.mrf.mxu3  ;;  %v1001_v5 = vpop.f32.mrf.mxu0 }
 0xbf2   :  { %v1038_v3 = vadd.f32 %v1001_v5, %v2776_v27  ;;  %2234 = vpow2.f32 %v2115_v28  ;;  %v1018_v40 = vadd.f32 %v1001_v5, %v2971_v35 }
 0xbf3   :  { %v1016_v22 = vpop.f32.mrf.mxu1 }
 0xbf4   :  { %1040 = vrot.lane.b32.xlu0 %v1038_v3, %s2592_s17  ;;  %v2114_v47 = vmul.f32 -1.442695, %v1018_v40 }
 0xbf8   :  { %v2235_v7 = vpop.eup %2234 }
 0xbf9   :  { %v983_v6 = vpop.f32.mrf.mxu3  ;;  %v1003_v23 = vpop.f32.mrf.mxu0  ;;  %v1072_v33 = vadd.f32 1.0, %v2235_v7 }
 0xbfb   :  { %2236 = vrcp.f32 %v1072_v33  ;;  %v1084_v52 = vand.u32 2147483648, %v1072_v33  ;;  %vm1078_vm5 = vweird.f32 %v1072_v33  ;;  %v1082_v53 = vand.u32 2147483647, %v1072_v33 }
 0xbfc   :  { %2238 = vpow2.f32 %v2114_v47 }
 0xbfd   :  { %v1085_v56 = vor.u32 1.1754944e-38, %v1084_v52  ;;  %vm1083_vm7 = vcmp.eq.f32.partialorder %v1082_v53, 8.507059e+37 }
 0xc01   :  { %v2237_v39 = vpop.eup %2236 }
 0xc02   :  { %v1074_v43 = vmul.f32 %v2237_v39, %v1072_v33  ;;  %v2239_v50 = vpop.eup %2238  ;;  %vm1079_vm4 = vweird.f32 %v2237_v39 }
 0xc03   :  { %v1022_v54 = vadd.f32 1.0, %v2239_v50  ;;  %vm1080_vm6 = vmor %vm1078_vm5, %vm1079_vm4 }
 0xc04   :  { %v1075_v48 = vsub.f32 1.0, %v1074_v43 }
 0xc05   :  { %2240 = vrcp.f32 %v1022_v54  ;;  %v1034_v37 = vand.u32 2147483648, %v1022_v54  ;;  %vm1028_vm9 = vweird.f32 %v1022_v54  ;;  %v1032_v0 = vand.u32 2147483647, %v1022_v54 }
 0xc06   :  { %v1076_v49 = vmul.f32 %v2237_v39, %v1075_v48 }
 0xc07   :  { %v1035_v11 = vor.u32 1.1754944e-38, %v1034_v37  ;;  %vm1033_vm11 = vcmp.eq.f32.partialorder %v1032_v0, 8.507059e+37 }
 0xc08   :  { %v1077_v51 = vadd.f32 %v2237_v39, %v1076_v49 }
 0xc0a   :  { %v1081_v55 = vsel %vm1080_vm6, %v2237_v39, %v1077_v51 }
 0xc0b   :  { %v1086_v34 = vsel %vm1083_vm7, %v1085_v56, %v1081_v55  ;;  %v2241_v59 = vpop.eup %2240  ;;  %v2332_v55 = vld [vmem:[#allocation11 + $0x8] sm:$0xff]  ;;  %v2333_v56 = vld [vmem:[#allocation11] sm:$0xff] }
 0xc0c   :  { %v1024_v60 = vmul.f32 %v2241_v59, %v1022_v54  ;;  %vm1029_vm8 = vweird.f32 %v2241_v59 }
 0xc0d   :  { %vm1030_vm10 = vmor %vm1028_vm9, %vm1029_vm8 }
 0xc0e   :  { %v1025_v62 = vsub.f32 1.0, %v1024_v60 }
 0xc10   :  { %v1026_v32 = vmul.f32 %v2241_v59, %v1025_v62 }
 0xc12   :  { %v1027_v63 = vadd.f32 %v2241_v59, %v1026_v32 }
 0xc14   :  { %v1031_v9 = vsel %vm1030_vm10, %v2241_v59, %v1027_v63 }
 0xc15   :  { %v1036_v14 = vsel %vm1033_vm11, %v1035_v11, %v1031_v9 }
 0xc4a   :  { %v1092_v42 = vpop.permute.xlu2 %1091 }
 0xc4b   :  { %v1094_v58 = vmul.f32 %v1092_v42, %v1086_v34 }
 0xc4d   :  { %1096 = vrot.lane.b32.xlu1 %v1094_v58, %s2592_s17 }
 0xc66   :  { %v1041_v12 = vpop.permute.xlu0 %1040 }
 0xc67   :  { %v1043_v15 = vmul.f32 %v1041_v12, %v1036_v14 }
 0xc69   :  { %1045 = vrot.lane.b32.xlu2 %v1043_v15, %s2592_s17 }
 0xcbf   :  { %v1097_v16 = vpop.permute.xlu1 %1096 }
 0xcc0   :  { %v1099_v18 = vadd.f32 %v1097_v16, %v2773_v25 }
 0xcc2   :  { %2242 = vtanh.f32 %v1099_v18 }
 0xcc3   :  { %v1046_v20 = vpop.permute.xlu2 %1045 }
 0xcc4   :  { %v1048_v21 = vadd.f32 %v1046_v20, %v2971_v35 }
 0xcc6   :  { %2244 = vtanh.f32 %v1048_v21 }
 0xcc8   :  { %v2243_v5 = vpop.eup %2242 }
 0xcc9   :  { %v1102_v3 = vrot.slane %v2243_v5, 6 }
 0xccb   :  { %v1104_v22 = vsub.f32 %v2940_v10, %v1102_v3 }
 0xccc   :  { %v2245_v6 = vpop.eup %2244 }
 0xccd   :  { %v1106_v23 = vrot.slane %v1104_v22, 2  ;;  %v1051_v24 = vrot.slane %v2245_v6, 2 }
 0xccf   :  { %1107 = vrot.lane.b32.xlu0 %v1106_v23, %s2600_s4  ;;  %v1053_v26 = vsub.f32 %v2944_v13, %v1051_v24 }
 0xcd1   :  { %v1055_v28 = vrot.slane %v1053_v26, 6 }
 0xcd3   :  { %1056 = vrot.lane.b32.xlu1 %v1055_v28, %s2600_s4 }
 0xd41   :  { %v1108_v7 = vpop.permute.xlu0 %1107 }
 0xd42   :  { %v1110_v33 = vmul.f32 %v1108_v7, %v1086_v34 }
 0xd44   :  { %1112 = vrot.lane.b32.xlu2 %v1110_v33, %s2589_s23 }
 0xd45   :  { %v1057_v39 = vpop.permute.xlu1 %1056 }
 0xd46   :  { %v1059_v40 = vmul.f32 %v1057_v39, %v1036_v14 }
 0xd48   :  { %1061 = vrot.lane.b32.xlu0 %v1059_v40, %s2589_s23 }
 0xd9e   :  { %v1113_v43 = vpop.permute.xlu2 %1112 }
 0xd9f   :  { %v2984_v47 = vadd.f32 %v2243_v5, %v1113_v43 }
 0xda1   :  { %v1117_v48 = vpack.c.bf16 %v2984_v47, %v2984_v47 }
 0xda3   :  { %v1119_v49 = vrot.slane %v1117_v48, 3 }
 0xda5   :  { %1120 = vrot.lane.b32.xlu1 %v1119_v49, %s2592_s17 }
 0xdba   :  { %v1062_v50 = vpop.permute.xlu0 %1061 }
 0xdbb   :  { %v2989_v51 = vadd.f32 %v2245_v6, %v1062_v50 }
 0xdbd   :  { %v1116_v52 = vpack.c.bf16 %v2989_v51, %v2989_v51 }
 0xdbf   :  { %1139 = vrot.lane.b32.xlu2 %v1116_v52, %s2592_s17 }
 0xe17   :  { %v1121_v53 = vpop.permute.xlu1 %1120 }
 0xe18   :  { %2116 = vmatmul.msk.bf16.vlgmr.msra.gmra.mxu2 %vm335_vm0, %v1121_v53  ;;  %2118 = vmatmul.msk.bf16.vlgmr.msra.gmra.mxu0 %vm335_vm0, %v1121_v53 }
 0xe19   :  { %v2996_v54 = vpop.permute.xlu2 %1139  ;;  %1477 = vmatpush.bf16.msra.mxu2 %v2332_v55 }
 0xe1a   :  { %2117 = vmatmul.msk.bf16.vlgmr.msra.gmra.mxu3 %vm335_vm0, %v2996_v54 }
 0xe1b   :  { %1596 = vmatpush.bf16.msra.mxu3 %v2804_v30 }
 0xe1d   :  { %1478 = vmatpush.bf16.msra.mxu2 %v2333_v56 }
 0xe1f   :  { %1597 = vmatpush.bf16.msra.mxu3 %v2807_v4 }
 0xe95   :  { %v1166_v34 = vpop.f32.mrf.mxu0 }
 0xe96   :  { %v1244_v42 = vadd.f32 %v1166_v34, %v2767_v19  ;;  %v1222_v0 = vrot.slane %v1166_v34, 4 }
 0xe98   :  { %v1246_v58 = vrot.slane %v1244_v42, 4  ;;  %v1224_v4 = vadd.f32 %v1222_v0, %v2773_v25 }
 0xe9a   :  { %1247 = vrot.lane.b32.xlu0 %v1246_v58, %s2592_s17  ;;  %v2120_v9 = vmul.f32 -1.442695, %v1224_v4 }
 0xe9b   :  { %v3004_v59 = vpop.f32.mrf.mxu2 }
 0xe9c   :  { %2246 = vpow2.f32 %v2120_v9 }
 0xe9d   :  { %v1153_v60 = vpop.f32.mrf.mxu3  ;;  %v1168_v62 = vpop.f32.mrf.mxu0 }
 0xe9e   :  { %v1193_v32 = vadd.f32 %v1153_v60, %v2776_v27  ;;  %v1171_v11 = vrot.slane %v1153_v60, 6 }
 0xea0   :  { %v1195_v63 = vrot.slane %v1193_v32, 6  ;;  %v1173_v12 = vadd.f32 %v1171_v11, %v2971_v35 }
 0xea2   :  { %1196 = vrot.lane.b32.xlu1 %v1195_v63, %s2592_s17  ;;  %v2119_v14 = vmul.f32 -1.442695, %v1173_v12  ;;  %v2247_v15 = vpop.eup %2246 }
 0xea3   :  { %v1136_v30 = vpop.f32.mrf.mxu2  ;;  %v1228_v16 = vadd.f32 1.0, %v2247_v15 }
 0xea4   :  { %2248 = vpow2.f32 %v2119_v14 }
 0xea5   :  { %v1155_v37 = vpop.f32.mrf.mxu3  ;;  %2250 = vrcp.f32 %v1228_v16  ;;  %v1240_v28 = vand.u32 2147483648, %v1228_v16  ;;  %vm1234_vm13 = vweird.f32 %v1228_v16  ;;  %v1238_v7 = vand.u32 2147483647, %v1228_v16 }
 0xea7   :  { %v1241_v40 = vor.u32 1.1754944e-38, %v1240_v28  ;;  %vm1239_vm15 = vcmp.eq.f32.partialorder %v1238_v7, 8.507059e+37 }
 0xeaa   :  { %v2249_v18 = vpop.eup %2248 }
 0xeab   :  { %v1177_v20 = vadd.f32 1.0, %v2249_v18  ;;  %v2251_v21 = vpop.eup %2250 }
 0xeac   :  { %v1230_v5 = vmul.f32 %v2251_v21, %v1228_v16  ;;  %vm1235_vm12 = vweird.f32 %v2251_v21 }
 0xead   :  { %2252 = vrcp.f32 %v1177_v20  ;;  %vm1236_vm14 = vmor %vm1234_vm13, %vm1235_vm12  ;;  %v1189_v52 = vand.u32 2147483648, %v1177_v20  ;;  %vm1183_vm2 = vweird.f32 %v1177_v20  ;;  %v1187_v53 = vand.u32 2147483647, %v1177_v20 }
 0xeae   :  { %v1231_v3 = vsub.f32 1.0, %v1230_v5 }
 0xeaf   :  { %v1190_v56 = vor.u32 1.1754944e-38, %v1189_v52  ;;  %vm1188_vm4 = vcmp.eq.f32.partialorder %v1187_v53, 8.507059e+37 }
 0xeb0   :  { %v1232_v6 = vmul.f32 %v2251_v21, %v1231_v3 }
 0xeb2   :  { %v1233_v24 = vadd.f32 %v2251_v21, %v1232_v6 }
 0xeb3   :  { %v2253_v22 = vpop.eup %2252 }
 0xeb4   :  { %v1179_v23 = vmul.f32 %v2253_v22, %v1177_v20  ;;  %v1237_v33 = vsel %vm1236_vm14, %v2251_v21, %v1233_v24  ;;  %vm1184_vm1 = vweird.f32 %v2253_v22 }
 0xeb5   :  { %v1242_v48 = vsel %vm1239_vm15, %v1241_v40, %v1237_v33  ;;  %vm1185_vm3 = vmor %vm1183_vm2, %vm1184_vm1 }
 0xeb6   :  { %v1180_v26 = vsub.f32 1.0, %v1179_v23 }
 0xeb8   :  { %v1181_v39 = vmul.f32 %v2253_v22, %v1180_v26 }
 0xeba   :  { %v1182_v50 = vadd.f32 %v2253_v22, %v1181_v39 }
 0xebc   :  { %v1186_v55 = vsel %vm1185_vm3, %v2253_v22, %v1182_v50 }
 0xebd   :  { %v1191_v42 = vsel %vm1188_vm4, %v1190_v56, %v1186_v55 }
 0xf0c   :  { %v1248_v43 = vpop.permute.xlu0 %1247 }
 0xf0d   :  { %v1250_v49 = vmul.f32 %v1248_v43, %v1242_v48 }
 0xf0f   :  { %1252 = vrot.lane.b32.xlu2 %v1250_v49, %s2592_s17 }
 0xf14   :  { %v1197_v34 = vpop.permute.xlu1 %1196 }
 0xf15   :  { %v1199_v58 = vmul.f32 %v1197_v34, %v1191_v42 }
 0xf17   :  { %1201 = vrot.lane.b32.xlu0 %v1199_v58, %s2592_s17 }
 0xf69   :  { %v1253_v60 = vpop.permute.xlu2 %1252 }
 0xf6a   :  { %v1255_v62 = vadd.f32 %v1253_v60, %v2773_v25 }
 0xf6c   :  { %2254 = vtanh.f32 %v1255_v62 }
 0xf72   :  { %v2255_v32 = vpop.eup %2254 }
 0xf73   :  { %v1258_v63 = vrot.slane %v2255_v32, 6 }
 0xf75   :  { %v1260_v30 = vsub.f32 %v2984_v47, %v1258_v63 }
 0xf77   :  { %v1262_v37 = vrot.slane %v1260_v30, 2 }
 0xf79   :  { %1263 = vrot.lane.b32.xlu1 %v1262_v37, %s2600_s4 }
 0xf89   :  { %v1202_v0 = vpop.permute.xlu0 %1201 }
 0xf8a   :  { %v1204_v4 = vadd.f32 %v1202_v0, %v2971_v35 }
 0xf8c   :  { %2256 = vtanh.f32 %v1204_v4 }
 0xf92   :  { %v2257_v9 = vpop.eup %2256 }
 0xf93   :  { %v1207_v11 = vrot.slane %v2257_v9, 2 }
 0xf95   :  { %v1209_v12 = vsub.f32 %v2989_v51, %v1207_v11 }
 0xf97   :  { %v1211_v14 = vrot.slane %v1209_v12, 6 }
 0xf99   :  { %1212 = vrot.lane.b32.xlu2 %v1211_v14, %s2600_s4 }
 0xfeb   :  { %v1264_v15 = vpop.permute.xlu1 %1263 }
 0xfec   :  { %v1266_v16 = vmul.f32 %v1264_v15, %v1242_v48 }
 0xfee   :  { %1268 = vrot.lane.b32.xlu0 %v1266_v16, %s2589_s23 }
 0xff3   :  { %v1213_v18 = vpop.permute.xlu2 %1212 }
 0xff4   :  { %v1215_v20 = vmul.f32 %v1213_v18, %v1191_v42 }
 0xff6   :  { %1217 = vrot.lane.b32.xlu1 %v1215_v20, %s2589_s23 }
0x1060   :  { %v1269_v21 = vpop.permute.xlu0 %1268 }
0x1061   :  { %v3020_v5 = vadd.f32 %v2255_v32, %v1269_v21 }
0x1063   :  { %v1273_v3 = vpack.c.bf16 %v3020_v5, %v3020_v5 }
0x1065   :  { %v1275_v22 = vrot.slane %v1273_v3, 2 }
0x1067   :  { %1276 = vrot.lane.b32.xlu2 %v1275_v22, %s2592_s17 }
0x1068   :  { %v1218_v6 = vpop.permute.xlu1 %1217 }
0x1069   :  { %v3025_v23 = vadd.f32 %v2257_v9, %v1218_v6 }
0x106b   :  { %v1272_v24 = vpack.c.bf16 %v3025_v23, %v3025_v23 }
0x106d   :  { %v1295_v26 = vrot.slane %v1272_v24, 1 }
0x106f   :  { %1296 = vrot.lane.b32.xlu0 %v1295_v26, %s2592_s17 }
0x10c1   :  { %v1277_v28 = vpop.permute.xlu2 %1276 }
0x10c2   :  { %2121 = vmatmul.msk.bf16.vlgmr.msra.gmra.mxu1 %vm335_vm0, %v1277_v28  ;;  %2123 = vmatmul.msk.bf16.vlgmr.msrb.gmra.mxu3 %vm335_vm0, %v1277_v28 }
0x10e1   :  { %v3032_v7 = vpop.permute.xlu0 %1296 }
0x10e2   :  { %2122 = vmatmul.msk.bf16.vlgmr.msrb.gmra.mxu2 %vm335_vm0, %v3032_v7 }
0x113f   :  { %v3036_v33 = vpop.f32.mrf.mxu1 }
0x1145   :  { %v1323_v39 = vpop.f32.mrf.mxu3 }
0x1146   :  { %v1401_v40 = vadd.f32 %v1323_v39, %v2767_v19  ;;  %v1379_v56 = vrot.slane %v1323_v39, 6 }
0x1147   :  { %v1292_v43 = vpop.f32.mrf.mxu1 }
0x1148   :  { %v1403_v48 = vrot.slane %v1401_v40, 6  ;;  %v1381_v34 = vadd.f32 %v1379_v56, %v2773_v25 }
0x114a   :  { %1404 = vrot.lane.b32.xlu1 %v1403_v48, %s2592_s17  ;;  %v2125_v42 = vmul.f32 -1.442695, %v1381_v34 }
0x114c   :  { %2258 = vpow2.f32 %v2125_v42 }
0x114d   :  { %v1325_v49 = vpop.f32.mrf.mxu3 }
0x1152   :  { %v2259_v32 = vpop.eup %2258 }
0x1153   :  { %v1385_v63 = vadd.f32 1.0, %v2259_v32 }
0x1155   :  { %v1397_v18 = vand.u32 2147483648, %v1385_v63  ;;  %vm1391_vm6 = vweird.f32 %v1385_v63  ;;  %v1395_v20 = vand.u32 2147483647, %v1385_v63 }
0x1157   :  { %v1398_v22 = vor.u32 1.1754944e-38, %v1397_v18  ;;  %vm1396_vm8 = vcmp.eq.f32.partialorder %v1395_v20, 8.507059e+37 }
0x1165   :  { %v1310_v50 = vpop.f32.mrf.mxu2 }
0x1166   :  { %v1350_v52 = vadd.f32 %v1310_v50, %v2776_v27  ;;  %v1328_v58 = vrot.slane %v1310_v50, 4 }
0x1168   :  { %v1352_v53 = vrot.slane %v1350_v52, 4  ;;  %v1330_v60 = vadd.f32 %v1328_v58, %v2971_v35 }
0x116a   :  { %1353 = vrot.lane.b32.xlu2 %v1352_v53, %s2592_s17  ;;  %v2124_v62 = vmul.f32 -1.442695, %v1330_v60 }
0x116c   :  { %2260 = vpow2.f32 %v2124_v62 }
0x116d   :  { %v1312_v55 = vpop.f32.mrf.mxu2  ;;  %2262 = vrcp.f32 %v1385_v63 }
0x1172   :  { %v2261_v30 = vpop.eup %2260 }
0x1173   :  { %v1334_v37 = vadd.f32 1.0, %v2261_v30  ;;  %v2263_v0 = vpop.eup %2262 }
0x1174   :  { %v1387_v4 = vmul.f32 %v2263_v0, %v1385_v63  ;;  %vm1392_vm5 = vweird.f32 %v2263_v0 }
0x1175   :  { %2264 = vrcp.f32 %v1334_v37  ;;  %vm1393_vm7 = vmor %vm1391_vm6, %vm1392_vm5  ;;  %v1346_v39 = vand.u32 2147483648, %v1334_v37  ;;  %vm1340_vm10 = vweird.f32 %v1334_v37  ;;  %v1344_v40 = vand.u32 2147483647, %v1334_v37 }
0x1176   :  { %v1388_v9 = vsub.f32 1.0, %v1387_v4  ;;  %vm1644_vm6 = vcmask 517120  }
0x1177   :  { %v1347_v48 = vor.u32 1.1754944e-38, %v1346_v39  ;;  %vm1345_vm12 = vcmp.eq.f32.partialorder %v1344_v40, 8.507059e+37 }
0x1178   :  { %v1389_v12 = vmul.f32 %v2263_v0, %v1388_v9 }
0x117a   :  { %v1390_v15 = vadd.f32 %v2263_v0, %v1389_v12 }
0x117b   :  { %v2265_v11 = vpop.eup %2264 }
0x117c   :  { %v1336_v14 = vmul.f32 %v2265_v11, %v1334_v37  ;;  %v1394_v21 = vsel %vm1393_vm7, %v2263_v0, %v1390_v15  ;;  %vm1341_vm9 = vweird.f32 %v2265_v11  ;;  %vm1607_vm7 = vcmask 261126  }
0x117d   :  { %v1399_v24 = vsel %vm1396_vm8, %v1398_v22, %v1394_v21  ;;  %vm1342_vm11 = vmor %vm1340_vm10, %vm1341_vm9  ;;  %v3064_v22 = vld [vmem:[#allocation13 + $0x8] sm:$0xff]  ;;  %vm1989_vm8 = vcmask 517376  }
0x117e   :  { %v1337_v16 = vsub.f32 1.0, %v1336_v14  ;;  %1634 = vmatpush.bf16.msra.mxu0 %v3064_v22  ;;  %1675 = vmatpush.bf16.msrb.mxu2 %v3064_v22 }
0x117f   :  { %1655 = vmatpush.bf16.msra.mxu1 %v3064_v22  ;;  %1695 = vmatpush.bf16.msrb.mxu3 %v3064_v22 }
0x1180   :  { %v1338_v3 = vmul.f32 %v2265_v11, %v1337_v16 }
0x1182   :  { %v1339_v28 = vadd.f32 %v2265_v11, %v1338_v3 }
0x1184   :  { %v1343_v43 = vsel %vm1342_vm11, %v2265_v11, %v1339_v28 }
0x1185   :  { %v1348_v49 = vsel %vm1345_vm12, %v1347_v48, %v1343_v43 }
0x11bc   :  { %v1405_v6 = vpop.permute.xlu1 %1404 }
0x11bd   :  { %v1407_v26 = vmul.f32 %v1405_v6, %v1399_v24  ;;  %v3068_v6 = vld [vmem:[#allocation13] sm:$0xff] }
0x11be   :  { %1635 = vmatpush.bf16.msra.mxu0 %v3068_v6  ;;  %1676 = vmatpush.bf16.msrb.mxu2 %v3068_v6 }
0x11bf   :  { %1409 = vrot.lane.b32.xlu0 %v1407_v26, %s2592_s17  ;;  %1656 = vmatpush.bf16.msra.mxu1 %v3068_v6 }
0x11c0   :  { %1696 = vmatpush.bf16.msrb.mxu3 %v3068_v6 }
0x11c4   :  { %v1354_v50 = vpop.permute.xlu2 %1353 }
0x11c5   :  { %v1356_v52 = vmul.f32 %v1354_v50, %v1348_v49 }
0x11c7   :  { %1358 = vrot.lane.b32.xlu1 %v1356_v52, %s2592_s17 }
0x1231   :  { %v1410_v53 = vpop.permute.xlu0 %1409 }
0x1232   :  { %v1412_v55 = vadd.f32 %v1410_v53, %v2773_v25 }
0x1234   :  { %2266 = vtanh.f32 %v1412_v55 }
0x1239   :  { %v1359_v56 = vpop.permute.xlu1 %1358 }
0x123a   :  { %v2267_v34 = vpop.eup %2266  ;;  %v1361_v42 = vadd.f32 %v1359_v56, %v2971_v35 }
0x123b   :  { %v1415_v58 = vrot.slane %v2267_v34, 6 }
0x123c   :  { %2268 = vtanh.f32 %v1361_v42 }
0x123d   :  { %v1417_v60 = vsub.f32 %v3020_v5, %v1415_v58 }
0x123f   :  { %v1419_v62 = vrot.slane %v1417_v60, 2 }
0x1241   :  { %1420 = vrot.lane.b32.xlu2 %v1419_v62, %s2600_s4 }
0x1242   :  { %v2269_v32 = vpop.eup %2268 }
0x1243   :  { %v1364_v63 = vrot.slane %v2269_v32, 2 }
0x1245   :  { %v1366_v30 = vsub.f32 %v3025_v23, %v1364_v63 }
0x1247   :  { %v1368_v37 = vrot.slane %v1366_v30, 6 }
0x1249   :  { %1369 = vrot.lane.b32.xlu0 %v1368_v37, %s2600_s4 }
0x129b   :  { %v1421_v0 = vpop.permute.xlu2 %1420 }
0x129c   :  { %v1423_v4 = vmul.f32 %v1421_v0, %v1399_v24 }
0x129e   :  { %1425 = vrot.lane.b32.xlu1 %v1423_v4, %s2589_s23 }
0x12bb   :  { %v1370_v9 = vpop.permute.xlu0 %1369 }
0x12bc   :  { %v1372_v11 = vmul.f32 %v1370_v9, %v1348_v49 }
0x12be   :  { %1374 = vrot.lane.b32.xlu2 %v1372_v11, %s2589_s23 }
0x1310   :  { %v1426_v12 = vpop.permute.xlu1 %1425 }
0x1311   :  { %v3054_v14 = vadd.f32 %v2267_v34, %v1426_v12 }
0x1313   :  { %v1430_v15 = vpack.c.bf16 %v3054_v14, %v3054_v14 }
0x1315   :  { %v1432_v16 = vrot.slane %v1430_v15, 1 }
0x1317   :  { %1433 = vrot.lane.b32.xlu0 %v1432_v16, %s2592_s17 }
0x1318   :  { %v1375_v18 = vpop.permute.xlu2 %1374 }
0x1319   :  { %v3059_v20 = vadd.f32 %v2269_v32, %v1375_v18 }
0x131b   :  { %v1429_v21 = vpack.c.bf16 %v3059_v20, %v3059_v20 }
0x131d   :  { %v1452_v3 = vrot.slane %v1429_v21, 2 }
0x131f   :  { %1453 = vrot.lane.b32.xlu1 %v1452_v3, %s2592_s17 }
0x1389   :  { %v1434_v24 = vpop.permute.xlu0 %1433 }
0x138a   :  { %2126 = vmatmul.msk.bf16.vlgmr.msrb.gmra.mxu0 %vm335_vm0, %v1434_v24  ;;  %2128 = vmatmul.msk.bf16.vlgmr.msra.gmra.mxu2 %vm335_vm0, %v1434_v24 }
0x138b   :  { %1715 = vmatpush.bf16.msrb.mxu0 %v3064_v22  ;;  %1755 = vmatpush.bf16.msra.mxu2 %v3064_v22 }
0x138f   :  { %1716 = vmatpush.bf16.msrb.mxu0 %v3068_v6  ;;  %1756 = vmatpush.bf16.msra.mxu2 %v3068_v6 }
0x1391   :  { %v1454_v26 = vpop.permute.xlu1 %1453 }
0x1392   :  { %2127 = vmatmul.msk.bf16.vlgmr.msrb.gmra.mxu1 %vm335_vm0, %v1454_v26 }
0x1393   :  { %1735 = vmatpush.bf16.msrb.mxu1 %v3064_v22 }
0x1397   :  { %1736 = vmatpush.bf16.msrb.mxu1 %v3068_v6 }
0x139a   :  { %2140 = vmatmul.msk.bf16.vlgmr.msra.gmra.mxu0 %vm335_vm0, %v2830_v41  ;;  %2142 = vmatmul.msk.bf16.vlgmr.msrb.gmra.mxu2 %vm335_vm0, %v2916_v44 }
0x13a2   :  { %2141 = vmatmul.msk.bf16.vlgmr.msra.gmra.mxu1 %vm335_vm0, %v2876_v2 }
0x13aa   :  { %2144 = vmatmul.msk.bf16.vlgmr.msrb.gmra.mxu0 %vm335_vm0, %v2996_v54  ;;  %2146 = vmatmul.msk.bf16.vlgmr.msra.gmra.mxu2 %vm335_vm0, %v1454_v26 }
0x13b2   :  { %2145 = vmatmul.msk.bf16.vlgmr.msrb.gmra.mxu1 %vm335_vm0, %v3032_v7 }
0x1407   :  { %v1447_v28 = vpop.f32.mrf.mxu0 }
0x140d   :  { %v1480_v39 = vpop.f32.mrf.mxu2 }
0x140e   :  { %v1555_v40 = vadd.f32 %v1480_v39, %v2767_v19  ;;  %v1535_v62 = vadd.f32 %v1480_v39, %v2773_v25 }
0x140f   :  { %v1449_v43 = vpop.f32.mrf.mxu0  ;;  %v1467_v41 = vpop.f32.mrf.mxu1 }
0x1410   :  { %v1507_v48 = vadd.f32 %v1467_v41, %v2776_v27  ;;  %1557 = vrot.lane.b32.xlu2 %v1555_v40, %s2592_s17  ;;  %v2130_v32 = vmul.f32 -1.442695, %v1535_v62  ;;  %v1485_v37 = vrot.slane %v1467_v41, 2 }
0x1412   :  { %v1509_v44 = vrot.slane %v1507_v48, 2  ;;  %2270 = vpow2.f32 %v2130_v32  ;;  %v1487_v4 = vadd.f32 %v1485_v37, %v2971_v35 }
0x1414   :  { %1510 = vrot.lane.b32.xlu0 %v1509_v44, %s2592_s17  ;;  %v2129_v11 = vmul.f32 -1.442695, %v1487_v4 }
0x1415   :  { %v1482_v2 = vpop.f32.mrf.mxu2 }
0x1417   :  { %v1469_v54 = vpop.f32.mrf.mxu1  ;;  %v3100_v49 = vpop.f32.mrf.mxu0 }
0x1418   :  { %v2271_v63 = vpop.eup %2270 }
0x1419   :  { %v1539_v30 = vadd.f32 1.0, %v2271_v63 }
0x141b   :  { %2272 = vrcp.f32 %v1539_v30  ;;  %v1551_v21 = vand.u32 2147483648, %v1539_v30  ;;  %vm1545_vm14 = vweird.f32 %v1539_v30  ;;  %v1549_v3 = vand.u32 2147483647, %v1539_v30 }
0x141c   :  { %2274 = vpow2.f32 %v2129_v11 }
0x141d   :  { %v3102_v50 = vpop.f32.mrf.mxu2  ;;  %vm1550_vm1 = vcmp.eq.f32.partialorder %v1549_v3, 8.507059e+37 }
0x141f   :  { %v1639_v7 = vpop.f32.mrf.mxu0  ;;  %v1658_v52 = vpop.f32.mrf.mxu1 }
0x1420   :  { %v3104_v53 = vadd.f32 %v1658_v52, %v1447_v28  ;;  %v1552_v28 = vor.u32 1.1754944e-38, %v1551_v21 }
0x1421   :  { %v2273_v0 = vpop.eup %2272 }
0x1422   :  { %v1541_v9 = vmul.f32 %v2273_v0, %v1539_v30  ;;  %v2275_v16 = vpop.eup %2274  ;;  %vm1546_vm13 = vweird.f32 %v2273_v0 }
0x1423   :  { %v1491_v24 = vadd.f32 1.0, %v2275_v16  ;;  %vm1547_vm15 = vmor %vm1545_vm14, %vm1546_vm13 }
0x1424   :  { %v1542_v12 = vsub.f32 1.0, %v1541_v9 }
0x1425   :  { %v1680_v19 = vpop.f32.mrf.mxu2  ;;  %2276 = vrcp.f32 %v1491_v24  ;;  %v1503_v7 = vand.u32 2147483648, %v1491_v24  ;;  %vm1497_vm3 = vweird.f32 %v1491_v24  ;;  %v1501_v52 = vand.u32 2147483647, %v1491_v24 }
0x1426   :  { %v1543_v15 = vmul.f32 %v2273_v0, %v1542_v12 }
0x1427   :  { %v1660_v55 = vpop.f32.mrf.mxu1  ;;  %v3106_v56 = vpop.f32.mrf.mxu0  ;;  %vm1502_vm5 = vcmp.eq.f32.partialorder %v1501_v52, 8.507059e+37 }
0x1428   :  { %v1544_v18 = vadd.f32 %v2273_v0, %v1543_v15  ;;  %v1504_v55 = vor.u32 1.1754944e-38, %v1503_v7  ;;  %v1719_v3 = vadd.f32 %v3106_v56, %v2964_v1 }
0x142a   :  { %v1548_v26 = vsel %vm1547_vm15, %v2273_v0, %v1544_v18 }
0x142b   :  { %v1553_v39 = vsel %vm1550_vm1, %v1552_v28, %v1548_v26  ;;  %v2277_v41 = vpop.eup %2276 }
0x142c   :  { %v1493_v48 = vmul.f32 %v2277_v41, %v1491_v24  ;;  %vm1498_vm2 = vweird.f32 %v2277_v41  ;;  %v3129_v24 = vld [vmem:[%s3255_s12] ss:$0 sm:$0xff]  ;;  %s2601_s12 = smov [#allocation17]  }
0x142d   :  { %v3108_v27 = vpop.f32.mrf.mxu2  ;;  %vm1499_vm4 = vmor %vm1497_vm3, %vm1498_vm2  ;;  %v1722_v26 = vadd.f32 %v3129_v24, %v1719_v3 }
0x142e   :  { %v1494_v44 = vsub.f32 1.0, %v1493_v48 }
0x142f   :  { %v1720_v34 = vpop.f32.mrf.mxu0  ;;  %v3110_v42 = vpop.f32.mrf.mxu1 }
0x1430   :  { %v1495_v2 = vmul.f32 %v2277_v41, %v1494_v44  ;;  %v1662_v44 = vadd.f32 %v3129_v24, %v3104_v53  ;;  %v1739_v7 = vadd.f32 %v3110_v42, %v2922_v45 }
0x1432   :  { %v1496_v54 = vadd.f32 %v2277_v41, %v1495_v2 }
0x1434   :  { %v1500_v19 = vsel %vm1499_vm4, %v2277_v41, %v1496_v54 }
0x1435   :  { %v1760_v58 = vpop.f32.mrf.mxu2 }
0x1436   :  { %v1505_v58 = vsel %vm1502_vm5, %v1504_v55, %v1500_v19  ;;  %v1742_v19 = vadd.f32 %v3129_v24, %v1739_v7 }
0x1437   :  { %v1740_v60 = vpop.f32.mrf.mxu1 }
0x146a   :  { %v1558_v40 = vpop.permute.xlu2 %1557 }
0x146b   :  { %v1560_v43 = vmul.f32 %v1558_v40, %v1553_v39 }
0x146d   :  { %1562 = vrot.lane.b32.xlu1 %v1560_v43, %s2592_s17 }
0x1486   :  { %v1511_v34 = vpop.permute.xlu0 %1510 }
0x1487   :  { %v1513_v60 = vmul.f32 %v1511_v34, %v1505_v58 }
0x1489   :  { %1515 = vrot.lane.b32.xlu2 %v1513_v60, %s2592_s17 }
0x14df   :  { %v1563_v62 = vpop.permute.xlu1 %1562 }
0x14e0   :  { %v1565_v32 = vadd.f32 %v1563_v62, %v2773_v25  ;;  %v1679_v62 = vadd.f32 %v3102_v50, %v3036_v33  ;;  %v1840_v33 = vrot.slane %v2865_v61, 2 }
0x14e2   :  { %2278 = vtanh.f32 %v1565_v32  ;;  %v1682_v42 = vadd.f32 %v3129_v24, %v1679_v62  ;;  %v1759_v32 = vadd.f32 %v3108_v27, %v2882_v8  ;;  %v1874_v8 = vrot.slane %v3020_v5, 4 }
0x14e3   :  { %v1516_v63 = vpop.permute.xlu2 %1515  ;;  %v1914_v27 = vrot.slane %v3025_v23, 2 }
0x14e4   :  { %v1518_v30 = vadd.f32 %v1516_v63, %v2971_v35  ;;  %v1762_v63 = vadd.f32 %v3129_v24, %v1759_v32 }
0x14e6   :  { %2280 = vtanh.f32 %v1518_v30 }
0x14e7   :  { %2282 = vtanh.f32 %v1722_v26 }
0x14e8   :  { %v2279_v37 = vpop.eup %2278  ;;  %2284 = vtanh.f32 %v1662_v44  ;;  %v1937_v44 = vrot.slane %v3059_v20, 4 }
0x14e9   :  { %v1568_v0 = vrot.slane %v2279_v37, 6  ;;  %2286 = vtanh.f32 %v1742_v19 }
0x14ea   :  { %2288 = vtanh.f32 %v1682_v42 }
0x14eb   :  { %v1570_v4 = vsub.f32 %v3054_v14, %v1568_v0  ;;  %2290 = vtanh.f32 %v1762_v63 }
0x14ec   :  { %v2281_v9 = vpop.eup %2280 }
0x14ed   :  { %v1572_v11 = vrot.slane %v1570_v4, 2  ;;  %v1521_v12 = vrot.slane %v2281_v9, 2  ;;  %v2283_v28 = vpop.eup %2282 }
0x14ee   :  { %v2285_v55 = vpop.eup %2284 }
0x14ef   :  { %1573 = vrot.lane.b32.xlu0 %v1572_v11, %s2600_s4  ;;  %v1523_v15 = vsub.f32 %v3059_v20, %v1521_v12  ;;  %v1948_v11 = vrot.slane %v2860_v57, 4 }
0x14f1   :  { %v1525_v16 = vrot.slane %v1523_v15, 6 }
0x14f3   :  { %1526 = vrot.lane.b32.xlu1 %v1525_v16, %s2600_s4 }
0x1561   :  { %v1574_v25 = vpop.permute.xlu0 %1573 }
0x1562   :  { %v1576_v18 = vmul.f32 %v1574_v25, %v1553_v39  ;;  %v3135_v39 = vld [vmem:[%s3256_s13] ss:$0 sm:$0xff]  ;;  %s2006_s13 = sshll.u32 %s2601_s12, 4  ;;  %s2007_s13 = int_to_ptr.vmem [resolvable:$true] %s2006_s13 }
0x1563   :  { %v1724_v40 = vmul.f32 %v2283_v28, %v3135_v39  ;;  %v1664_v34 = vmul.f32 %v2285_v55, %v3135_v39  ;;  %v1863_v28 = vrot.slane %v2905_v38, 4 }
0x1564   :  { %1578 = vrot.lane.b32.xlu2 %v1576_v18, %s2589_s23 }
0x1565   :  { %v1527_v35 = vpop.permute.xlu1 %1526  ;;  %v1725_v43 = vsel %vm1644_vm6, %v1724_v40, 0.0  ;;  %v1665_v53 = vsel %vm1644_vm6, %v1664_v34, 0.0 }
0x1566   :  { %v1529_v21 = vmul.f32 %v1527_v35, %v1505_v58  ;;  %v2287_v58 = vpop.eup %2286 }
0x1567   :  { %v1744_v60 = vmul.f32 %v2287_v58, %v3135_v39  ;;  %v2289_v30 = vpop.eup %2288 }
0x1568   :  { %1531 = vrot.lane.b32.xlu0 %v1529_v21, %s2589_s23  ;;  %v2291_v4 = vpop.eup %2290 }
0x1569   :  { %v1745_v45 = vsel %vm1644_vm6, %v1744_v60, 0.0  ;;  %v1764_v50 = vmul.f32 %v2291_v4, %v3135_v39 }
0x1592   :  { %1726 = vadd.xlane.f32.xlu0 %v1725_v43  ;;  %v1851_v43 = vrot.slane %v3054_v14, 2 }
0x15be   :  { %v1579_v1 = vpop.permute.xlu2 %1578 }
0x15bf   :  { %v3139_v56 = vadd.f32 %v2279_v37, %v1579_v1  ;;  %v1684_v37 = vmul.f32 %v2289_v30, %v3135_v39 }
0x15c1   :  { %v1583_v41 = vpack.c.bf16 %v3139_v56, %v3139_v56  ;;  %v1685_v0 = vsel %vm1644_vm6, %v1684_v37, 0.0 }
0x15c3   :  { %1585 = vrot.lane.b32.xlu1 %v1583_v41, %s2592_s17  ;;  %v1897_v41 = vrot.slane %v2984_v47, 6  ;;  %v1925_v47 = vrot.slane %v2900_v29, 2 }
0x15da   :  { %v1532_v48 = vpop.permute.xlu0 %1531 }
0x15db   :  { %v3146_v2 = vadd.f32 %v2281_v9, %v1532_v48  ;;  %v1765_v9 = vsel %vm1644_vm6, %v1764_v50, 0.0 }
0x15dd   :  { %v1582_v54 = vpack.c.bf16 %v3146_v2, %v3146_v2  ;;  %v1959_v20 = vrot.slane %v3146_v2, 6 }
0x15df   :  { %v1770_v52 = vrot.slane %v1582_v54, 3 }
0x15e1   :  { %1771 = vrot.lane.b32.xlu2 %v1770_v52, %s2592_s17 }
0x15ed   :  { %1666 = vadd.xlane.f32.xlu1 %v1665_v53 }
0x15f5   :  { %1746 = vadd.xlane.f32.xlu1 %v1745_v45 }
0x1605   :  { %v1727_v54 = vpop.xlane.xlu0 %1726 }
0x160a   :  { %1686 = vadd.xlane.f32.xlu2 %v1685_v0 }
0x160e   :  { %1841 = vrot.lane.b32.xlu1 %v1840_v33, %s2592_s17 }
0x1612   :  { %1766 = vadd.xlane.f32.xlu2 %v1765_v9 }
0x1616   :  { %1875 = vrot.lane.b32.xlu1 %v1874_v8, %s2592_s17 }
0x161e   :  { %1915 = vrot.lane.b32.xlu1 %v1914_v27, %s2592_s17 }
0x1626   :  { %1949 = vrot.lane.b32.xlu1 %v1948_v11, %s2592_s17 }
0x1635   :  { %v1586_v61 = vpop.permute.xlu1 %1585 }
0x1636   :  { %2131 = vmatmul.msk.bf16.vlgmr.msra.gmra.mxu3 %vm335_vm0, %v1586_v61 }
0x1637   :  { %1782 = vmatpush.bf16.msra.mxu3 %v3064_v22 }
0x163b   :  { %1783 = vmatpush.bf16.msra.mxu3 %v3068_v6  ;;  %v1772_v5 = vpop.permute.xlu2 %1771 }
0x1646   :  { %2143 = vmatmul.msk.bf16.vlgmr.msrb.gmra.mxu3 %vm335_vm0, %v2954_v17 }
0x1656   :  { %2147 = vmatmul.msk.bf16.vlgmr.msra.gmra.mxu3 %vm335_vm0, %v1772_v5  ;;  %vm1614_vm0 = vcmask 254976  }
0x1660   :  { %v1667_v19 = vpop.xlane.xlu1 %1666 }
0x1668   :  { %v1747_v58 = vpop.xlane.xlu1 %1746 }
0x16b9   :  { %v1599_v23 = vpop.f32.mrf.mxu3 }
0x16ba   :  { %v1638_v12 = vadd.f32 %v3100_v49, %v1599_v23 }
0x16bc   :  { %v1641_v57 = vadd.f32 %v3129_v24, %v1638_v12 }
0x16be   :  { %2292 = vtanh.f32 %v1641_v57 }
0x16c1   :  { %v1601_v15 = vpop.f32.mrf.mxu3 }
0x16c4   :  { %v2293_v16 = vpop.eup %2292 }
0x16c5   :  { %v1643_v25 = vmul.f32 %v2293_v16, %v3135_v39 }
0x16c7   :  { %v1645_v22 = vsel %vm1644_vm6, %v1643_v25, 0.0 }
0x16c8   :  { %1646 = vadd.xlane.f32.xlu0 %v1645_v22 }
0x16c9   :  { %v1698_v6 = vpop.f32.mrf.mxu3 }
0x16ca   :  { %v1699_v18 = vadd.f32 %v1698_v6, %v3004_v59 }
0x16cc   :  { %v1702_v17 = vadd.f32 %v3129_v24, %v1699_v18 }
0x16ce   :  { %2294 = vtanh.f32 %v1702_v17 }
0x16d1   :  { %v1700_v35 = vpop.f32.mrf.mxu3 }
0x16d4   :  { %v2295_v21 = vpop.eup %2294 }
0x16d5   :  { %v1704_v49 = vmul.f32 %v2295_v21, %v3135_v39 }
0x16d7   :  { %v1705_v3 = vsel %vm1644_vm6, %v1704_v49, 0.0 }
0x16d8   :  { %1706 = vadd.xlane.f32.xlu2 %v1705_v3 }
0x16d9   :  { %v1785_v26 = vpop.f32.mrf.mxu3 }
0x16da   :  { %v1786_v59 = vadd.f32 %v1785_v26, %v2844_v46  ;;  %v1970_v46 = vrot.slane %v2818_v31, 6 }
0x16dc   :  { %1864 = vrot.lane.b32.xlu0 %v1863_v28, %s2592_s17  ;;  %v1789_v1 = vadd.f32 %v3129_v24, %v1786_v59  ;;  %v1886_v24 = vrot.slane %v2944_v13, 6 }
0x16de   :  { %2296 = vtanh.f32 %v1789_v1 }
0x16e1   :  { %v1787_v40 = vpop.f32.mrf.mxu3 }
0x16e4   :  { %v2297_v48 = vpop.eup %2296 }
0x16e5   :  { %v1791_v38 = vmul.f32 %v2297_v48, %v3135_v39  ;;  %v1687_v39 = vpop.xlane.xlu2 %1686 }
0x16e7   :  { %v1792_v14 = vsel %vm1644_vm6, %v1791_v38, 0.0 }
0x16ed   :  { %v1767_v7 = vpop.xlane.xlu2 %1766 }
0x16f0   :  { %1852 = vrot.lane.b32.xlu2 %v1851_v43, %s2592_s17 }
0x16f8   :  { %1898 = vrot.lane.b32.xlu2 %v1897_v41, %s2592_s17 }
0x1700   :  { %1938 = vrot.lane.b32.xlu2 %v1937_v44, %s2592_s17 }
0x1706   :  { %1793 = vadd.xlane.f32.xlu0 %v1792_v14 }
0x1708   :  { %1971 = vrot.lane.b32.xlu2 %v1970_v46, %s2592_s17 }
0x171a   :  { %1887 = vrot.lane.b32.xlu0 %v1886_v24, %s2592_s17  ;;  %v1842_v24 = vpop.permute.xlu1 %1841 }
0x1722   :  { %1926 = vrot.lane.b32.xlu0 %v1925_v47, %s2592_s17 }
0x172a   :  { %1960 = vrot.lane.b32.xlu0 %v1959_v20, %s2592_s17 }
0x173b   :  { %v1647_v52 = vpop.xlane.xlu0 %1646 }
0x173c   :  { %2298 = vtanh.f32 %v1647_v52 }
0x173d   :  { %2300 = vtanh.f32 %v1667_v19 }
0x173e   :  { %2302 = vtanh.f32 %v1687_v39 }
0x1742   :  { %v2299_v13 = vpop.eup %2298 }
0x1743   :  { %v2301_v55 = vpop.eup %2300 }
0x1744   :  { %v1796_v34 = vmax.f32 %v2299_v13, %v2301_v55  ;;  %v2303_v29 = vpop.eup %2302 }
0x1746   :  { %v1797_v60 = vmax.f32 %v1796_v34, %v2303_v29 }
0x174b   :  { %v1707_v31 = vpop.xlane.xlu2 %1706 }
0x174c   :  { %2304 = vtanh.f32 %v1707_v31 }
0x174d   :  { %2306 = vtanh.f32 %v1727_v54 }
0x174e   :  { %v1865_v62 = vpop.permute.xlu0 %1864  ;;  %2308 = vtanh.f32 %v1747_v58 }
0x174f   :  { %2310 = vtanh.f32 %v1767_v7 }
0x1752   :  { %v2305_v53 = vpop.eup %2304 }
0x1753   :  { %v1798_v45 = vmax.f32 %v1797_v60, %v2305_v53  ;;  %v2307_v42 = vpop.eup %2306  ;;  %v1853_v46 = vpop.permute.xlu2 %1852 }
0x1754   :  { %v2309_v30 = vpop.eup %2308 }
0x1755   :  { %v1799_v32 = vmax.f32 %v1798_v45, %v2307_v42  ;;  %v2311_v0 = vpop.eup %2310 }
0x1757   :  { %v1800_v37 = vmax.f32 %v1799_v32, %v2309_v30 }
0x1759   :  { %v1801_v4 = vmax.f32 %v1800_v37, %v2311_v0 }
0x1779   :  { %v1794_v63 = vpop.xlane.xlu0 %1793 }
0x177a   :  { %2312 = vtanh.f32 %v1794_v63 }
0x1780   :  { %v2313_v33 = vpop.eup %2312 }
0x1781   :  { %v1802_v50 = vmax.f32 %v1801_v4, %v2313_v33 }
0x1783   :  { %v1803_v9 = vsub.f32 %v2299_v13, %v1802_v50  ;;  %v1806_v8 = vsub.f32 %v2301_v55, %v1802_v50  ;;  %v1809_v27 = vsub.f32 %v2303_v29, %v1802_v50  ;;  %v1812_v5 = vsub.f32 %v2305_v53, %v1802_v50  ;;  %v1899_v13 = vpop.permute.xlu2 %1898  ;;  %v1876_v55 = vpop.permute.xlu1 %1875 }
0x1784   :  { %v1815_v12 = vsub.f32 %v2307_v42, %v1802_v50  ;;  %v1818_v57 = vsub.f32 %v2309_v30, %v1802_v50  ;;  %v1821_v25 = vsub.f32 %v2311_v0, %v1802_v50  ;;  %v1824_v6 = vsub.f32 %v2313_v33, %v1802_v50 }
0x1785   :  { %v1804_v11 = vmul.f32 1.442695, %v1803_v9  ;;  %v1807_v61 = vmul.f32 1.442695, %v1806_v8  ;;  %v1810_v23 = vmul.f32 1.442695, %v1809_v27 }
0x1786   :  { %v1813_v15 = vmul.f32 1.442695, %v1812_v5  ;;  %v1816_v16 = vmul.f32 1.442695, %v1815_v12  ;;  %v1819_v22 = vmul.f32 1.442695, %v1818_v57 }
0x1787   :  { %2314 = vpow2.f32 %v1804_v11  ;;  %v1822_v35 = vmul.f32 1.442695, %v1821_v25  ;;  %v1825_v3 = vmul.f32 1.442695, %v1824_v6 }
0x1788   :  { %2316 = vpow2.f32 %v1807_v61 }
0x1789   :  { %2318 = vpow2.f32 %v1810_v23 }
0x178a   :  { %2320 = vpow2.f32 %v1813_v15 }
0x178b   :  { %2322 = vpow2.f32 %v1816_v16  ;;  %v1939_v45 = vpop.permute.xlu2 %1938  ;;  %v1916_v32 = vpop.permute.xlu1 %1915 }
0x178c   :  { %2324 = vpow2.f32 %v1819_v22  ;;  %v1888_v34 = vpop.permute.xlu0 %1887 }
0x178d   :  { %v2315_v18 = vpop.eup %2314  ;;  %2326 = vpow2.f32 %v1822_v35 }
0x178e   :  { %v2317_v17 = vpop.eup %2316  ;;  %2328 = vpow2.f32 %v1825_v3 }
0x178f   :  { %v1827_v21 = vadd.f32 %v2317_v17, %v2315_v18  ;;  %v2319_v49 = vpop.eup %2318 }
0x1790   :  { %v2321_v28 = vpop.eup %2320 }
0x1791   :  { %v1828_v26 = vadd.f32 %v2319_v49, %v1827_v21  ;;  %v2323_v43 = vpop.eup %2322 }
0x1792   :  { %v2325_v1 = vpop.eup %2324 }
0x1793   :  { %v1829_v40 = vadd.f32 %v2321_v28, %v1828_v26  ;;  %v2327_v48 = vpop.eup %2326  ;;  %v1972_v33 = vpop.permute.xlu2 %1971 }
0x1794   :  { %v2329_v38 = vpop.eup %2328  ;;  %v1927_v63 = vpop.permute.xlu0 %1926 }
0x1795   :  { %v1830_v59 = vadd.f32 %v2323_v43, %v1829_v40  ;;  %v1950_v50 = vpop.permute.xlu1 %1949 }
0x1797   :  { %v1831_v41 = vadd.f32 %v2325_v1, %v1830_v59 }
0x1799   :  { %v1832_v44 = vadd.f32 %v2327_v48, %v1831_v41 }
0x179b   :  { %v1833_v14 = vadd.f32 %v2329_v38, %v1832_v44 }
0x179c   :  { %v1961_v9 = vpop.permute.xlu0 %1960 }
0x179d   :  { %2330 = vrcp.f32 %v1833_v14 }
0x17a3   :  { %v2331_v47 = vpop.eup %2330 }
0x17a4   :  { %v1861_v20 = vmul.f32 %v2331_v47, %v2319_v49  ;;  %v1838_v39 = vmul.f32 %v2331_v47, %v2317_v17  ;;  %v1835_v54 = vmul.f32 %v2331_v47, %v2315_v18  ;;  %v1907_v7 = vmul.f32 %v2331_v47, %v2323_v43 }
0x17a5   :  { %v1884_v29 = vmul.f32 %v2331_v47, %v2321_v28  ;;  %v1912_v42 = vmul.f32 %v2331_v47, %v2325_v1  ;;  %v1958_v4 = vmul.f32 %v2331_v47, %v2329_v38 }
0x17a6   :  { %v1867_v52 = vmul.f32 %v1865_v62, %v1861_v20  ;;  %v1844_v19 = vmul.f32 %v1842_v24, %v1838_v39  ;;  %v1855_v31 = vmul.f32 %v1853_v46, %v1838_v39  ;;  %v1878_v60 = vmul.f32 %v1876_v55, %v1861_v20 }
0x17a7   :  { %v1901_v53 = vmul.f32 %v1899_v13, %v1884_v29  ;;  %v1890_v58 = vmul.f32 %v1888_v34, %v1884_v29  ;;  %v1935_v62 = vmul.f32 %v2331_v47, %v2327_v48  ;;  %v1929_v37 = vmul.f32 %v1927_v63, %v1912_v42 }
0x17a8   :  { %1869 = vrot.lane.b32.xlu2 %v1867_v52, %s2592_s17  ;;  %1846 = vrot.lane.b32.xlu1 %v1844_v19, %s2592_s17  ;;  %v1918_v0 = vmul.f32 %v1916_v32, %v1912_v42  ;;  %v1974_v8 = vmul.f32 %v1972_v33, %v1958_v4  ;;  %v1963_v27 = vmul.f32 %v1961_v9, %v1958_v4 }
0x17a9   :  { %1857 = vrot.lane.b32.xlu0 %v1855_v31, %s2592_s17  ;;  %v1941_v30 = vmul.f32 %v1939_v45, %v1935_v62  ;;  %v1952_v11 = vmul.f32 %v1950_v50, %v1935_v62  ;;  %v1836_v16 = vmul.f32 %v1835_v54, %v2822_v36  ;;  %v1837_v22 = vmul.f32 %v1835_v54, %v3139_v56 }
0x17aa   :  { %v1908_v3 = vmul.f32 %v1907_v7, %v2989_v51  ;;  %v1910_v40 = vmul.f32 %v1907_v7, %v2940_v10 }
0x17b0   :  { %1903 = vrot.lane.b32.xlu2 %v1901_v53, %s2592_s17  ;;  %1880 = vrot.lane.b32.xlu1 %v1878_v60, %s2592_s17 }
0x17b1   :  { %1892 = vrot.lane.b32.xlu0 %v1890_v58, %s2592_s17 }
0x17b8   :  { %1943 = vrot.lane.b32.xlu2 %v1941_v30, %s2592_s17  ;;  %1920 = vrot.lane.b32.xlu1 %v1918_v0, %s2592_s17 }
0x17b9   :  { %1931 = vrot.lane.b32.xlu0 %v1929_v37, %s2592_s17 }
0x17c0   :  { %1976 = vrot.lane.b32.xlu2 %v1974_v8, %s2592_s17  ;;  %1954 = vrot.lane.b32.xlu1 %v1952_v11, %s2592_s17 }
0x17c1   :  { %1965 = vrot.lane.b32.xlu0 %v1963_v27, %s2592_s17 }
0x17c8   :  { %1610 = vrot.lane.b32.xlu2 %v3139_v56, %s2592_s17 }
0x17c9   :  { %1604 = vrot.lane.b32.xlu0 %v3146_v2, %s2592_s17 }
0x1802   :  { %v1870_v61 = vpop.permute.xlu2 %1869 }
0x180a   :  { %v1904_v5 = vpop.permute.xlu2 %1903 }
0x1812   :  { %v1944_v23 = vpop.permute.xlu2 %1943 }
0x181a   :  { %v1977_v12 = vpop.permute.xlu2 %1976  ;;  %v1847_v57 = vpop.permute.xlu1 %1846 }
0x181b   :  { %v1858_v15 = vpop.permute.xlu0 %1857  ;;  %v1849_v25 = vadd.f32 %v1847_v57, %v1836_v16 }
0x181c   :  { %v1860_v6 = vadd.f32 %v1858_v15, %v1837_v22 }
0x181d   :  { %v1872_v18 = vadd.f32 %v1870_v61, %v1849_v25 }
0x1822   :  { %v1611_v17 = vpop.permute.xlu2 %1610  ;;  %v1881_v35 = vpop.permute.xlu1 %1880 }
0x1823   :  { %v1893_v21 = vpop.permute.xlu0 %1892  ;;  %1615 = vst.msk [vmem:[#allocation17 + $0x2] sm:$0x3] %vm1614_vm0, %v1611_v17  ;;  %v1883_v2 = vadd.f32 %v1881_v35, %v1860_v6 }
0x1824   :  { %v1895_v49 = vadd.f32 %v1893_v21, %v1872_v18 }
0x1825   :  { %v1906_v26 = vadd.f32 %v1904_v5, %v1883_v2 }
0x1826   :  { %v1909_v28 = vadd.f32 %v1908_v3, %v1895_v49 }
0x1827   :  { %v1911_v36 = vadd.f32 %v1910_v40, %v1906_v26 }
0x182a   :  { %v1921_v43 = vpop.permute.xlu1 %1920 }
0x182b   :  { %v1932_v59 = vpop.permute.xlu0 %1931  ;;  %v1923_v56 = vadd.f32 %v1921_v43, %v1909_v28 }
0x182c   :  { %v1934_v38 = vadd.f32 %v1932_v59, %v1911_v36 }
0x182d   :  { %v1946_v1 = vadd.f32 %v1944_v23, %v1923_v56 }
0x1832   :  { %v1955_v44 = vpop.permute.xlu1 %1954 }
0x1833   :  { %v1966_v41 = vpop.permute.xlu0 %1965  ;;  %v1957_v51 = vadd.f32 %v1955_v44, %v1934_v38 }
0x1834   :  { %v1968_v48 = vadd.f32 %v1966_v41, %v1946_v1 }
0x1835   :  { %v1979_v14 = vadd.f32 %v1977_v12, %v1957_v51 }
0x1836   :  { %1981 = vrot.lane.b32.xlu1 %v1968_v48, %s2592_s17  ;;  %s2602_s17 = smov [#allocation16]  }
0x1837   :  { %s1996_s22 = sshll.u32 %s2602_s17, 4  ;;  %s1997_s22 = int_to_ptr.vmem [resolvable:$true] %s1996_s22 }
0x183b   :  { %v1605_v10 = vpop.permute.xlu0 %1604 }
0x183c   :  { %1608 = vst.msk [vmem:[#allocation17 - $0x6] sm:$0xc0] %vm1607_vm7, %v1605_v10 }
0x183d   :  { %2014 = dma.vmem_to_hbm [thread:$0]  %s2007_s13, 64, %s2009_s3, [#allocation18], %s2589_s23, %s2589_s23, %s2590_s24  }
0x183e   :  { %1986 = vrot.lane.b32.xlu1 %v1979_v14, %s2600_s4 }
0x18a8   :  { %v1982_v46 = vpop.permute.xlu1 %1981 }
0x18a9   :  { %1984 = vst.msk [vmem:[#allocation16] sm:$0x3] %vm1614_vm0, %v1982_v46 }
0x18b0   :  { %v1987_v24 = vpop.permute.xlu1 %1986 }
0x18b1   :  { %1990 = vst.msk [vmem:[#allocation16] sm:$0x3] %vm1989_vm8, %v1987_v24 }
0x18b2   :  { %2001 = dma.vmem_to_hbm [thread:$0]  %s1997_s22, 32, %s1999_s21, [#allocation4]  }
0x18b3   :  { %2584 = dma.done.wait [#allocation4], 32  }
0x18b4   :  { %2585 = vsyncadd [#allocation4], 4294967264 }
0x18b5   :  { %2586 = dma.done.wait [#allocation18], 64  }
0x18b6   :  { %2587 = vsyncadd [#allocation18], 4294967232 }
0x18b7   :  { %2023 = vsyncpa [#allocation3], 1 }
0x18b8   :  { %2024 = vsyncpa [#allocation6], 1 }
0x18b9   :  { %2025 = vsyncpa [#allocation9], 1 }
0x18ba   :  { %2026 = vsyncpa [#allocation12], 1 }
0x18bb   :  { %2027 = vsyncpa [#allocation15], 1 }
0x18bc   :  { %2028 = vsyncpa [#allocation4], 1 }
0x18bd   :  { %2029 = vsyncpa [#allocation18], 1 }

</bundles_post_ra>
